<compile_context>
chip_gen: v7x
topology: tpu7x:2x2x1
jax: 0.10.0
libtpu: 0.0.40
codegen_flags: <defaults>
</compile_context>

<pallas_src>
import jax
import jax.numpy as jnp
from jax.experimental import pallas as pl
from jax.experimental.pallas import tpu as pltpu

HIDDEN = 1024  # hard-coded in the PyTorch module


# ------------------------------------------------------------------ kernels --

def _gemm_bias_kernel(x_ref, w_ref, b_ref, o_ref):
    """o = x @ w + b, bf16 MXU inputs, f32 accumulation / bias / output."""
    acc = jnp.dot(x_ref[...].astype(jnp.bfloat16), w_ref[...],
                  preferred_element_type=jnp.float32)
    o_ref[...] = (acc + b_ref[...]).astype(o_ref.dtype)


def _rnn_step_kernel(xproj_ref, h0_ref, whh_ref, hs_ref, h_scratch):
    """One serial timestep: h_t = tanh(xproj_t + h_{t-1} @ Whh^T)."""
    t = pl.program_id(0)

    @pl.when(t == 0)
    def _():
        h_scratch[...] = h0_ref[...]

    h_prev = h_scratch[...]                                    # (B, H) f32
    pre = xproj_ref[...] + jnp.dot(h_prev.astype(jnp.bfloat16), whh_ref[...],
                                   preferred_element_type=jnp.float32)
    h = jnp.tanh(pre)                                          # (B, H) f32
    h_scratch[...] = h
    hs_ref[...] = h


# ------------------------------------------------------------- pallas calls --

def _gemm_bias(x, w_bf16, b, *, block_m):
    """(M, K) @ (K, N) + (1, N) with a parallel grid over M-blocks."""
    M, K = x.shape
    _, N = w_bf16.shape
    return pl.pallas_call(
        _gemm_bias_kernel,
        out_shape=jax.ShapeDtypeStruct((M, N), jnp.float32),
        grid_spec=pltpu.PrefetchScalarGridSpec(
            num_scalar_prefetch=0,
            grid=(M // block_m,),
            in_specs=[
                pl.BlockSpec((block_m, K), lambda i: (i, 0)),
                pl.BlockSpec((K, N), lambda i: (0, 0)),
                pl.BlockSpec((1, N), lambda i: (0, 0)),
            ],
            out_specs=pl.BlockSpec((block_m, N), lambda i: (i, 0)),
        ),
        compiler_params=pltpu.CompilerParams(
            dimension_semantics=("parallel",)),
    )(x, w_bf16, b)


def _recurrence(xproj, h0, whh_bf16):
    """Sequential tanh-RNN over the leading S axis; returns all hidden states."""
    S, B, H = xproj.shape
    return pl.pallas_call(
        _rnn_step_kernel,
        out_shape=jax.ShapeDtypeStruct((S, B, H), jnp.float32),
        grid_spec=pltpu.PrefetchScalarGridSpec(
            num_scalar_prefetch=0,
            grid=(S,),
            in_specs=[
                pl.BlockSpec((None, B, H), lambda t: (t, 0, 0)),  # xproj[t]
                pl.BlockSpec((None, B, H), lambda t: (0, 0, 0)),  # h0
                pl.BlockSpec((H, H), lambda t: (0, 0)),           # Whh^T (bf16)
            ],
            out_specs=pl.BlockSpec((None, B, H), lambda t: (t, 0, 0)),
            scratch_shapes=[pltpu.VMEM((B, H), jnp.float32)],
        ),
        compiler_params=pltpu.CompilerParams(
            dimension_semantics=("arbitrary",)),   # true recurrence
    )(xproj, h0, whh_bf16)


# ---------------------------------------------------------------- wrapper ----

def wordvec_block(x, h0, params):
    """x: (S, B, V), h0: (1, B, H). Returns (o (S,B,V), h_out (1,B,H))."""
    S, B, V = x.shape
    H = HIDDEN
    (wext_t, bext, wih_t, bih, whh_t, bhh, wfc_t, bfc) = params

    # Fuse the extending layer into the RNN input projection (computed once,
    # in f32): e @ Wih^T = x @ (Wext^T Wih^T) + bext @ Wih^T. Fold all input-
    # side biases (bext@Wih^T + b_ih + b_hh) into a single (1, H) bias.
    w_in = wext_t @ wih_t                           # (V, H) f32
    b_in = bext @ wih_t + bih + bhh                 # (1, H) f32

    # bf16 weights for the MXU; activations/bias/accum stay f32.
    w_in_bf = w_in.astype(jnp.bfloat16)
    whh_bf = whh_t.astype(jnp.bfloat16)
    wfc_bf = wfc_t.astype(jnp.bfloat16)

    # Hoisted input projection over ALL timesteps: one GEMM with M = S*B.
    xproj = _gemm_bias(x.reshape(S * B, V), w_in_bf, b_in, block_m=B)
    xproj = xproj.reshape(S, B, H)

    # Serial recurrence (the only part that must run step by step).
    hs = _recurrence(xproj, h0, whh_bf)             # (S, B, H) f32
    h_out = hs[S - 1:S]                             # (1, B, H): final hidden

    # Hoisted fc layer: one GEMM with M = S*B.
    o = _gemm_bias(hs.reshape(S * B, H), wfc_bf, bfc, block_m=B)
    o = o.reshape(S, B, V)
    return o, h_out


# --------------------------------------------------------------- reference ---

def _reference(x, h0, params):
    """Pure-JAX f32 reference mirroring the PyTorch forward (unfused)."""
    (wext_t, bext, wih_t, bih, whh_t, bhh, wfc_t, bfc) = params
    e = x @ wext_t + bext                       # (S, B, H)
    h = h0[0]                                   # (B, H)
    outs = []
    for t in range(x.shape[0]):
        h = jnp.tanh(e[t] @ wih_t + bih + h @ whh_t + bhh)
        outs.append(h)
    out = jnp.stack(outs, axis=0)               # (S, B, H)
    o = out @ wfc_t + bfc                       # (S, B, V)
    return o, h[None]


def init_params(key, vocab_len, hidden=HIDDEN, dtype=jnp.float32):
    """Deterministic parameter init (PyTorch-style uniform ranges)."""
    ks = jax.random.split(key, 8)

    def u(k, shape, fan_in):
        bound = 1.0 / jnp.sqrt(fan_in)
        return jax.random.uniform(k, shape, dtype, -bound, bound)

    # stored pre-transposed: (fan_in, fan_out); biases as (1, fan_out)
    wext_t = u(ks[0], (vocab_len, hidden), vocab_len)
    bext   = u(ks[1], (1, hidden), vocab_len)
    wih_t  = u(ks[2], (hidden, hidden), hidden)
    bih    = u(ks[3], (1, hidden), hidden)
    whh_t  = u(ks[4], (hidden, hidden), hidden)
    bhh    = u(ks[5], (1, hidden), hidden)
    wfc_t  = u(ks[6], (hidden, vocab_len), hidden)
    bfc    = u(ks[7], (1, vocab_len), hidden)
    return (wext_t, bext, wih_t, bih, whh_t, bhh, wfc_t, bfc)


if __name__ == "__main__":
    VOCAB = 256   # vocab_len
    S, B = 8, 8   # seq_len, batch (batch_first=False)

    key = jax.random.PRNGKey(0)
    k_x, k_h, k_p = jax.random.split(key, 3)
    x = jax.random.normal(k_x, (S, B, VOCAB), jnp.float32)
    h0 = jax.random.normal(k_h, (1, B, HIDDEN), jnp.float32)
    params = init_params(k_p, VOCAB)

    fn = jax.jit(wordvec_block)
    o, h_out = jax.block_until_ready(fn(x, h0, params))

    o_ref, h_ref = _reference(x, h0, params)
    assert o.shape == (S, B, VOCAB) and h_out.shape == (1, B, HIDDEN)
    # Tolerances loosened vs. the pure-f32 version: weights go through the
    # bf16 MXU path (f32 accumulation), giving ~1e-3-level rounding deltas.
    assert jnp.allclose(o, o_ref, atol=5e-2, rtol=5e-2)
    assert jnp.allclose(h_out, h_ref, atol=5e-2, rtol=5e-2)

    print("KERNEL_OK")
</pallas_src>

<mosaic_0001>
module attributes {stable_mosaic.version = 11 : i64} {
  func.func @_gemm_bias_kernel(%arg0: i32, %arg1: memref<8x256xf32, #tpu.memory_space<vmem>>, %arg2: memref<256x1024xbf16, #tpu.memory_space<vmem>>, %arg3: memref<1x1024xf32, #tpu.memory_space<vmem>>, %arg4: memref<8x1024xf32, #tpu.memory_space<vmem>>) attributes {dimension_semantics = [#tpu.dimension_semantics<parallel>], iteration_bounds = array<i64: 8>, scalar_prefetch = 0 : i64, scratch_operands = 0 : i64, tpu.core_type = #tpu.core_type<tc>, window_params = [{transform_indices = @transform_0, window_bounds = array<i64: 8, 256>}, {pipeline_mode = #tpu.pipeline_mode<synchronous>, transform_indices = @transform_1, window_bounds = array<i64: 256, 1024>}, {pipeline_mode = #tpu.pipeline_mode<synchronous>, transform_indices = @transform_2, window_bounds = array<i64: 1, 1024>}, {transform_indices = @transform_3, window_bounds = array<i64: 8, 1024>}]} {
    %c0 = arith.constant 0 : index
    %c0_0 = arith.constant 0 : index
    %0 = vector.load %arg1[%c0, %c0_0] : memref<8x256xf32, #tpu.memory_space<vmem>>, vector<8x256xf32>
    %1 = arith.truncf %0 : vector<8x256xf32> to vector<8x256xbf16>
    %c0_1 = arith.constant 0 : index
    %c0_2 = arith.constant 0 : index
    %2 = vector.load %arg2[%c0_1, %c0_2] : memref<256x1024xbf16, #tpu.memory_space<vmem>>, vector<256x1024xbf16>
    %cst = arith.constant dense<0.000000e+00> : vector<8x1024xf32>
    %3 = tpu.matmul %1, %2, %cst {dimension_numbers = #tpu.dot_dimension_numbers<[1], [0], [0], [1], [0, 0, 1, 1], [], []>} : vector<8x256xbf16>, vector<256x1024xbf16>, vector<8x1024xf32> -> vector<8x1024xf32>
    %c0_3 = arith.constant 0 : index
    %c0_4 = arith.constant 0 : index
    %4 = vector.load %arg3[%c0_3, %c0_4] : memref<1x1024xf32, #tpu.memory_space<vmem>>, vector<1x1024xf32>
    %5 = vector.broadcast %4 : vector<1x1024xf32> to vector<8x1024xf32>
    %6 = arith.addf %3, %5 : vector<8x1024xf32>
    %c0_5 = arith.constant 0 : index
    %c0_6 = arith.constant 0 : index
    %7 = vector.load %arg4[%c0_5, %c0_6] : memref<8x1024xf32, #tpu.memory_space<vmem>>, vector<8x1024xf32>
    tpu.vector_store %arg4[%c0_5, %c0_6], %6 {strides = array<i32>} : memref<8x1024xf32, #tpu.memory_space<vmem>>, vector<8x1024xf32>,
    return
  }
  func.func @transform_0(%arg0: i32) -> (i32, i32) {
    %c0_i32 = arith.constant 0 : i32
    %c0_i32_0 = arith.constant 0 : i32
    return %arg0, %c0_i32 : i32, i32
  }
  func.func @transform_1(%arg0: i32) -> (i32, i32) {
    %c0_i32 = arith.constant 0 : i32
    %c0_i32_0 = arith.constant 0 : i32
    %c0_i32_1 = arith.constant 0 : i32
    return %c0_i32, %c0_i32_0 : i32, i32
  }
  func.func @transform_2(%arg0: i32) -> (i32, i32) {
    %c0_i32 = arith.constant 0 : i32
    %c0_i32_0 = arith.constant 0 : i32
    %c0_i32_1 = arith.constant 0 : i32
    return %c0_i32, %c0_i32_0 : i32, i32
  }
  func.func @transform_3(%arg0: i32) -> (i32, i32) {
    %c0_i32 = arith.constant 0 : i32
    %c0_i32_0 = arith.constant 0 : i32
    return %arg0, %c0_i32 : i32, i32
  }
}

module attributes {stable_mosaic.version = 11 : i64} {
  func.func @_rnn_step_kernel(%arg0: i32, %arg1: memref<1x8x1024xf32, #tpu.memory_space<vmem>>, %arg2: memref<1x8x1024xf32, #tpu.memory_space<vmem>>, %arg3: memref<1024x1024xbf16, #tpu.memory_space<vmem>>, %arg4: memref<1x8x1024xf32, #tpu.memory_space<vmem>>, %arg5: memref<8x1024xf32, #tpu.memory_space<vmem>>) attributes {dimension_semantics = [#tpu.dimension_semantics<arbitrary>], iteration_bounds = array<i64: 8>, scalar_prefetch = 0 : i64, scratch_operands = 1 : i64, tpu.core_type = #tpu.core_type<tc>, window_params = [{transform_indices = @transform_0, window_bounds = array<i64: 1, 8, 1024>}, {pipeline_mode = #tpu.pipeline_mode<synchronous>, transform_indices = @transform_1, window_bounds = array<i64: 1, 8, 1024>}, {pipeline_mode = #tpu.pipeline_mode<synchronous>, transform_indices = @transform_2, window_bounds = array<i64: 1024, 1024>}, {transform_indices = @transform_3, window_bounds = array<i64: 1, 8, 1024>}]} {
    %c0_i32 = arith.constant 0 : i32
    %0 = arith.cmpi eq, %arg0, %c0_i32 : i32
    %1 = arith.extui %0 : i1 to i32
    %c0_i32_0 = arith.constant 0 : i32
    %2 = arith.cmpi ne, %1, %c0_i32_0 : i32
    scf.if %2 {
      %c0_12 = arith.constant 0 : index
      %c0_13 = arith.constant 0 : index
      %c0_14 = arith.constant 0 : index
      %15 = vector.load %arg2[%c0_12, %c0_13, %c0_14] : memref<1x8x1024xf32, #tpu.memory_space<vmem>>, vector<1x8x1024xf32>
      %16 = vector.shape_cast %15 : vector<1x8x1024xf32> to vector<8x1024xf32>
      %c0_15 = arith.constant 0 : index
      %c0_16 = arith.constant 0 : index
      %17 = vector.load %arg5[%c0_15, %c0_16] : memref<8x1024xf32, #tpu.memory_space<vmem>>, vector<8x1024xf32>
      tpu.vector_store %arg5[%c0_15, %c0_16], %16 {strides = array<i32>} : memref<8x1024xf32, #tpu.memory_space<vmem>>, vector<8x1024xf32>,
    } else {
    }
    %c0 = arith.constant 0 : index
    %c0_1 = arith.constant 0 : index
    %3 = vector.load %arg5[%c0, %c0_1] : memref<8x1024xf32, #tpu.memory_space<vmem>>, vector<8x1024xf32>
    %c0_2 = arith.constant 0 : index
    %c0_3 = arith.constant 0 : index
    %c0_4 = arith.constant 0 : index
    %4 = vector.load %arg1[%c0_2, %c0_3, %c0_4] : memref<1x8x1024xf32, #tpu.memory_space<vmem>>, vector<1x8x1024xf32>
    %5 = vector.shape_cast %4 : vector<1x8x1024xf32> to vector<8x1024xf32>
    %6 = arith.truncf %3 : vector<8x1024xf32> to vector<8x1024xbf16>
    %c0_5 = arith.constant 0 : index
    %c0_6 = arith.constant 0 : index
    %7 = vector.load %arg3[%c0_5, %c0_6] : memref<1024x1024xbf16, #tpu.memory_space<vmem>>, vector<1024x1024xbf16>
    %cst = arith.constant dense<0.000000e+00> : vector<8x1024xf32>
    %8 = tpu.matmul %6, %7, %cst {dimension_numbers = #tpu.dot_dimension_numbers<[1], [0], [0], [1], [0, 0, 1, 1], [], []>} : vector<8x1024xbf16>, vector<1024x1024xbf16>, vector<8x1024xf32> -> vector<8x1024xf32>
    %9 = arith.addf %5, %8 : vector<8x1024xf32>
    %10 = math.tanh %9 : vector<8x1024xf32>
    %c0_7 = arith.constant 0 : index
    %c0_8 = arith.constant 0 : index
    %11 = vector.load %arg5[%c0_7, %c0_8] : memref<8x1024xf32, #tpu.memory_space<vmem>>, vector<8x1024xf32>
    tpu.vector_store %arg5[%c0_7, %c0_8], %10 {strides = array<i32>} : memref<8x1024xf32, #tpu.memory_space<vmem>>, vector<8x1024xf32>,
    %c0_9 = arith.constant 0 : index
    %c0_10 = arith.constant 0 : index
    %c0_11 = arith.constant 0 : index
    %12 = vector.load %arg4[%c0_9, %c0_10, %c0_11] : memref<1x8x1024xf32, #tpu.memory_space<vmem>>, vector<1x8x1024xf32>
    %13 = vector.shape_cast %12 : vector<1x8x1024xf32> to vector<8x1024xf32>
    %14 = vector.shape_cast %10 : vector<8x1024xf32> to vector<1x8x1024xf32>
    tpu.vector_store %arg4[%c0_9, %c0_10, %c0_11], %14 {strides = array<i32>} : memref<1x8x1024xf32, #tpu.memory_space<vmem>>, vector<1x8x1024xf32>,
    return
  }
  func.func @transform_0(%arg0: i32) -> (i32, i32, i32) {
    %c0_i32 = arith.constant 0 : i32
    %c0_i32_0 = arith.constant 0 : i32
    %c0_i32_1 = arith.constant 0 : i32
    return %arg0, %c0_i32, %c0_i32_0 : i32, i32, i32
  }
  func.func @transform_1(%arg0: i32) -> (i32, i32, i32) {
    %c0_i32 = arith.constant 0 : i32
    %c0_i32_0 = arith.constant 0 : i32
    %c0_i32_1 = arith.constant 0 : i32
    %c0_i32_2 = arith.constant 0 : i32
    return %c0_i32, %c0_i32_0, %c0_i32_1 : i32, i32, i32
  }
  func.func @transform_2(%arg0: i32) -> (i32, i32) {
    %c0_i32 = arith.constant 0 : i32
    %c0_i32_0 = arith.constant 0 : i32
    %c0_i32_1 = arith.constant 0 : i32
    return %c0_i32, %c0_i32_0 : i32, i32
  }
  func.func @transform_3(%arg0: i32) -> (i32, i32, i32) {
    %c0_i32 = arith.constant 0 : i32
    %c0_i32_0 = arith.constant 0 : i32
    %c0_i32_1 = arith.constant 0 : i32
    return %arg0, %c0_i32, %c0_i32_0 : i32, i32, i32
  }
}

module attributes {stable_mosaic.version = 11 : i64} {
  func.func @_gemm_bias_kernel(%arg0: i32, %arg1: memref<8x1024xf32, #tpu.memory_space<vmem>>, %arg2: memref<1024x256xbf16, #tpu.memory_space<vmem>>, %arg3: memref<1x256xf32, #tpu.memory_space<vmem>>, %arg4: memref<8x256xf32, #tpu.memory_space<vmem>>) attributes {dimension_semantics = [#tpu.dimension_semantics<parallel>], iteration_bounds = array<i64: 8>, scalar_prefetch = 0 : i64, scratch_operands = 0 : i64, tpu.core_type = #tpu.core_type<tc>, window_params = [{transform_indices = @transform_0, window_bounds = array<i64: 8, 1024>}, {pipeline_mode = #tpu.pipeline_mode<synchronous>, transform_indices = @transform_1, window_bounds = array<i64: 1024, 256>}, {pipeline_mode = #tpu.pipeline_mode<synchronous>, transform_indices = @transform_2, window_bounds = array<i64: 1, 256>}, {transform_indices = @transform_3, window_bounds = array<i64: 8, 256>}]} {
    %c0 = arith.constant 0 : index
    %c0_0 = arith.constant 0 : index
    %0 = vector.load %arg1[%c0, %c0_0] : memref<8x1024xf32, #tpu.memory_space<vmem>>, vector<8x1024xf32>
    %1 = arith.truncf %0 : vector<8x1024xf32> to vector<8x1024xbf16>
    %c0_1 = arith.constant 0 : index
    %c0_2 = arith.constant 0 : index
    %2 = vector.load %arg2[%c0_1, %c0_2] : memref<1024x256xbf16, #tpu.memory_space<vmem>>, vector<1024x256xbf16>
    %cst = arith.constant dense<0.000000e+00> : vector<8x256xf32>
    %3 = tpu.matmul %1, %2, %cst {dimension_numbers = #tpu.dot_dimension_numbers<[1], [0], [0], [1], [0, 0, 1, 1], [], []>} : vector<8x1024xbf16>, vector<1024x256xbf16>, vector<8x256xf32> -> vector<8x256xf32>
    %c0_3 = arith.constant 0 : index
    %c0_4 = arith.constant 0 : index
    %4 = vector.load %arg3[%c0_3, %c0_4] : memref<1x256xf32, #tpu.memory_space<vmem>>, vector<1x256xf32>
    %5 = vector.broadcast %4 : vector<1x256xf32> to vector<8x256xf32>
    %6 = arith.addf %3, %5 : vector<8x256xf32>
    %c0_5 = arith.constant 0 : index
    %c0_6 = arith.constant 0 : index
    %7 = vector.load %arg4[%c0_5, %c0_6] : memref<8x256xf32, #tpu.memory_space<vmem>>, vector<8x256xf32>
    tpu.vector_store %arg4[%c0_5, %c0_6], %6 {strides = array<i32>} : memref<8x256xf32, #tpu.memory_space<vmem>>, vector<8x256xf32>,
    return
  }
  func.func @transform_0(%arg0: i32) -> (i32, i32) {
    %c0_i32 = arith.constant 0 : i32
    %c0_i32_0 = arith.constant 0 : i32
    return %arg0, %c0_i32 : i32, i32
  }
  func.func @transform_1(%arg0: i32) -> (i32, i32) {
    %c0_i32 = arith.constant 0 : i32
    %c0_i32_0 = arith.constant 0 : i32
    %c0_i32_1 = arith.constant 0 : i32
    return %c0_i32, %c0_i32_0 : i32, i32
  }
  func.func @transform_2(%arg0: i32) -> (i32, i32) {
    %c0_i32 = arith.constant 0 : i32
    %c0_i32_0 = arith.constant 0 : i32
    %c0_i32_1 = arith.constant 0 : i32
    return %c0_i32, %c0_i32_0 : i32, i32
  }
  func.func @transform_3(%arg0: i32) -> (i32, i32) {
    %c0_i32 = arith.constant 0 : i32
    %c0_i32_0 = arith.constant 0 : i32
    return %arg0, %c0_i32 : i32, i32
  }
}

</mosaic_0001>

<bundles_post_ra>
// kernel: wordvec_block.3
= control target key start
LH: loop header
LB: loop body
LE: loop exit
PB: predicated region body
PF: predicated region fallthrough
CT: control target
= control target key end

     0   :  { %s1389_s12 = smov 0   ;;  %s1827_s0 = inlined_call_operand.vmem [shape: f32[64,256], index: 0, kind: input, shape index: {}]   ;;  %s1828_s1 = inlined_call_operand.vmem [shape: bf16[256,1024], index: 1, kind: input, shape index: {}]   ;;  %s1829_s2 = inlined_call_operand.vmem [shape: f32[1,1024], index: 2, kind: input, shape index: {}]   ;;  %s1830_s3 = inlined_call_operand.vmem [shape: f32[64,1024], index: 3, kind: output, shape index: {}]  }
   0x1 LB: > { %s1212_s13 = sadd.s32 4294967295, %s1367_s12   ;;  %p1216_p0 = scmp.ge.s32.totalorder %s1367_s12, 1  ;;  %s1367_s12 = sphi %s1389_s12, %s13_s12  }
   0x2   : > { %p137_p1 = scmp.lt.s32.totalorder %s1367_s12, 9 }
   0x4   : > { %p138_p2 = pnand %p1216_p0, %p137_p1 }
   0x5   : > { %v175_v0 = vld [vmem:[%s1828_s1] sm:$0xff] (!%p138_p2)  ;;  %v176_v2 = vld [vmem:[%s1828_s1 + $0x8] sm:$0xff] (!%p138_p2)  ;;  %p161_p3 = scmp.lt.s32.totalorder (!%p138_p2), %s1212_s13, 7 }
   0x6   : > { %141 = sbr.rel (%p138_p2) target bundleno = 353 (0x161), region = 32  ;;  %v179_v1 = vld [vmem:[%s1828_s1 + $0x20] sm:$0xff] (!%p138_p2)  ;;  %v180_v4 = vld [vmem:[%s1828_s1 + $0x28] sm:$0xff] (!%p138_p2) }
   0x7   : > { %v1222_v3 = vcombine.high (!%p138_p2), %v175_v0, %v179_v1  ;;  %v1221_v5 = vcombine.low (!%p138_p2), %v175_v0, %v179_v1  ;;  %v183_v6 = vld [vmem:[%s1828_s1 + $0x40] sm:$0xff] (!%p138_p2)  ;;  %v1224_v8 = vcombine.high (!%p138_p2), %v176_v2, %v180_v4  ;;  %v1223_v9 = vcombine.low (!%p138_p2), %v176_v2, %v180_v4  ;;  %v184_v11 = vld [vmem:[%s1828_s1 + $0x48] sm:$0xff] (!%p138_p2) }
   0x8   : > { %v187_v7 = vld [vmem:[%s1828_s1 + $0x60] sm:$0xff] (!%p138_p2)  ;;  %v188_v12 = vld [vmem:[%s1828_s1 + $0x68] sm:$0xff] (!%p138_p2) }
   0x9   : > { %v1230_v10 = vcombine.high (!%p138_p2), %v183_v6, %v187_v7  ;;  %v191_v13 = vld [vmem:[%s1828_s1 + $0x80] sm:$0xff] (!%p138_p2)  ;;  %985 = vmatprep.subr.bf16.mxu0 (!%p138_p2), %v1222_v3  ;;  %v1232_v14 = vcombine.high (!%p138_p2), %v184_v11, %v188_v12  ;;  %v192_v16 = vld [vmem:[%s1828_s1 + $0x88] sm:$0xff] (!%p138_p2)  ;;  %1026 = vmatprep.subr.bf16.mxu1 (!%p138_p2), %v1224_v8  ;;  %v1229_v18 = vcombine.low (!%p138_p2), %v183_v6, %v187_v7 }
   0xa   : > { %v195_v15 = vld [vmem:[%s1828_s1 + $0xa0] sm:$0xff] (!%p138_p2)  ;;  %v196_v17 = vld [vmem:[%s1828_s1 + $0xa8] sm:$0xff] (!%p138_p2)  ;;  %986 = vmatpush1.bf16.msra.mxu0 (!%p138_p2), %v1221_v5  ;;  %1027 = vmatpush1.bf16.msra.mxu1 (!%p138_p2), %v1223_v9  ;;  %v1231_v19 = vcombine.low (!%p138_p2), %v184_v11, %v188_v12 }
   0xb   : > { %987 = vmatprep.subr.bf16.mxu0 (!%p138_p2), %v1230_v10  ;;  %v1238_v20 = vcombine.high (!%p138_p2), %v191_v13, %v195_v15  ;;  %1028 = vmatprep.subr.bf16.mxu1 (!%p138_p2), %v1232_v14  ;;  %v1240_v21 = vcombine.high (!%p138_p2), %v192_v16, %v196_v17  ;;  %v199_v22 = vld [vmem:[%s1828_s1 + $0xc0] sm:$0xff] (!%p138_p2)  ;;  %v200_v24 = vld [vmem:[%s1828_s1 + $0xc8] sm:$0xff] (!%p138_p2)  ;;  %v1237_v26 = vcombine.low (!%p138_p2), %v191_v13, %v195_v15 }
   0xc   : > { %v203_v23 = vld [vmem:[%s1828_s1 + $0xe0] sm:$0xff] (!%p138_p2)  ;;  %v204_v25 = vld [vmem:[%s1828_s1 + $0xe8] sm:$0xff] (!%p138_p2)  ;;  %v1239_v27 = vcombine.low (!%p138_p2), %v192_v16, %v196_v17 }
   0xd   : > { %v1246_v28 = vcombine.high %v199_v22, %v203_v23  ;;  %v1248_v29 = vcombine.high %v200_v24, %v204_v25  ;;  %v207_v30 = vld [vmem:[%s1828_s1 + $0x100] sm:$0xff]  ;;  %v208_v32 = vld [vmem:[%s1828_s1 + $0x108] sm:$0xff]  ;;  %s1832_s13 = smov (!%p161_p3, %s1212_s13), 7  ;;  %v1245_v34 = vcombine.low %v199_v22, %v203_v23  ;;  %v1247_v35 = vcombine.low %v200_v24, %v204_v25 }
   0xe   : > { %988 = vmatpush1.bf16.msra.mxu0 %v1229_v18  ;;  %1029 = vmatpush1.bf16.msra.mxu1 %v1231_v19  ;;  %v211_v31 = vld [vmem:[%s1828_s1 + $0x120] sm:$0xff]  ;;  %v212_v33 = vld [vmem:[%s1828_s1 + $0x128] sm:$0xff]  ;;  %s1351_s10 = sshll.u32 %s1832_s13, 4  ;;  %s1352_s29 = sshll.u32 %s1832_s13, 6 }
   0xf   : > { %989 = vmatprep.subr.bf16.mxu0 %v1238_v20  ;;  %1030 = vmatprep.subr.bf16.mxu1 %v1240_v21  ;;  %v1254_v36 = vcombine.high %v207_v30, %v211_v31  ;;  %v1256_v37 = vcombine.high %v208_v32, %v212_v33  ;;  %v215_v38 = vld [vmem:[%s1828_s1 + $0x140] sm:$0xff]  ;;  %v216_v40 = vld [vmem:[%s1828_s1 + $0x148] sm:$0xff]  ;;  %v1253_v42 = vcombine.low %v207_v30, %v211_v31  ;;  %s1485_s19 = scalar_lea.vmem %s1827_s0, %s1351_s10  ;;  %s1814_s5 = scalar_lea.vmem %s1830_s3, %s1352_s29 }
  0x10   : > { %v219_v39 = vld [vmem:[%s1828_s1 + $0x160] sm:$0xff]  ;;  %v220_v41 = vld [vmem:[%s1828_s1 + $0x168] sm:$0xff]  ;;  %v1255_v43 = vcombine.low %v208_v32, %v212_v33 }
  0x11   : > { %v1262_v44 = vcombine.high %v215_v38, %v219_v39  ;;  %v1264_v45 = vcombine.high %v216_v40, %v220_v41  ;;  %v223_v46 = vld [vmem:[%s1828_s1 + $0x180] sm:$0xff]  ;;  %v224_v48 = vld [vmem:[%s1828_s1 + $0x188] sm:$0xff]  ;;  %v1261_v50 = vcombine.low %v215_v38, %v219_v39  ;;  %v1263_v51 = vcombine.low %v216_v40, %v220_v41 }
  0x12   : > { %990 = vmatpush1.bf16.msra.mxu0 %v1237_v26  ;;  %1031 = vmatpush1.bf16.msra.mxu1 %v1239_v27  ;;  %v227_v47 = vld [vmem:[%s1828_s1 + $0x1a0] sm:$0xff]  ;;  %v228_v49 = vld [vmem:[%s1828_s1 + $0x1a8] sm:$0xff] }
  0x13   : > { %991 = vmatprep.subr.bf16.mxu0 %v1246_v28  ;;  %1032 = vmatprep.subr.bf16.mxu1 %v1248_v29  ;;  %v1270_v52 = vcombine.high %v223_v46, %v227_v47  ;;  %v172_v53 = vld [vmem:[%s1485_s19 + $0x8] sm:$0xff]  ;;  %v1272_v54 = vcombine.high %v224_v48, %v228_v49  ;;  %v231_v55 = vld [vmem:[%s1828_s1 + $0x1c0] sm:$0xff]  ;;  %v1269_v60 = vcombine.low %v223_v46, %v227_v47 }
  0x14   : > { %v235_v56 = vld [vmem:[%s1828_s1 + $0x1e0] sm:$0xff]  ;;  %v1500_v57 = vpack.c.bf16 %v172_v53, %v172_v53  ;;  %v232_v58 = vld [vmem:[%s1828_s1 + $0x1c8] sm:$0xff]  ;;  %v1271_v61 = vcombine.low %v224_v48, %v228_v49 }
  0x15   : > { %v236_v59 = vld [vmem:[%s1828_s1 + $0x1e8] sm:$0xff]  ;;  %v1278_v62 = vcombine.high %v231_v55, %v235_v56  ;;  %v239_v0 = vld [vmem:[%s1828_s1 + $0x200] sm:$0xff]  ;;  %v1277_v4 = vcombine.low %v231_v55, %v235_v56 }
  0x16   : > { %992 = vmatpush1.bf16.msra.mxu0 %v1245_v34  ;;  %1033 = vmatpush1.bf16.msra.mxu1 %v1247_v35  ;;  %v1280_v63 = vcombine.high %v232_v58, %v236_v59  ;;  %v243_v1 = vld [vmem:[%s1828_s1 + $0x220] sm:$0xff]  ;;  %v240_v2 = vld [vmem:[%s1828_s1 + $0x208] sm:$0xff]  ;;  %v1279_v5 = vcombine.low %v232_v58, %v236_v59 }
  0x17   : > { %993 = vmatprep.subr.bf16.mxu0 %v1254_v36  ;;  %1034 = vmatprep.subr.bf16.mxu1 %v1256_v37  ;;  %v244_v3 = vld [vmem:[%s1828_s1 + $0x228] sm:$0xff]  ;;  %v1286_v6 = vcombine.high %v239_v0, %v243_v1  ;;  %v247_v8 = vld [vmem:[%s1828_s1 + $0x240] sm:$0xff]  ;;  %v1285_v12 = vcombine.low %v239_v0, %v243_v1  ;;  %v177_v1 = vld [vmem:[%s1828_s1 + $0x10] sm:$0xff] }
  0x18   : > { %1017 = vmatprep.mubr.bf16.mxu0 %v1500_v57  ;;  %1058 = vmatprep.mubr.bf16.mxu1 %v1500_v57  ;;  %v1288_v7 = vcombine.high %v240_v2, %v244_v3  ;;  %v251_v9 = vld [vmem:[%s1828_s1 + $0x260] sm:$0xff]  ;;  %v248_v10 = vld [vmem:[%s1828_s1 + $0x248] sm:$0xff]  ;;  %v1287_v13 = vcombine.low %v240_v2, %v244_v3  ;;  %v181_v2 = vld [vmem:[%s1828_s1 + $0x30] sm:$0xff] }
  0x19   : > { %v252_v11 = vld [vmem:[%s1828_s1 + $0x268] sm:$0xff]  ;;  %v1294_v14 = vcombine.high %v247_v8, %v251_v9  ;;  %v255_v16 = vld [vmem:[%s1828_s1 + $0x280] sm:$0xff]  ;;  %v1293_v20 = vcombine.low %v247_v8, %v251_v9  ;;  %v178_v3 = vld [vmem:[%s1828_s1 + $0x18] sm:$0xff]  ;;  %v1226_v8 = vcombine.high %v177_v1, %v181_v2 }
  0x1a   : > { %994 = vmatpush1.bf16.msra.mxu0 %v1253_v42  ;;  %1035 = vmatpush1.bf16.msra.mxu1 %v1255_v43  ;;  %v1296_v15 = vcombine.high %v248_v10, %v252_v11  ;;  %v259_v17 = vld [vmem:[%s1828_s1 + $0x2a0] sm:$0xff]  ;;  %v256_v18 = vld [vmem:[%s1828_s1 + $0x288] sm:$0xff]  ;;  %v1295_v21 = vcombine.low %v248_v10, %v252_v11  ;;  %v185_v10 = vld [vmem:[%s1828_s1 + $0x50] sm:$0xff] }
  0x1b   : > { %995 = vmatprep.subr.bf16.mxu0 %v1262_v44  ;;  %1036 = vmatprep.subr.bf16.mxu1 %v1264_v45  ;;  %v260_v19 = vld [vmem:[%s1828_s1 + $0x2a8] sm:$0xff]  ;;  %v1302_v22 = vcombine.high %v255_v16, %v259_v17  ;;  %v263_v24 = vld [vmem:[%s1828_s1 + $0x2c0] sm:$0xff]  ;;  %v1301_v28 = vcombine.low %v255_v16, %v259_v17  ;;  %v189_v11 = vld [vmem:[%s1828_s1 + $0x70] sm:$0xff] }
  0x1c   : > { %v1304_v23 = vcombine.high %v256_v18, %v260_v19  ;;  %v267_v25 = vld [vmem:[%s1828_s1 + $0x2e0] sm:$0xff]  ;;  %v264_v26 = vld [vmem:[%s1828_s1 + $0x2c8] sm:$0xff]  ;;  %v1303_v29 = vcombine.low %v256_v18, %v260_v19  ;;  %v1234_v17 = vcombine.high %v185_v10, %v189_v11  ;;  %v193_v19 = vld [vmem:[%s1828_s1 + $0x90] sm:$0xff] }
  0x1d   : > { %v268_v27 = vld [vmem:[%s1828_s1 + $0x2e8] sm:$0xff]  ;;  %v1310_v30 = vcombine.high %v263_v24, %v267_v25  ;;  %v271_v32 = vld [vmem:[%s1828_s1 + $0x300] sm:$0xff]  ;;  %v1309_v36 = vcombine.low %v263_v24, %v267_v25 }
  0x1e   : > { %996 = vmatpush1.bf16.msra.mxu0 %v1261_v50  ;;  %1037 = vmatpush1.bf16.msra.mxu1 %v1263_v51  ;;  %v1312_v31 = vcombine.high %v264_v26, %v268_v27  ;;  %v275_v33 = vld [vmem:[%s1828_s1 + $0x320] sm:$0xff]  ;;  %v272_v34 = vld [vmem:[%s1828_s1 + $0x308] sm:$0xff]  ;;  %v1311_v37 = vcombine.low %v264_v26, %v268_v27  ;;  %v201_v27 = vld [vmem:[%s1828_s1 + $0xd0] sm:$0xff] }
  0x1f   : > { %997 = vmatprep.subr.bf16.mxu0 %v1270_v52  ;;  %1038 = vmatprep.subr.bf16.mxu1 %v1272_v54  ;;  %v276_v35 = vld [vmem:[%s1828_s1 + $0x328] sm:$0xff]  ;;  %v1318_v38 = vcombine.high %v271_v32, %v275_v33  ;;  %v279_v40 = vld [vmem:[%s1828_s1 + $0x340] sm:$0xff]  ;;  %v1317_v44 = vcombine.low %v271_v32, %v275_v33 }
  0x20   : > { %v1320_v39 = vcombine.high %v272_v34, %v276_v35  ;;  %v283_v41 = vld [vmem:[%s1828_s1 + $0x360] sm:$0xff]  ;;  %v280_v42 = vld [vmem:[%s1828_s1 + $0x348] sm:$0xff]  ;;  %v1319_v45 = vcombine.low %v272_v34, %v276_v35  ;;  %v209_v35 = vld [vmem:[%s1828_s1 + $0x110] sm:$0xff] }
  0x21   : > { %v284_v43 = vld [vmem:[%s1828_s1 + $0x368] sm:$0xff]  ;;  %v1326_v46 = vcombine.high %v279_v40, %v283_v41  ;;  %v287_v48 = vld [vmem:[%s1828_s1 + $0x380] sm:$0xff]  ;;  %v1325_v52 = vcombine.low %v279_v40, %v283_v41 }
  0x22   : > { %998 = vmatpush1.bf16.msra.mxu0 %v1269_v60  ;;  %1039 = vmatpush1.bf16.msra.mxu1 %v1271_v61  ;;  %v1328_v47 = vcombine.high %v280_v42, %v284_v43  ;;  %v291_v49 = vld [vmem:[%s1828_s1 + $0x3a0] sm:$0xff]  ;;  %v288_v50 = vld [vmem:[%s1828_s1 + $0x388] sm:$0xff]  ;;  %v1327_v53 = vcombine.low %v280_v42, %v284_v43  ;;  %v217_v42 = vld [vmem:[%s1828_s1 + $0x150] sm:$0xff] }
  0x23   : > { %999 = vmatprep.subr.bf16.mxu0 %v1278_v62  ;;  %1040 = vmatprep.subr.bf16.mxu1 %v1280_v63  ;;  %v292_v51 = vld [vmem:[%s1828_s1 + $0x3a8] sm:$0xff]  ;;  %v1334_v54 = vcombine.high %v287_v48, %v291_v49  ;;  %v295_v56 = vld [vmem:[%s1828_s1 + $0x3c0] sm:$0xff]  ;;  %v1333_v61 = vcombine.low %v287_v48, %v291_v49  ;;  %v221_v43 = vld [vmem:[%s1828_s1 + $0x170] sm:$0xff] }
  0x24   : > { %v1336_v55 = vcombine.high %v288_v50, %v292_v51  ;;  %v299_v58 = vld [vmem:[%s1828_s1 + $0x3e0] sm:$0xff]  ;;  %v296_v59 = vld [vmem:[%s1828_s1 + $0x3c8] sm:$0xff]  ;;  %v1335_v62 = vcombine.low %v288_v50, %v292_v51  ;;  %v1266_v48 = vcombine.high %v217_v42, %v221_v43  ;;  %v225_v50 = vld [vmem:[%s1828_s1 + $0x190] sm:$0xff] }
  0x25   : > { %v300_v60 = vld [vmem:[%s1828_s1 + $0x3e8] sm:$0xff]  ;;  %v1342_v63 = vcombine.high %v295_v56, %v299_v58  ;;  %v229_v51 = vld [vmem:[%s1828_s1 + $0x1b0] sm:$0xff] }
  0x26   : > { %1000 = vmatpush1.bf16.msra.mxu0 %v1277_v4  ;;  %1041 = vmatpush1.bf16.msra.mxu1 %v1279_v5  ;;  %v1344_v0 = vcombine.high %v296_v59, %v300_v60  ;;  %v182_v4 = vld [vmem:[%s1828_s1 + $0x38] sm:$0xff]  ;;  %v1341_v5 = vcombine.low %v295_v56, %v299_v58  ;;  %v1274_v56 = vcombine.high %v225_v50, %v229_v51 }
  0x27   : > { %1001 = vmatprep.subr.bf16.mxu0 %v1286_v6  ;;  %1042 = vmatprep.subr.bf16.mxu1 %v1288_v7  ;;  %v171_v6 = vld [vmem:[%s1485_s19] sm:$0xff]  ;;  %v1343_v7 = vcombine.low %v296_v59, %v300_v60  ;;  %v1228_v9 = vcombine.high %v178_v3, %v182_v4  ;;  %v1227_v16 = vcombine.low %v178_v3, %v182_v4  ;;  %v233_v59 = vld [vmem:[%s1828_s1 + $0x1d0] sm:$0xff] }
  0x28   : > { %v237_v60 = vld [vmem:[%s1828_s1 + $0x1f0] sm:$0xff] }
  0x29   : > { %v241_v3 = vld [vmem:[%s1828_s1 + $0x210] sm:$0xff] }
  0x2a   : > { %1002 = vmatpush1.bf16.msra.mxu0 %v1285_v12  ;;  %1043 = vmatpush1.bf16.msra.mxu1 %v1287_v13  ;;  %v1625_v12 = vpack.c.bf16 %v171_v6, %v171_v6  ;;  %v186_v13 = vld [vmem:[%s1828_s1 + $0x58] sm:$0xff]  ;;  %v245_v4 = vld [vmem:[%s1828_s1 + $0x230] sm:$0xff] }
  0x2b   : > { %1003 = vmatprep.subr.bf16.mxu0 %v1294_v14  ;;  %1044 = vmatprep.subr.bf16.mxu1 %v1296_v15  ;;  %v190_v14 = vld [vmem:[%s1828_s1 + $0x78] sm:$0xff]  ;;  %v1225_v15 = vcombine.low %v177_v1, %v181_v2  ;;  %v1282_v1 = vcombine.high %v233_v59, %v237_v60 }
  0x2c   : > { %v1236_v18 = vcombine.high %v186_v13, %v190_v14  ;;  %v1235_v24 = vcombine.low %v186_v13, %v190_v14  ;;  %v246_v6 = vld [vmem:[%s1828_s1 + $0x238] sm:$0xff]  ;;  %v253_v13 = vld [vmem:[%s1828_s1 + $0x270] sm:$0xff] }
  0x2d   : > { %v250_v14 = vld [vmem:[%s1828_s1 + $0x258] sm:$0xff] }
  0x2e   : > { %1004 = vmatpush1.bf16.msra.mxu0 %v1293_v20  ;;  %1045 = vmatpush1.bf16.msra.mxu1 %v1295_v21  ;;  %v197_v20 = vld [vmem:[%s1828_s1 + $0xb0] sm:$0xff]  ;;  %v194_v21 = vld [vmem:[%s1828_s1 + $0x98] sm:$0xff] }
  0x2f   : > { %1005 = vmatprep.subr.bf16.mxu0 %v1302_v22  ;;  %1046 = vmatprep.subr.bf16.mxu1 %v1304_v23  ;;  %v198_v22 = vld [vmem:[%s1828_s1 + $0xb8] sm:$0xff]  ;;  %v1233_v23 = vcombine.low %v185_v10, %v189_v11  ;;  %v1242_v25 = vcombine.high %v193_v19, %v197_v20  ;;  %v249_v11 = vld [vmem:[%s1828_s1 + $0x250] sm:$0xff] }
  0x30   : > { %v1244_v26 = vcombine.high %v194_v21, %v198_v22  ;;  %v1243_v32 = vcombine.low %v194_v21, %v198_v22  ;;  %v261_v21 = vld [vmem:[%s1828_s1 + $0x2b0] sm:$0xff]  ;;  %v258_v22 = vld [vmem:[%s1828_s1 + $0x298] sm:$0xff] }
  0x32   : > { %1006 = vmatpush1.bf16.msra.mxu0 %v1301_v28  ;;  %1047 = vmatpush1.bf16.msra.mxu1 %v1303_v29  ;;  %v205_v28 = vld [vmem:[%s1828_s1 + $0xf0] sm:$0xff]  ;;  %v202_v29 = vld [vmem:[%s1828_s1 + $0xd8] sm:$0xff] }
  0x33   : > { %1007 = vmatprep.subr.bf16.mxu0 %v1310_v30  ;;  %1048 = vmatprep.subr.bf16.mxu1 %v1312_v31  ;;  %v206_v30 = vld [vmem:[%s1828_s1 + $0xf8] sm:$0xff]  ;;  %v1241_v31 = vcombine.low %v193_v19, %v197_v20  ;;  %v1250_v33 = vcombine.high %v201_v27, %v205_v28  ;;  %v257_v20 = vld [vmem:[%s1828_s1 + $0x290] sm:$0xff] }
  0x34   : > { %v1252_v34 = vcombine.high %v202_v29, %v206_v30 }
  0x36   : > { %1008 = vmatpush1.bf16.msra.mxu0 %v1309_v36  ;;  %1049 = vmatpush1.bf16.msra.mxu1 %v1311_v37  ;;  %v213_v36 = vld [vmem:[%s1828_s1 + $0x130] sm:$0xff]  ;;  %v214_v37 = vld [vmem:[%s1828_s1 + $0x138] sm:$0xff] }
  0x37   : > { %1009 = vmatprep.subr.bf16.mxu0 %v1318_v38  ;;  %1050 = vmatprep.subr.bf16.mxu1 %v1320_v39  ;;  %v1249_v38 = vcombine.low %v201_v27, %v205_v28  ;;  %v1251_v39 = vcombine.low %v202_v29, %v206_v30  ;;  %v1258_v40 = vcombine.high %v209_v35, %v213_v36  ;;  %v265_v28 = vld [vmem:[%s1828_s1 + $0x2d0] sm:$0xff]  ;;  %v266_v30 = vld [vmem:[%s1828_s1 + $0x2d8] sm:$0xff] }
  0x38   : > { %v269_v29 = vld [vmem:[%s1828_s1 + $0x2f0] sm:$0xff] }
  0x3a   : > { %1010 = vmatpush1.bf16.msra.mxu0 %v1317_v44  ;;  %1051 = vmatpush1.bf16.msra.mxu1 %v1319_v45  ;;  %v218_v44 = vld [vmem:[%s1828_s1 + $0x158] sm:$0xff] }
  0x3b   : > { %1011 = vmatprep.subr.bf16.mxu0 %v1326_v46  ;;  %1052 = vmatprep.subr.bf16.mxu1 %v1328_v47  ;;  %v222_v45 = vld [vmem:[%s1828_s1 + $0x178] sm:$0xff]  ;;  %v1257_v46 = vcombine.low %v209_v35, %v213_v36  ;;  %v273_v36 = vld [vmem:[%s1828_s1 + $0x310] sm:$0xff] }
  0x3c   : > { %v1268_v49 = vcombine.high %v218_v44, %v222_v45 }
  0x3e   : > { %1012 = vmatpush1.bf16.msra.mxu0 %v1325_v52  ;;  %1053 = vmatpush1.bf16.msra.mxu1 %v1327_v53  ;;  %v226_v52 = vld [vmem:[%s1828_s1 + $0x198] sm:$0xff] }
  0x3f   : > { %1013 = vmatprep.subr.bf16.mxu0 %v1334_v54  ;;  %1054 = vmatprep.subr.bf16.mxu1 %v1336_v55  ;;  %v230_v53 = vld [vmem:[%s1828_s1 + $0x1b8] sm:$0xff]  ;;  %v1265_v54 = vcombine.low %v217_v42, %v221_v43  ;;  %v1267_v55 = vcombine.low %v218_v44, %v222_v45  ;;  %v281_v43 = vld [vmem:[%s1828_s1 + $0x350] sm:$0xff] }
  0x40   : > { %v1276_v58 = vcombine.high %v226_v52, %v230_v53  ;;  %v285_v44 = vld [vmem:[%s1828_s1 + $0x370] sm:$0xff]  ;;  %v282_v45 = vld [vmem:[%s1828_s1 + $0x358] sm:$0xff] }
  0x42   : > { %1014 = vmatpush1.bf16.msra.mxu0 %v1333_v61  ;;  %1055 = vmatpush1.bf16.msra.mxu1 %v1335_v62  ;;  %v234_v61 = vld [vmem:[%s1828_s1 + $0x1d8] sm:$0xff] }
  0x43   : > { %1015 = vmatprep.subr.bf16.mxu0 %v1342_v63  ;;  %1056 = vmatprep.subr.bf16.mxu1 %v1344_v0  ;;  %v238_v62 = vld [vmem:[%s1828_s1 + $0x1f8] sm:$0xff]  ;;  %v1273_v63 = vcombine.low %v225_v50, %v229_v51  ;;  %v1275_v0 = vcombine.low %v226_v52, %v230_v53  ;;  %v289_v51 = vld [vmem:[%s1828_s1 + $0x390] sm:$0xff] }
  0x44   : > { %v1284_v2 = vcombine.high %v234_v61, %v238_v62  ;;  %v293_v52 = vld [vmem:[%s1828_s1 + $0x3b0] sm:$0xff]  ;;  %v290_v53 = vld [vmem:[%s1828_s1 + $0x398] sm:$0xff] }
  0x46   : > { %1016 = vmatpush1.bf16.msra.mxu0 %v1341_v5  ;;  %1057 = vmatpush1.bf16.msra.mxu1 %v1343_v7  ;;  %v242_v5 = vld [vmem:[%s1828_s1 + $0x218] sm:$0xff]  ;;  %v1281_v7 = vcombine.low %v233_v59, %v237_v60  ;;  %v297_v60 = vld [vmem:[%s1828_s1 + $0x3d0] sm:$0xff] }
  0x47   : > { %1067 = vmatprep.subr.bf16.mxu0 %v1226_v8  ;;  %1108 = vmatprep.subr.bf16.mxu1 %v1228_v9  ;;  %v1283_v8 = vcombine.low %v234_v61, %v238_v62  ;;  %v1290_v9 = vcombine.high %v241_v3, %v245_v4  ;;  %v1292_v10 = vcombine.high %v242_v5, %v246_v6  ;;  %v301_v61 = vld [vmem:[%s1828_s1 + $0x3f0] sm:$0xff]  ;;  %v298_v62 = vld [vmem:[%s1828_s1 + $0x3d8] sm:$0xff] }
  0x49   : > { %1018 = vmatmul.mubr.bf16.vlgmr.msra.gmra.mrb[0].mxu0 %v1625_v12  ;;  %1059 = vmatmul.mubr.bf16.vlgmr.msra.gmra.mrb[0].mxu1 %v1625_v12 }
  0x4a   : > { %1068 = vmatpush1.bf16.msra.mxu0 %v1225_v15  ;;  %1109 = vmatpush1.bf16.msra.mxu1 %v1227_v16  ;;  %v254_v15 = vld [vmem:[%s1828_s1 + $0x278] sm:$0xff]  ;;  %v1289_v16 = vcombine.low %v241_v3, %v245_v4  ;;  %v1345_v4 = vcombine.low %v297_v60, %v301_v61 }
  0x4b   : > { %1069 = vmatprep.subr.bf16.mxu0 %v1234_v17  ;;  %1110 = vmatprep.subr.bf16.mxu1 %v1236_v18  ;;  %v1291_v17 = vcombine.low %v242_v5, %v246_v6  ;;  %v1298_v18 = vcombine.high %v249_v11, %v253_v13  ;;  %v1300_v19 = vcombine.high %v250_v14, %v254_v15  ;;  %v305_v6 = vlaneseq }
  0x4c   : > { %1099 = vmatprep.mubr.bf16.mxu0 %v1500_v57  ;;  %1140 = vmatprep.mubr.bf16.mxu1 %v1500_v57  ;;  %v210_v57 = vld [vmem:[%s1828_s1 + $0x118] sm:$0xff] }
  0x4d   : > { %v1260_v41 = vcombine.high %v210_v57, %v214_v37  ;;  %v1259_v47 = vcombine.low %v210_v57, %v214_v37  ;;  %v277_v57 = vld [vmem:[%s1828_s1 + $0x330] sm:$0xff]  ;;  %v274_v37 = vld [vmem:[%s1828_s1 + $0x318] sm:$0xff] }
  0x4e   : > { %1070 = vmatpush1.bf16.msra.mxu0 %v1233_v23  ;;  %1111 = vmatpush1.bf16.msra.mxu1 %v1235_v24  ;;  %v262_v23 = vld [vmem:[%s1828_s1 + $0x2b8] sm:$0xff]  ;;  %v1297_v24 = vcombine.low %v249_v11, %v253_v13 }
  0x4f   : > { %1071 = vmatprep.subr.bf16.mxu0 %v1242_v25  ;;  %1112 = vmatprep.subr.bf16.mxu1 %v1244_v26  ;;  %v1299_v25 = vcombine.low %v250_v14, %v254_v15  ;;  %v1306_v26 = vcombine.high %v257_v20, %v261_v21  ;;  %v1308_v27 = vcombine.high %v258_v22, %v262_v23 }
  0x52   : > { %1072 = vmatpush1.bf16.msra.mxu0 %v1241_v31  ;;  %1113 = vmatpush1.bf16.msra.mxu1 %v1243_v32  ;;  %v270_v31 = vld [vmem:[%s1828_s1 + $0x2f8] sm:$0xff]  ;;  %v1305_v32 = vcombine.low %v257_v20, %v261_v21 }
  0x53   : > { %1073 = vmatprep.subr.bf16.mxu0 %v1250_v33  ;;  %1114 = vmatprep.subr.bf16.mxu1 %v1252_v34  ;;  %v1307_v33 = vcombine.low %v258_v22, %v262_v23  ;;  %v1314_v34 = vcombine.high %v265_v28, %v269_v29  ;;  %v1316_v35 = vcombine.high %v266_v30, %v270_v31 }
  0x56   : > { %1074 = vmatpush1.bf16.msra.mxu0 %v1249_v38  ;;  %1115 = vmatpush1.bf16.msra.mxu1 %v1251_v39  ;;  %v278_v38 = vld [vmem:[%s1828_s1 + $0x338] sm:$0xff]  ;;  %v1313_v39 = vcombine.low %v265_v28, %v269_v29 }
  0x57   : > { %1075 = vmatprep.subr.bf16.mxu0 %v1258_v40  ;;  %1116 = vmatprep.subr.bf16.mxu1 %v1260_v41  ;;  %v1315_v40 = vcombine.low %v266_v30, %v270_v31  ;;  %v1322_v41 = vcombine.high %v273_v36, %v277_v57  ;;  %v1324_v42 = vcombine.high %v274_v37, %v278_v38 }
  0x5a   : > { %1076 = vmatpush1.bf16.msra.mxu0 %v1257_v46  ;;  %1117 = vmatpush1.bf16.msra.mxu1 %v1259_v47  ;;  %v286_v46 = vld [vmem:[%s1828_s1 + $0x378] sm:$0xff]  ;;  %v1321_v47 = vcombine.low %v273_v36, %v277_v57 }
  0x5b   : > { %1077 = vmatprep.subr.bf16.mxu0 %v1266_v48  ;;  %1118 = vmatprep.subr.bf16.mxu1 %v1268_v49  ;;  %v1323_v48 = vcombine.low %v274_v37, %v278_v38  ;;  %v1330_v49 = vcombine.high %v281_v43, %v285_v44  ;;  %v1332_v50 = vcombine.high %v282_v45, %v286_v46 }
  0x5e   : > { %1078 = vmatpush1.bf16.msra.mxu0 %v1265_v54  ;;  %1119 = vmatpush1.bf16.msra.mxu1 %v1267_v55  ;;  %v294_v54 = vld [vmem:[%s1828_s1 + $0x3b8] sm:$0xff]  ;;  %v1329_v55 = vcombine.low %v281_v43, %v285_v44 }
  0x5f   : > { %1079 = vmatprep.subr.bf16.mxu0 %v1274_v56  ;;  %1120 = vmatprep.subr.bf16.mxu1 %v1276_v58  ;;  %v1331_v56 = vcombine.low %v282_v45, %v286_v46  ;;  %v1338_v58 = vcombine.high %v289_v51, %v293_v52  ;;  %v1340_v59 = vcombine.high %v290_v53, %v294_v54 }
  0x62   : > { %1080 = vmatpush1.bf16.msra.mxu0 %v1273_v63  ;;  %1121 = vmatpush1.bf16.msra.mxu1 %v1275_v0  ;;  %v302_v63 = vld [vmem:[%s1828_s1 + $0x3f8] sm:$0xff]  ;;  %v1337_v0 = vcombine.low %v289_v51, %v293_v52 }
  0x63   : > { %1081 = vmatprep.subr.bf16.mxu0 %v1282_v1  ;;  %1122 = vmatprep.subr.bf16.mxu1 %v1284_v2  ;;  %v1339_v1 = vcombine.low %v290_v53, %v294_v54  ;;  %v1346_v2 = vcombine.high %v297_v60, %v301_v61  ;;  %v1348_v3 = vcombine.high %v298_v62, %v302_v63 }
  0x64   : > { %v1347_v5 = vcombine.low %v298_v62, %v302_v63 }
  0x66   : > { %1082 = vmatpush1.bf16.msra.mxu0 %v1281_v7  ;;  %1123 = vmatpush1.bf16.msra.mxu1 %v1283_v8  ;;  %v306_v7 = vshrl.u32 %v305_v6, 7 }
  0x67   : > { %1083 = vmatprep.subr.bf16.mxu0 %v1290_v9  ;;  %1124 = vmatprep.subr.bf16.mxu1 %v1292_v10  ;;  %v303_v9 = vld [vmem:[%s1829_s2] sm:$0xff] }
  0x68   : > { %v307_v8 = vsub.s32 0, %v306_v7  ;;  %v315_v10 = vsub.s32 2, %v306_v7  ;;  %v311_v11 = vsub.s32 1, %v306_v7  ;;  %v319_v13 = vsub.s32 3, %v306_v7 }
  0x69   : > { %v323_v29 = vsub.s32 4, %v306_v7  ;;  %v331_v30 = vsub.s32 6, %v306_v7  ;;  %v327_v31 = vsub.s32 5, %v306_v7 }
  0x6a   : > { %1084 = vmatpush1.bf16.msra.mxu0 %v1289_v16  ;;  %1125 = vmatpush1.bf16.msra.mxu1 %v1291_v17  ;;  %v308_v14 = vrot.slane %v303_v9, %v307_v8  ;;  %v316_v15 = vrot.slane %v303_v9, %v315_v10  ;;  %v312_v16 = vrot.slane %v303_v9, %v311_v11 }
  0x6b   : > { %1085 = vmatprep.subr.bf16.mxu0 %v1298_v18  ;;  %1126 = vmatprep.subr.bf16.mxu1 %v1300_v19  ;;  %v320_v17 = vrot.slane %v303_v9, %v319_v13 }
  0x6e   : > { %1086 = vmatpush1.bf16.msra.mxu0 %v1297_v24  ;;  %1127 = vmatpush1.bf16.msra.mxu1 %v1299_v25 }
  0x6f   : > { %1087 = vmatprep.subr.bf16.mxu0 %v1306_v26  ;;  %1128 = vmatprep.subr.bf16.mxu1 %v1308_v27 }
  0x72   : > { %1088 = vmatpush1.bf16.msra.mxu0 %v1305_v32  ;;  %1129 = vmatpush1.bf16.msra.mxu1 %v1307_v33  ;;  %v335_v32 = vsub.s32 7, %v306_v7  ;;  %v324_v33 = vrot.slane %v303_v9, %v323_v29 }
  0x73   : > { %1089 = vmatprep.subr.bf16.mxu0 %v1314_v34  ;;  %1130 = vmatprep.subr.bf16.mxu1 %v1316_v35  ;;  %v332_v34 = vrot.slane %v303_v9, %v331_v30  ;;  %v328_v35 = vrot.slane %v303_v9, %v327_v31 }
  0x74   : > { %v336_v36 = vrot.slane %v303_v9, %v335_v32 }
  0x76   : > { %1090 = vmatpush1.bf16.msra.mxu0 %v1313_v39  ;;  %1131 = vmatpush1.bf16.msra.mxu1 %v1315_v40 }
  0x77   : > { %1091 = vmatprep.subr.bf16.mxu0 %v1322_v41  ;;  %1132 = vmatprep.subr.bf16.mxu1 %v1324_v42 }
  0x7a   : > { %1092 = vmatpush1.bf16.msra.mxu0 %v1321_v47  ;;  %1133 = vmatpush1.bf16.msra.mxu1 %v1323_v48 }
  0x7b   : > { %1093 = vmatprep.subr.bf16.mxu0 %v1330_v49  ;;  %1134 = vmatprep.subr.bf16.mxu1 %v1332_v50 }
  0x7e   : > { %1094 = vmatpush1.bf16.msra.mxu0 %v1329_v55  ;;  %1135 = vmatpush1.bf16.msra.mxu1 %v1331_v56 }
  0x7f   : > { %1095 = vmatprep.subr.bf16.mxu0 %v1338_v58  ;;  %1136 = vmatprep.subr.bf16.mxu1 %v1340_v59 }
  0x82   : > { %1096 = vmatpush1.bf16.msra.mxu0 %v1337_v0  ;;  %1137 = vmatpush1.bf16.msra.mxu1 %v1339_v1 }
  0x83   : > { %1097 = vmatprep.subr.bf16.mxu0 %v1346_v2  ;;  %1138 = vmatprep.subr.bf16.mxu1 %v1348_v3 }
  0x86   : > { %1098 = vmatpush1.bf16.msra.mxu0 %v1345_v4  ;;  %1139 = vmatpush1.bf16.msra.mxu1 %v1347_v5 }
  0x89   : > { %1100 = vmatmul.mubr.bf16.vlgmr.msra.gmra.mrb[4].mxu0 %v1625_v12  ;;  %1141 = vmatmul.mubr.bf16.vlgmr.msra.gmra.mrb[4].mxu1 %v1625_v12 }
 0x11c   : > { %v1019_v12 = vpop.f32.mrb[0].mxu0  ;;  %v1060_v19 = vpop.f32.mrb[0].mxu1 }
 0x11d   : > { %v1020_v18 = vadd.f32 %v1019_v12, %v308_v14  ;;  %v1021_v20 = vpop.f32.mrb[1].mxu0  ;;  %v1061_v21 = vadd.f32 %v1060_v19, %v316_v15  ;;  %v1062_v23 = vpop.f32.mrb[1].mxu1 }
 0x11e   : > { %v1022_v22 = vadd.f32 %v1021_v20, %v312_v16  ;;  %v1023_v24 = vpop.f32.mrb[2].mxu0  ;;  %v1063_v25 = vadd.f32 %v1062_v23, %v320_v17  ;;  %v1064_v26 = vpop.f32.mrb[2].mxu1 }
 0x11f   : > { %1149 = vst [vmem:[%s1814_s5] sm:$0xff] %v1020_v18  ;;  %v1024_v27 = vpop.f32.mrb[3].mxu0  ;;  %1151 = vst [vmem:[%s1814_s5 + $0x10] sm:$0xff] %v1061_v21  ;;  %v1065_v28 = vpop.f32.mrb[3].mxu1 }
 0x120   : > { %1150 = vst [vmem:[%s1814_s5 + $0x8] sm:$0xff] %v1022_v22  ;;  %1152 = vst [vmem:[%s1814_s5 + $0x18] sm:$0xff] %v1063_v25 }
 0x15c   : > { %v1101_v57 = vpop.f32.mrb[4].mxu0  ;;  %v1142_v38 = vpop.f32.mrb[4].mxu1 }
 0x15d   : > { %v1102_v37 = vadd.f32 %v1101_v57, %v324_v33  ;;  %v1103_v39 = vpop.f32.mrb[5].mxu0  ;;  %v1143_v40 = vadd.f32 %v1142_v38, %v332_v34  ;;  %v1144_v42 = vpop.f32.mrb[5].mxu1 }
 0x15e   : > { %v1104_v41 = vadd.f32 %v1103_v39, %v328_v35  ;;  %v1105_v43 = vpop.f32.mrb[6].mxu0  ;;  %v1145_v44 = vadd.f32 %v1144_v42, %v336_v36  ;;  %v1146_v45 = vpop.f32.mrb[6].mxu1 }
 0x15f   : > { %1153 = vst [vmem:[%s1814_s5 + $0x20] sm:$0xff] %v1102_v37  ;;  %v1106_v46 = vpop.f32.mrb[7].mxu0  ;;  %1155 = vst [vmem:[%s1814_s5 + $0x30] sm:$0xff] %v1143_v40  ;;  %v1147_v47 = vpop.f32.mrb[7].mxu1 }
 0x160   : > { %1154 = vst [vmem:[%s1814_s5 + $0x28] sm:$0xff] %v1104_v41  ;;  %1156 = vst [vmem:[%s1814_s5 + $0x38] sm:$0xff] %v1145_v44 }
 0x161 PF: > { %s13_s12 = sadd.s32 1, %s1367_s12  }
 0x162   : > { %p10_p4 = scmp.ge.s32.totalorder %s13_s12, 10  }
 0x164   :  { %12 = sbr.rel (!%p10_p4) target bundleno = 1 (0x1), region = 62 }

// kernel: wordvec_block.5
= control target key start
LH: loop header
LB: loop body
LE: loop exit
PB: predicated region body
PF: predicated region fallthrough
CT: control target
= control target key end

     0   :  { %8 = vsyncpa [#allocation3], 0  ;;  %s2172_s0 = inlined_call_operand.vmem [shape: f32[64,1024], index: 0, kind: input, shape index: {}]   ;;  %s2173_s1 = inlined_call_operand.vmem [shape: bf16[1024,256], index: 1, kind: input, shape index: {}]   ;;  %s2174_s2 = inlined_call_operand.vmem [shape: f32[1,256], index: 2, kind: input, shape index: {}]   ;;  %s2175_s3 = inlined_call_operand.hbm [shape: f32[64,256], index: 3, kind: output, shape index: {}]  }
   0x1   :  { %10 = vsyncpa [#allocation3 + $0x1], 0  ;;  %s1675_s12 = smov 0   ;;  %s1677_s13 = smov 0  }
   0x2   :  { %s1679_s14 = smov 0   ;;  %s1681_s15 = smov 0  }
   0x3 LB: > { %s1696_s16 = sadd.s32 4294967295, %s1652_s15   ;;  %s1205_s17 = sadd.s32 4294967294, %s1652_s15   ;;  %s1652_s15 = sphi %s1681_s15, %s2181_s15   ;;  %s1648_s14 = sphi %s1679_s14, %s2180_s14   ;;  %s1644_s13 = sphi %s1677_s13, %s2179_s13   ;;  %s1640_s12 = sphi %s1675_s12, %s2178_s12  }
   0x4   : > { %s1700_s18 = sadd.s32 1, %s1652_s15   ;;  %s91_s19 = sadd.s32 1, %s1648_s14 }
   0x5   : > { %s88_s20 = ssub.s32 %s1652_s15, %s1700_s18  ;;  %p101_p0 = scmp.ne.s32.totalorder %s1648_s14, %s1644_s13 }
   0x6   : > { %p89_p1 = scmp.eq.s32.totalorder %s88_s20, 0  ;;  %p102_p2 = scmp.eq.s32.totalorder %s1696_s16, 7 }
   0x7   : > { %p107_p3 = scmp.ne.s32.totalorder %s1644_s13, %s1640_s12  ;;  %p108_p4 = scmp.eq.s32.totalorder %s1205_s17, 7 }
   0x8   : > { %s1711_s21 = scalar_select %p89_p1, %s1648_s14, %s91_s19  }
   0x9   : > { %p1713_p5 = por %p102_p2, %p101_p0  ;;  %p1717_p6 = por %p108_p4, %p107_p3 }
   0xa   : > { %p1208_p7 = scmp.ge.s32.totalorder %s1652_s15, 1  ;;  %p140_p8 = scmp.lt.s32.totalorder %s1652_s15, 9 }
   0xc   : > { %p141_p9 = pnand %p1208_p7, %p140_p8 }
   0xd   : > { %v1398_v0 = vld [vmem:[%s2173_s1 + $0x4] ss:$8 sps:$4 sm:$0xff] (!%p141_p9)   ;;  %v1402_v2 = vld [vmem:[%s2173_s1] ss:$8 sps:$4 sm:$0xff] (!%p141_p9)   ;;  %v1404_v4 = vld [vmem:[%s2173_s1 + $0x14] ss:$8 sps:$4 sm:$0xff] (!%p141_p9)  }
   0xe   : > { %144 = sbr.rel (%p141_p9) target bundleno = 373 (0x175), region = 32  ;;  %v1400_v1 = vld [vmem:[%s2173_s1 + $0x204] ss:$8 sps:$4 sm:$0xff] (!%p141_p9)   ;;  %965 = vmatprep.subr.bf16.mxu1 (!%p141_p9), %v1398_v0  ;;  %v1403_v3 = vld [vmem:[%s2173_s1 + $0x200] ss:$8 sps:$4 sm:$0xff] (!%p141_p9)   ;;  %p164_p10 = scmp.lt.s32.totalorder (!%p141_p9), %s1696_s16, 7 }
   0xf   : > { %1047 = vmatprep.subr.bf16.mxu0 (!%p141_p9), %v1400_v1  ;;  %966 = vmatpush1.bf16.msra.mxu1 (!%p141_p9), %v1402_v2  ;;  %v1406_v5 = vld [vmem:[%s2173_s1 + $0x214] ss:$8 sps:$4 sm:$0xff] (!%p141_p9)   ;;  %v1408_v6 = vld [vmem:[%s2173_s1 + $0x10] ss:$8 sps:$4 sm:$0xff] (!%p141_p9)   ;;  %v1410_v8 = vld [vmem:[%s2173_s1 + $0x24] ss:$8 sps:$4 sm:$0xff] (!%p141_p9)  }
  0x10   : > { %1048 = vmatpush1.bf16.msra.mxu0 (!%p141_p9), %v1403_v3  ;;  %967 = vmatprep.subr.bf16.mxu1 (!%p141_p9), %v1404_v4  ;;  %v1409_v7 = vld [vmem:[%s2173_s1 + $0x210] ss:$8 sps:$4 sm:$0xff] (!%p141_p9)   ;;  %v1412_v9 = vld [vmem:[%s2173_s1 + $0x224] ss:$8 sps:$4 sm:$0xff] (!%p141_p9)   ;;  %v1414_v10 = vld [vmem:[%s2173_s1 + $0x20] ss:$8 sps:$4 sm:$0xff] (!%p141_p9)  }
  0x11   : > { %1049 = vmatprep.subr.bf16.mxu0 (!%p141_p9), %v1406_v5  ;;  %v1415_v11 = vld [vmem:[%s2173_s1 + $0x220] ss:$8 sps:$4 sm:$0xff] (!%p141_p9)   ;;  %v1416_v12 = vld [vmem:[%s2173_s1 + $0x34] ss:$8 sps:$4 sm:$0xff] (!%p141_p9)   ;;  %v1420_v14 = vld [vmem:[%s2173_s1 + $0x30] ss:$8 sps:$4 sm:$0xff] (!%p141_p9)  }
  0x12   : > { %v1418_v13 = vld [vmem:[%s2173_s1 + $0x234] ss:$8 sps:$4 sm:$0xff] (!%p141_p9)   ;;  %v1421_v15 = vld [vmem:[%s2173_s1 + $0x230] ss:$8 sps:$4 sm:$0xff] (!%p141_p9)   ;;  %v1422_v16 = vld [vmem:[%s2173_s1 + $0x44] ss:$8 sps:$4 sm:$0xff] (!%p141_p9)  }
  0x13   : > { %968 = vmatpush1.bf16.msra.mxu1 (!%p141_p9), %v1408_v6  ;;  %v1424_v17 = vld [vmem:[%s2173_s1 + $0x244] ss:$8 sps:$4 sm:$0xff] (!%p141_p9)   ;;  %v1426_v18 = vld [vmem:[%s2173_s1 + $0x40] ss:$8 sps:$4 sm:$0xff] (!%p141_p9)   ;;  %v1428_v20 = vld [vmem:[%s2173_s1 + $0x54] ss:$8 sps:$4 sm:$0xff] (!%p141_p9)  }
  0x14   : > { %1050 = vmatpush1.bf16.msra.mxu0 (!%p141_p9), %v1409_v7  ;;  %969 = vmatprep.subr.bf16.mxu1 (!%p141_p9), %v1410_v8  ;;  %v1427_v19 = vld [vmem:[%s2173_s1 + $0x240] ss:$8 sps:$4 sm:$0xff] (!%p141_p9)   ;;  %v1430_v21 = vld [vmem:[%s2173_s1 + $0x254] ss:$8 sps:$4 sm:$0xff] (!%p141_p9)   ;;  %v1432_v22 = vld [vmem:[%s2173_s1 + $0x50] ss:$8 sps:$4 sm:$0xff] (!%p141_p9)  }
  0x15   : > { %1051 = vmatprep.subr.bf16.mxu0 %v1412_v9  ;;  %v1433_v23 = vld [vmem:[%s2173_s1 + $0x250] ss:$8 sps:$4 sm:$0xff]   ;;  %v1434_v24 = vld [vmem:[%s2173_s1 + $0x64] ss:$8 sps:$4 sm:$0xff]   ;;  %v1438_v26 = vld [vmem:[%s2173_s1 + $0x60] ss:$8 sps:$4 sm:$0xff]  }
  0x16   : > { %v1436_v25 = vld [vmem:[%s2173_s1 + $0x264] ss:$8 sps:$4 sm:$0xff]   ;;  %v1439_v27 = vld [vmem:[%s2173_s1 + $0x260] ss:$8 sps:$4 sm:$0xff]   ;;  %v1440_v28 = vld [vmem:[%s2173_s1 + $0x74] ss:$8 sps:$4 sm:$0xff]  }
  0x17   : > { %970 = vmatpush1.bf16.msra.mxu1 %v1414_v10  ;;  %v1442_v29 = vld [vmem:[%s2173_s1 + $0x274] ss:$8 sps:$4 sm:$0xff]   ;;  %v1444_v30 = vld [vmem:[%s2173_s1 + $0x70] ss:$8 sps:$4 sm:$0xff]   ;;  %v1446_v32 = vld [vmem:[%s2173_s1 + $0x84] ss:$8 sps:$4 sm:$0xff]  }
  0x18   : > { %1052 = vmatpush1.bf16.msra.mxu0 %v1415_v11  ;;  %971 = vmatprep.subr.bf16.mxu1 %v1416_v12  ;;  %v1445_v31 = vld [vmem:[%s2173_s1 + $0x270] ss:$8 sps:$4 sm:$0xff]   ;;  %v1448_v33 = vld [vmem:[%s2173_s1 + $0x284] ss:$8 sps:$4 sm:$0xff]   ;;  %v1450_v34 = vld [vmem:[%s2173_s1 + $0x80] ss:$8 sps:$4 sm:$0xff]  }
  0x19   : > { %1053 = vmatprep.subr.bf16.mxu0 %v1418_v13  ;;  %v1451_v35 = vld [vmem:[%s2173_s1 + $0x280] ss:$8 sps:$4 sm:$0xff]   ;;  %v1452_v36 = vld [vmem:[%s2173_s1 + $0x94] ss:$8 sps:$4 sm:$0xff]   ;;  %s165_s26 = scalar_select %p164_p10, %s1696_s16, 7 }
  0x1a   : > { %v1454_v37 = vld [vmem:[%s2173_s1 + $0x294] ss:$8 sps:$4 sm:$0xff]   ;;  %v1456_v38 = vld [vmem:[%s2173_s1 + $0x90] ss:$8 sps:$4 sm:$0xff]   ;;  %v1458_v40 = vld [vmem:[%s2173_s1 + $0xa4] ss:$8 sps:$4 sm:$0xff]  }
  0x1b   : > { %972 = vmatpush1.bf16.msra.mxu1 %v1420_v14  ;;  %v1457_v39 = vld [vmem:[%s2173_s1 + $0x290] ss:$8 sps:$4 sm:$0xff]   ;;  %s1345_s8 = sshll.u32 %s165_s26, 6  ;;  %v1460_v41 = vld [vmem:[%s2173_s1 + $0x2a4] ss:$8 sps:$4 sm:$0xff]   ;;  %s161_s24 = sand.u32 1, %s1644_s13  }
  0x1c   : > { %1054 = vmatpush1.bf16.msra.mxu0 %v1421_v15  ;;  %973 = vmatprep.subr.bf16.mxu1 %v1422_v16  ;;  %v1462_v42 = vld [vmem:[%s2173_s1 + $0xa0] ss:$8 sps:$4 sm:$0xff]   ;;  %s1860_s27 = scalar_lea.vmem %s2172_s0, %s1345_s8  ;;  %v1464_v44 = vld [vmem:[%s2173_s1 + $0xb4] ss:$8 sps:$4 sm:$0xff]   ;;  %v1468_v47 = vld [vmem:[%s2173_s1 + $0xb0] ss:$8 sps:$4 sm:$0xff]  }
  0x1d   : > { %1055 = vmatprep.subr.bf16.mxu0 %v1424_v17  ;;  %v1463_v43 = vld [vmem:[%s2173_s1 + $0x2a0] ss:$8 sps:$4 sm:$0xff]   ;;  %v1466_v45 = vld [vmem:[%s2173_s1 + $0x2b4] ss:$8 sps:$4 sm:$0xff]   ;;  %v1469_v49 = vld [vmem:[%s2173_s1 + $0x2b0] ss:$8 sps:$4 sm:$0xff]  }
  0x1e   : > { %v170_v46 = vld [vmem:[%s1860_s27 + $0x8] sm:$0xff]  ;;  %v1476_v56 = vld [vmem:[%s2173_s1 + $0xd4] ss:$8 sps:$4 sm:$0xff]   ;;  %v1480_v58 = vld [vmem:[%s2173_s1 + $0xd0] ss:$8 sps:$4 sm:$0xff]   ;;  %s1209_s28 = sshll.u32 %s161_s24, 4 }
  0x1f   : > { %974 = vmatpush1.bf16.msra.mxu1 %v1426_v18  ;;  %v178_v48 = vpack.c.bf16 %v170_v46, %v170_v46  ;;  %v174_v50 = vld [vmem:[%s1860_s27 + $0x28] sm:$0xff]  ;;  %v1478_v57 = vld [vmem:[%s2173_s1 + $0x2d4] ss:$8 sps:$4 sm:$0xff]   ;;  %v1481_v59 = vld [vmem:[%s2173_s1 + $0x2d0] ss:$8 sps:$4 sm:$0xff]   ;;  %s163_s29 = scalar_lea.vmem [#allocation2], %s1209_s28 }
  0x20   : > { %1056 = vmatpush1.bf16.msra.mxu0 %v1427_v19  ;;  %975 = vmatprep.subr.bf16.mxu1 %v1428_v20  ;;  %v1470_v51 = vld [vmem:[%s2173_s1 + $0xc4] ss:$8 sps:$4 sm:$0xff]   ;;  %v182_v53 = vpack.c.bf16 %v174_v50, %v174_v50  ;;  %v1474_v54 = vld [vmem:[%s2173_s1 + $0xc0] ss:$8 sps:$4 sm:$0xff]   ;;  %v1488_v0 = vld [vmem:[%s2173_s1 + $0xf4] ss:$8 sps:$4 sm:$0xff]  }
  0x21   : > { %1057 = vmatprep.subr.bf16.mxu0 %v1430_v21  ;;  %v1472_v52 = vld [vmem:[%s2173_s1 + $0x2c4] ss:$8 sps:$4 sm:$0xff]   ;;  %997 = vmatprep.mubr.bf16.mxu1 %v178_v48  ;;  %v1475_v55 = vld [vmem:[%s2173_s1 + $0x2c0] ss:$8 sps:$4 sm:$0xff]   ;;  %v1490_v1 = vld [vmem:[%s2173_s1 + $0x2f4] ss:$8 sps:$4 sm:$0xff]  }
  0x22   : > { %1079 = vmatprep.mubr.bf16.mxu0 %v182_v53  ;;  %v1482_v60 = vld [vmem:[%s2173_s1 + $0xe4] ss:$8 sps:$4 sm:$0xff]   ;;  %v1486_v62 = vld [vmem:[%s2173_s1 + $0xe0] ss:$8 sps:$4 sm:$0xff]   ;;  %v1492_v2 = vld [vmem:[%s2173_s1 + $0xf0] ss:$8 sps:$4 sm:$0xff]  }
  0x23   : > { %976 = vmatpush1.bf16.msra.mxu1 %v1432_v22  ;;  %v1484_v61 = vld [vmem:[%s2173_s1 + $0x2e4] ss:$8 sps:$4 sm:$0xff]   ;;  %v1487_v63 = vld [vmem:[%s2173_s1 + $0x2e0] ss:$8 sps:$4 sm:$0xff]   ;;  %v1493_v3 = vld [vmem:[%s2173_s1 + $0x2f0] ss:$8 sps:$4 sm:$0xff]  }
  0x24   : > { %1058 = vmatpush1.bf16.msra.mxu0 %v1433_v23  ;;  %977 = vmatprep.subr.bf16.mxu1 %v1434_v24  ;;  %v1496_v4 = vld [vmem:[%s2173_s1 + $0x104] ss:$8 sps:$4 sm:$0xff]   ;;  %v1494_v8 = vld [vmem:[%s2173_s1 + $0x100] ss:$8 sps:$4 sm:$0xff]   ;;  %v1502_v12 = vld [vmem:[%s2173_s1 + $0x114] ss:$8 sps:$4 sm:$0xff]  }
  0x25   : > { %1059 = vmatprep.subr.bf16.mxu0 %v1436_v25  ;;  %v169_v5 = vld [vmem:[%s1860_s27] sm:$0xff]  ;;  %v1505_v13 = vld [vmem:[%s2173_s1 + $0x314] ss:$8 sps:$4 sm:$0xff]   ;;  %v1500_v14 = vld [vmem:[%s2173_s1 + $0x110] ss:$8 sps:$4 sm:$0xff]   ;;  %s1146_s30 = sshll.u32 %s163_s29, 4  ;;  %s2132_s30 = int_to_ptr.vmem [resolvable:$true] %s1146_s30 }
  0x26   : > { %v173_v6 = vld [vmem:[%s1860_s27 + $0x20] sm:$0xff]  ;;  %v177_v10 = vpack.c.bf16 %v169_v5, %v169_v5  ;;  %v1503_v15 = vld [vmem:[%s2173_s1 + $0x310] ss:$8 sps:$4 sm:$0xff]   ;;  %v1514_v20 = vld [vmem:[%s2173_s1 + $0x134] ss:$8 sps:$4 sm:$0xff]   ;;  %s1590_s7 = scalar_lea.vmem %s2132_s30, 256 }
  0x27   : > { %978 = vmatpush1.bf16.msra.mxu1 %v1438_v26  ;;  %v1499_v7 = vld [vmem:[%s2173_s1 + $0x304] ss:$8 sps:$4 sm:$0xff]   ;;  %v1497_v9 = vld [vmem:[%s2173_s1 + $0x300] ss:$8 sps:$4 sm:$0xff]   ;;  %v181_v11 = vpack.c.bf16 %v173_v6, %v173_v6  ;;  %v1517_v21 = vld [vmem:[%s2173_s1 + $0x334] ss:$8 sps:$4 sm:$0xff]   ;;  %p1591_p11 = scmp.ne.s32.totalorder %s2132_s30, %s1590_s7 }
  0x28   : > { %1060 = vmatpush1.bf16.msra.mxu0 %v1439_v27  ;;  %979 = vmatprep.subr.bf16.mxu1 %v1440_v28  ;;  %v1508_v16 = vld [vmem:[%s2173_s1 + $0x124] ss:$8 sps:$4 sm:$0xff]   ;;  %v1506_v18 = vld [vmem:[%s2173_s1 + $0x120] ss:$8 sps:$4 sm:$0xff]   ;;  %v1512_v22 = vld [vmem:[%s2173_s1 + $0x130] ss:$8 sps:$4 sm:$0xff]  }
  0x29   : > { %1061 = vmatprep.subr.bf16.mxu0 %v1442_v29  ;;  %v1511_v17 = vld [vmem:[%s2173_s1 + $0x324] ss:$8 sps:$4 sm:$0xff]   ;;  %v1509_v19 = vld [vmem:[%s2173_s1 + $0x320] ss:$8 sps:$4 sm:$0xff]   ;;  %v1515_v23 = vld [vmem:[%s2173_s1 + $0x330] ss:$8 sps:$4 sm:$0xff]   ;;  %p1592_p12 = pnand %p1591_p11, %p1713_p5 }
  0x2a   : > { %v1520_v24 = vld [vmem:[%s2173_s1 + $0x144] ss:$8 sps:$4 sm:$0xff]   ;;  %v1518_v26 = vld [vmem:[%s2173_s1 + $0x140] ss:$8 sps:$4 sm:$0xff]   ;;  %v1526_v28 = vld [vmem:[%s2173_s1 + $0x154] ss:$8 sps:$4 sm:$0xff]  }
  0x2b   : > { %980 = vmatpush1.bf16.msra.mxu1 %v1444_v30  ;;  %v1523_v25 = vld [vmem:[%s2173_s1 + $0x344] ss:$8 sps:$4 sm:$0xff]   ;;  %v1521_v27 = vld [vmem:[%s2173_s1 + $0x340] ss:$8 sps:$4 sm:$0xff]   ;;  %v1529_v29 = vld [vmem:[%s2173_s1 + $0x354] ss:$8 sps:$4 sm:$0xff]   ;;  %p1593_p13 = pneg %p1592_p12 }
  0x2c   : > { %1062 = vmatpush1.bf16.msra.mxu0 %v1445_v31  ;;  %981 = vmatprep.subr.bf16.mxu1 %v1446_v32  ;;  %v1524_v30 = vld [vmem:[%s2173_s1 + $0x150] ss:$8 sps:$4 sm:$0xff]   ;;  %v1532_v32 = vld [vmem:[%s2173_s1 + $0x164] ss:$8 sps:$4 sm:$0xff]   ;;  %v1542_v46 = vld [vmem:[%s2173_s1 + $0x180] ss:$8 sps:$4 sm:$0xff]  }
  0x2d   : > { %1063 = vmatprep.subr.bf16.mxu0 %v1448_v33  ;;  %v1527_v31 = vld [vmem:[%s2173_s1 + $0x350] ss:$8 sps:$4 sm:$0xff]   ;;  %v1535_v33 = vld [vmem:[%s2173_s1 + $0x364] ss:$8 sps:$4 sm:$0xff]   ;;  %v1550_v48 = vld [vmem:[%s2173_s1 + $0x194] ss:$8 sps:$4 sm:$0xff]  }
  0x2e   : > { %v1548_v50 = vld [vmem:[%s2173_s1 + $0x190] ss:$8 sps:$4 sm:$0xff]   ;;  %v1559_v53 = vld [vmem:[%s2173_s1 + $0x3a4] ss:$8 sps:$4 sm:$0xff]   ;;  %v1578_v6 = vld [vmem:[%s2173_s1 + $0x1e0] ss:$8 sps:$4 sm:$0xff]  }
  0x2f   : > { %982 = vmatpush1.bf16.msra.mxu1 %v1450_v34  ;;  %v172_v34 = vld [vmem:[%s1860_s27 + $0x18] sm:$0xff]  ;;  %v1583_v5 = vld [vmem:[%s2173_s1 + $0x3e4] ss:$8 sps:$4 sm:$0xff]   ;;  %s1654_s8 = smov [#allocation2]  }
  0x30   : > { %1064 = vmatpush1.bf16.msra.mxu0 %v1451_v35  ;;  %983 = vmatprep.subr.bf16.mxu1 %v1452_v36  ;;  %v180_v35 = vpack.c.bf16 %v172_v34, %v172_v34  ;;  %v176_v36 = vld [vmem:[%s1860_s27 + $0x38] sm:$0xff]  ;;  %s1594_s9 = sshll.u32 %s1654_s8, 4  ;;  %s1595_s9 = int_to_ptr.vmem [resolvable:$false] %s1594_s9 }
  0x31   : > { %1065 = vmatprep.subr.bf16.mxu0 %v1454_v37  ;;  %v1530_v37 = vld [vmem:[%s2173_s1 + $0x160] ss:$8 sps:$4 sm:$0xff]   ;;  %s1596_s10 = scalar_lea.vmem %s1595_s9, 512  ;;  %p1597_p0 = scmp.lt.s32.totalorder %s2132_s30, %s1595_s9 }
  0x32   : > { %p1598_p1 = scmp.lt.s32.totalorder %s1596_s10, %s1590_s7 }
  0x33   : > { %984 = vmatpush1.bf16.msra.mxu1 %v1456_v38  ;;  %v1533_v38 = vld [vmem:[%s2173_s1 + $0x360] ss:$8 sps:$4 sm:$0xff]  }
  0x34   : > { %1066 = vmatpush1.bf16.msra.mxu0 %v1457_v39  ;;  %985 = vmatprep.subr.bf16.mxu1 %v1458_v40  ;;  %v184_v39 = vpack.c.bf16 %v176_v36, %v176_v36  ;;  %v1538_v40 = vld [vmem:[%s2173_s1 + $0x174] ss:$8 sps:$4 sm:$0xff]   ;;  %p1599_p2 = por %p1598_p1, %p1597_p0 }
  0x35   : > { %1067 = vmatprep.subr.bf16.mxu0 %v1460_v41  ;;  %v1541_v41 = vld [vmem:[%s2173_s1 + $0x374] ss:$8 sps:$4 sm:$0xff]  }
  0x36   : > { %p1600_p3 = pnand %p1599_p2, %p1593_p13 }
  0x37   : > { %986 = vmatpush1.bf16.msra.mxu1 %v1462_v42  ;;  %v1536_v42 = vld [vmem:[%s2173_s1 + $0x170] ss:$8 sps:$4 sm:$0xff]  }
  0x38   : > { %1068 = vmatpush1.bf16.msra.mxu0 %v1463_v43  ;;  %987 = vmatprep.subr.bf16.mxu1 %v1464_v44  ;;  %v1539_v43 = vld [vmem:[%s2173_s1 + $0x370] ss:$8 sps:$4 sm:$0xff]   ;;  %v1544_v44 = vld [vmem:[%s2173_s1 + $0x184] ss:$8 sps:$4 sm:$0xff]  }
  0x39   : > { %1069 = vmatprep.subr.bf16.mxu0 %v1466_v45  ;;  %v1547_v45 = vld [vmem:[%s2173_s1 + $0x384] ss:$8 sps:$4 sm:$0xff]  }
  0x3b   : > { %988 = vmatpush1.bf16.msra.mxu1 %v1468_v47  ;;  %v1545_v47 = vld [vmem:[%s2173_s1 + $0x380] ss:$8 sps:$4 sm:$0xff]  }
  0x3c   : > { %1070 = vmatpush1.bf16.msra.mxu0 %v1469_v49  ;;  %989 = vmatprep.subr.bf16.mxu1 %v1470_v51  ;;  %v1553_v49 = vld [vmem:[%s2173_s1 + $0x394] ss:$8 sps:$4 sm:$0xff]   ;;  %v1551_v51 = vld [vmem:[%s2173_s1 + $0x390] ss:$8 sps:$4 sm:$0xff]  }
  0x3d   : > { %1071 = vmatprep.subr.bf16.mxu0 %v1472_v52  ;;  %v1556_v52 = vld [vmem:[%s2173_s1 + $0x1a4] ss:$8 sps:$4 sm:$0xff]  }
  0x3f   : > { %990 = vmatpush1.bf16.msra.mxu1 %v1474_v54  ;;  %v1554_v54 = vld [vmem:[%s2173_s1 + $0x1a0] ss:$8 sps:$4 sm:$0xff]  }
  0x40   : > { %1072 = vmatpush1.bf16.msra.mxu0 %v1475_v55  ;;  %991 = vmatprep.subr.bf16.mxu1 %v1476_v56  ;;  %v1557_v55 = vld [vmem:[%s2173_s1 + $0x3a0] ss:$8 sps:$4 sm:$0xff]   ;;  %v1562_v56 = vld [vmem:[%s2173_s1 + $0x1b4] ss:$8 sps:$4 sm:$0xff]  }
  0x41   : > { %1073 = vmatprep.subr.bf16.mxu0 %v1478_v57  ;;  %v1565_v57 = vld [vmem:[%s2173_s1 + $0x3b4] ss:$8 sps:$4 sm:$0xff]  }
  0x43   : > { %992 = vmatpush1.bf16.msra.mxu1 %v1480_v58  ;;  %v1560_v58 = vld [vmem:[%s2173_s1 + $0x1b0] ss:$8 sps:$4 sm:$0xff]  }
  0x44   : > { %1074 = vmatpush1.bf16.msra.mxu0 %v1481_v59  ;;  %993 = vmatprep.subr.bf16.mxu1 %v1482_v60  ;;  %v1563_v59 = vld [vmem:[%s2173_s1 + $0x3b0] ss:$8 sps:$4 sm:$0xff]   ;;  %v1568_v60 = vld [vmem:[%s2173_s1 + $0x1c4] ss:$8 sps:$4 sm:$0xff]  }
  0x45   : > { %1075 = vmatprep.subr.bf16.mxu0 %v1484_v61  ;;  %v1571_v61 = vld [vmem:[%s2173_s1 + $0x3c4] ss:$8 sps:$4 sm:$0xff]  }
  0x47   : > { %994 = vmatpush1.bf16.msra.mxu1 %v1486_v62  ;;  %v1566_v62 = vld [vmem:[%s2173_s1 + $0x1c0] ss:$8 sps:$4 sm:$0xff]  }
  0x48   : > { %1076 = vmatpush1.bf16.msra.mxu0 %v1487_v63  ;;  %995 = vmatprep.subr.bf16.mxu1 %v1488_v0  ;;  %v1569_v63 = vld [vmem:[%s2173_s1 + $0x3c0] ss:$8 sps:$4 sm:$0xff]   ;;  %v1574_v0 = vld [vmem:[%s2173_s1 + $0x1d4] ss:$8 sps:$4 sm:$0xff]  }
  0x49   : > { %1077 = vmatprep.subr.bf16.mxu0 %v1490_v1  ;;  %v1577_v1 = vld [vmem:[%s2173_s1 + $0x3d4] ss:$8 sps:$4 sm:$0xff]  }
  0x4b   : > { %996 = vmatpush1.bf16.msra.mxu1 %v1492_v2  ;;  %v1572_v2 = vld [vmem:[%s2173_s1 + $0x1d0] ss:$8 sps:$4 sm:$0xff]  }
  0x4c   : > { %1078 = vmatpush1.bf16.msra.mxu0 %v1493_v3  ;;  %1006 = vmatprep.subr.bf16.mxu1 %v1496_v4  ;;  %v1575_v3 = vld [vmem:[%s2173_s1 + $0x3d0] ss:$8 sps:$4 sm:$0xff]   ;;  %v1580_v4 = vld [vmem:[%s2173_s1 + $0x1e4] ss:$8 sps:$4 sm:$0xff]  }
  0x4d   : > { %1088 = vmatprep.subr.bf16.mxu0 %v1499_v7  ;;  %v1581_v7 = vld [vmem:[%s2173_s1 + $0x3e0] ss:$8 sps:$4 sm:$0xff]  }
  0x4e   : > { %998 = vmatmul.mubr.bf16.vlgmr.msra.gmra.mrb[0].mxu1 %v177_v10  ;;  %v1584_v10 = vld [vmem:[%s2173_s1 + $0x1f0] ss:$8 sps:$4 sm:$0xff]  }
  0x4f   : > { %1080 = vmatmul.mubr.bf16.vlgmr.msra.gmra.mrb[0].mxu0 %v181_v11  ;;  %1007 = vmatpush1.bf16.msra.mxu1 %v1494_v8  ;;  %v1586_v8 = vld [vmem:[%s2173_s1 + $0x1f4] ss:$8 sps:$4 sm:$0xff]   ;;  %v1587_v11 = vld [vmem:[%s2173_s1 + $0x3f0] ss:$8 sps:$4 sm:$0xff]  }
  0x50   : > { %1089 = vmatpush1.bf16.msra.mxu0 %v1497_v9  ;;  %1008 = vmatprep.subr.bf16.mxu1 %v1502_v12  ;;  %v1589_v9 = vld [vmem:[%s2173_s1 + $0x3f4] ss:$8 sps:$4 sm:$0xff]  }
  0x51   : > { %1090 = vmatprep.subr.bf16.mxu0 %v1505_v13  ;;  %1038 = vmatprep.mubr.bf16.mxu1 %v180_v35  ;;  %v171_v12 = vld [vmem:[%s1860_s27 + $0x10] sm:$0xff] }
  0x52   : > { %1120 = vmatprep.mubr.bf16.mxu0 %v184_v39  ;;  %v175_v13 = vld [vmem:[%s1860_s27 + $0x30] sm:$0xff]  ;;  %s1346_s27 = sshll.u32 %s1696_s16, 8  ;;  %s1132_s16 = scalar_lea.sflag [#allocation3], %s161_s24 }
  0x53   : > { %1009 = vmatpush1.bf16.msra.mxu1 %v1500_v14  ;;  %v179_v14 = vpack.c.bf16 %v171_v12, %v171_v12  ;;  %s2130_s6 = scalar_lea.hbm %s2175_s3, %s1346_s27 }
  0x54   : > { %1091 = vmatpush1.bf16.msra.mxu0 %v1503_v15  ;;  %1010 = vmatprep.subr.bf16.mxu1 %v1508_v16  ;;  %v183_v15 = vpack.c.bf16 %v175_v13, %v175_v13  ;;  %v315_v16 = vlaneseq }
  0x55   : > { %1092 = vmatprep.subr.bf16.mxu0 %v1511_v17 }
  0x56   : > { %v316_v17 = vshrl.u32 %v315_v16, 7 }
  0x57   : > { %1011 = vmatpush1.bf16.msra.mxu1 %v1506_v18 }
  0x58   : > { %1093 = vmatpush1.bf16.msra.mxu0 %v1509_v19  ;;  %1012 = vmatprep.subr.bf16.mxu1 %v1514_v20  ;;  %v317_v18 = vsub.s32 0, %v316_v17  ;;  %v313_v19 = vld [vmem:[%s2174_s2] sm:$0x3]  ;;  %v321_v20 = vsub.s32 1, %v316_v17 }
  0x59   : > { %1094 = vmatprep.subr.bf16.mxu0 %v1517_v21 }
  0x5a   : > { %v318_v21 = vrot.slane %v313_v19, %v317_v18 }
  0x5b   : > { %1013 = vmatpush1.bf16.msra.mxu1 %v1512_v22  ;;  %v322_v22 = vrot.slane %v313_v19, %v321_v20 }
  0x5c   : > { %1095 = vmatpush1.bf16.msra.mxu0 %v1515_v23  ;;  %1014 = vmatprep.subr.bf16.mxu1 %v1520_v24 }
  0x5d   : > { %1096 = vmatprep.subr.bf16.mxu0 %v1523_v25 }
  0x5f   : > { %1015 = vmatpush1.bf16.msra.mxu1 %v1518_v26 }
  0x60   : > { %1097 = vmatpush1.bf16.msra.mxu0 %v1521_v27  ;;  %1016 = vmatprep.subr.bf16.mxu1 %v1526_v28 }
  0x61   : > { %1098 = vmatprep.subr.bf16.mxu0 %v1529_v29 }
  0x63   : > { %1017 = vmatpush1.bf16.msra.mxu1 %v1524_v30 }
  0x64   : > { %1099 = vmatpush1.bf16.msra.mxu0 %v1527_v31  ;;  %1018 = vmatprep.subr.bf16.mxu1 %v1532_v32 }
  0x65   : > { %1100 = vmatprep.subr.bf16.mxu0 %v1535_v33 }
  0x67   : > { %1019 = vmatpush1.bf16.msra.mxu1 %v1530_v37 }
  0x68   : > { %1101 = vmatpush1.bf16.msra.mxu0 %v1533_v38  ;;  %1020 = vmatprep.subr.bf16.mxu1 %v1538_v40 }
  0x69   : > { %1102 = vmatprep.subr.bf16.mxu0 %v1541_v41 }
  0x6b   : > { %1021 = vmatpush1.bf16.msra.mxu1 %v1536_v42 }
  0x6c   : > { %1103 = vmatpush1.bf16.msra.mxu0 %v1539_v43  ;;  %1022 = vmatprep.subr.bf16.mxu1 %v1544_v44 }
  0x6d   : > { %1104 = vmatprep.subr.bf16.mxu0 %v1547_v45 }
  0x6f   : > { %1023 = vmatpush1.bf16.msra.mxu1 %v1542_v46 }
  0x70   : > { %1105 = vmatpush1.bf16.msra.mxu0 %v1545_v47  ;;  %1024 = vmatprep.subr.bf16.mxu1 %v1550_v48 }
  0x71   : > { %1106 = vmatprep.subr.bf16.mxu0 %v1553_v49 }
  0x73   : > { %1025 = vmatpush1.bf16.msra.mxu1 %v1548_v50 }
  0x74   : > { %1107 = vmatpush1.bf16.msra.mxu0 %v1551_v51  ;;  %1026 = vmatprep.subr.bf16.mxu1 %v1556_v52 }
  0x75   : > { %1108 = vmatprep.subr.bf16.mxu0 %v1559_v53 }
  0x77   : > { %1027 = vmatpush1.bf16.msra.mxu1 %v1554_v54 }
  0x78   : > { %1109 = vmatpush1.bf16.msra.mxu0 %v1557_v55  ;;  %1028 = vmatprep.subr.bf16.mxu1 %v1562_v56 }
  0x79   : > { %1110 = vmatprep.subr.bf16.mxu0 %v1565_v57 }
  0x7b   : > { %1029 = vmatpush1.bf16.msra.mxu1 %v1560_v58 }
  0x7c   : > { %1111 = vmatpush1.bf16.msra.mxu0 %v1563_v59  ;;  %1030 = vmatprep.subr.bf16.mxu1 %v1568_v60 }
  0x7d   : > { %1112 = vmatprep.subr.bf16.mxu0 %v1571_v61 }
  0x7f   : > { %1031 = vmatpush1.bf16.msra.mxu1 %v1566_v62 }
  0x80   : > { %1113 = vmatpush1.bf16.msra.mxu0 %v1569_v63  ;;  %1032 = vmatprep.subr.bf16.mxu1 %v1574_v0 }
  0x81   : > { %1114 = vmatprep.subr.bf16.mxu0 %v1577_v1 }
  0x83   : > { %1033 = vmatpush1.bf16.msra.mxu1 %v1572_v2 }
  0x84   : > { %1115 = vmatpush1.bf16.msra.mxu0 %v1575_v3  ;;  %1034 = vmatprep.subr.bf16.mxu1 %v1580_v4 }
  0x85   : > { %1116 = vmatprep.subr.bf16.mxu0 %v1583_v5 }
  0x87   : > { %1035 = vmatpush1.bf16.msra.mxu1 %v1578_v6 }
  0x88   : > { %1117 = vmatpush1.bf16.msra.mxu0 %v1581_v7  ;;  %1036 = vmatprep.subr.bf16.mxu1 %v1586_v8 }
  0x89   : > { %1118 = vmatprep.subr.bf16.mxu0 %v1589_v9 }
  0x8b   : > { %1037 = vmatpush1.bf16.msra.mxu1 %v1584_v10 }
  0x8c   : > { %1119 = vmatpush1.bf16.msra.mxu0 %v1587_v11 }
  0x8e   : > { %1039 = vmatmul.mubr.bf16.vlgmr.msra.gmra.mrb[0].mxu1 %v179_v14 }
  0x8f   : > { %1121 = vmatmul.mubr.bf16.vlgmr.msra.gmra.mrb[0].mxu0 %v183_v15 }
 0x161   : > { %v1040_v23 = vpop.f32.mrb[0].mxu1 }
 0x162   : > { %v1122_v24 = vpop.f32.mrb[0].mxu0  ;;  %v1347_v25 = vadd.f32 %v1040_v23, %v318_v21  ;;  %v1042_v26 = vpop.f32.mrb[1].mxu1 }
 0x163   : > { %v1124_v27 = vpop.f32.mrb[1].mxu0  ;;  %v1349_v28 = vadd.f32 %v1042_v26, %v322_v22  ;;  %v1044_v29 = vpop.f32.mrb[2].mxu1 }
 0x164   : > { %v1126_v30 = vpop.f32.mrb[2].mxu0  ;;  %v1348_v31 = vadd.f32 %v1347_v25, %v1122_v24  ;;  %v1045_v32 = vpop.f32.mrb[3].mxu1 }
 0x165   : > { %v1127_v33 = vpop.f32.mrb[3].mxu0  ;;  %v1350_v34 = vadd.f32 %v1349_v28, %v1124_v27 }
 0x166   : > { %1129 = vst [vmem:[%s163_s29] sm:$0xff] %v1348_v31 }
 0x167   : > { %1130 = vst [vmem:[%s163_s29 + $0x8] sm:$0xff] %v1350_v34 }
 0x168   : > { %1603 = shalt.err (!%p1600_p3)
}
 0x169   : > { %s1604_s11 = scalar_lea.hbm %s2130_s6, 256  ;;  %s1608_s20 = scalar_lea.hbm %s2175_s3, 2048 }
 0x16a   : > { %p1605_p4 = scmp.ne.s32.totalorder %s2130_s6, %s1604_s11  ;;  %p1609_p9 = scmp.lt.u32.totalorder %s2130_s6, %s2175_s3 }
 0x16b   : > { %p1610_p10 = scmp.lt.u32.totalorder %s1608_s20, %s1604_s11  ;;  %p1612_p12 = scmp.lt.u32.totalorder %s1604_s11, %s2130_s6 }
 0x16c   : > { %p1606_p7 = pnand %p1605_p4, %p1713_p5 }
 0x16d   : > { %p1611_p11 = por %p1610_p10, %p1609_p9 }
 0x16e   : > { %p1607_p8 = pneg %p1606_p7 }
 0x16f   : > { %p1613_p13 = por %p1612_p12, %p1611_p11 }
 0x171   : > { %p1614_p0 = pnand %p1613_p13, %p1607_p8 }
 0x173   : > { %1617 = shalt.err (!%p1614_p0)
}
 0x174   : > { %1359 = dma.vmem_to_hbm [thread:$0]  (%p1713_p5), %s2132_s30, 256, %s2130_s6, %s1132_s16  }
 0x175 PF: > { %p1365_p1 = scmp.ge.s32.totalorder %s1652_s15, 2  ;;  %s1158_s26 = sand.u32 1, %s1640_s12  }
 0x176   : > { %s1159_s28 = scalar_lea.sflag [#allocation3], %s1158_s26 }
 0x177   : > { %p1362_p2 = pnand %p1365_p1, %p1717_p6 }
 0x179   : > { %1635 = dma.done.wait (!%p1362_p2), %s1159_s28, 256  }
 0x17a   : > { %1637 = vsyncadd (!%p1362_p2), %s1159_s28, 4294967040  ;;  %p13_p3 = scmp.ge.s32.totalorder %s1700_s18, 10   ;;  %s2178_s12 = smov %s1644_s13 }
 0x17b   : > { %s2179_s13 = smov %s1648_s14  ;;  %s2180_s14 = smov %s1711_s21 }
 0x17c   : > { %s2181_s15 = smov %s1700_s18  ;;  %15 = sbr.rel (!%p13_p3) target bundleno = 3 (0x3), region = 67 }
 0x183   :  { %1164 = vsyncpa [#allocation3], 1 }
 0x184   :  { %1166 = vsyncpa [#allocation3 + $0x1], 1 }

// kernel: wordvec_block.4
= control target key start
LH: loop header
LB: loop body
LE: loop exit
PB: predicated region body
PF: predicated region fallthrough
CT: control target
= control target key end

     0   :  { %s4608_s12 = smov 0   ;;  %s6265_s0 = inlined_call_operand.vmem [shape: f32[8,8,1024], index: 0, kind: input, shape index: {}]   ;;  %s6266_s1 = inlined_call_operand.vmem [shape: f32[1,8,1024], index: 1, kind: input, shape index: {}]   ;;  %s6267_s2 = inlined_call_operand.vmem [shape: bf16[1024,1024], index: 2, kind: input, shape index: {}]   ;;  %s6268_s3 = inlined_call_operand.vmem [shape: f32[8,8,1024], index: 3, kind: output, shape index: {}]  }
   0x1 LB: > { %s4030_s13 = sadd.s32 4294967295, %s4586_s12   ;;  %p4034_p0 = scmp.ge.s32.totalorder %s4586_s12, 1  ;;  %s4586_s12 = sphi %s4608_s12, %s13_s12  }
   0x2   : > { %p137_p1 = scmp.lt.s32.totalorder %s4586_s12, 9 }
   0x4   : > { %p138_p2 = pnand %p4034_p0, %p137_p1 }
   0x5   : > { %p161_p3 = scmp.lt.s32.totalorder (!%p138_p2), %s4030_s13, 7  ;;  %p4039_p4 = scmp.ne.s32.totalorder (!%p138_p2), %s4030_s13, 0 }
   0x6   : > { %141 = sbr.rel (%p138_p2) target bundleno = 771 (0x303), region = 32 }
   0xd   : > { %s162_s14 = scalar_select %p161_p3, %s4030_s13, 7 }
   0xe   : > { %174 = sbr.rel (%p4039_p4) target bundleno = 21 (0x15), region = 36  ;;  %v175_v0 = vld [vmem:[%s6266_s1] sm:$0xff] (!%p4039_p4)  ;;  %v176_v1 = vld [vmem:[%s6266_s1 + $0x8] sm:$0xff] (!%p4039_p4)  ;;  %v177_v2 = vld [vmem:[%s6266_s1 + $0x10] sm:$0xff] (!%p4039_p4) }
   0xf   : > { %s4554_s15 = sshll.u32 %s162_s14, 6  ;;  %183 = vst [vmem:[#allocation2] sm:$0xff] (!%p4039_p4), %v175_v0  ;;  %184 = vst [vmem:[#allocation2 + $0x8] sm:$0xff] (!%p4039_p4), %v176_v1  ;;  %v178_v3 = vld [vmem:[%s6266_s1 + $0x18] sm:$0xff] (!%p4039_p4)  ;;  %v179_v4 = vld [vmem:[%s6266_s1 + $0x20] sm:$0xff] (!%p4039_p4) }
  0x10   : > { %s4619_s18 = scalar_lea.vmem %s6265_s0, %s4554_s15  ;;  %s4624_s21 = scalar_lea.vmem %s6268_s3, %s4554_s15  ;;  %185 = vst [vmem:[#allocation2 + $0x10] sm:$0xff] (!%p4039_p4), %v177_v2  ;;  %v180_v5 = vld [vmem:[%s6266_s1 + $0x28] sm:$0xff] (!%p4039_p4)  ;;  %186 = vst [vmem:[#allocation2 + $0x18] sm:$0xff] (!%p4039_p4), %v178_v3  ;;  %v181_v6 = vld [vmem:[%s6266_s1 + $0x30] sm:$0xff] (!%p4039_p4) }
  0x11   : > { %187 = vst [vmem:[#allocation2 + $0x20] sm:$0xff] (!%p4039_p4), %v179_v4  ;;  %188 = vst [vmem:[#allocation2 + $0x28] sm:$0xff] (!%p4039_p4), %v180_v5  ;;  %v182_v7 = vld [vmem:[%s6266_s1 + $0x38] sm:$0xff] (!%p4039_p4) }
  0x12   : > { %189 = vst [vmem:[#allocation2 + $0x30] sm:$0xff] (!%p4039_p4), %v181_v6  ;;  %190 = vst [vmem:[#allocation2 + $0x38] sm:$0xff] (!%p4039_p4), %v182_v7 }
  0x15 PF: > { %v215_v8 = vld [vmem:[%s6267_s2] sm:$0xff] }
  0x16   : > { %v219_v9 = vld [vmem:[%s6267_s2 + $0x20] sm:$0xff]  ;;  %v192_v61 = vld [vmem:[#allocation2 + $0x8] sm:$0xff] }
  0x17   : > { %v343_v10 = vld [vmem:[%s6267_s2 + $0x400] sm:$0xff]  ;;  %v4041_v11 = vcombine.high %v215_v8, %v219_v9  ;;  %v4040_v13 = vcombine.low %v215_v8, %v219_v9  ;;  %v194_v62 = vld [vmem:[#allocation2 + $0x18] sm:$0xff]  ;;  %v4740_v2 = vpack.c.bf16 %v192_v61, %v192_v61 }
  0x18   : > { %v347_v12 = vld [vmem:[%s6267_s2 + $0x420] sm:$0xff]  ;;  %v4742_v3 = vpack.c.bf16 %v194_v62, %v194_v62 }
  0x19   : > { %v223_v14 = vld [vmem:[%s6267_s2 + $0x40] sm:$0xff]  ;;  %v4169_v16 = vcombine.high %v343_v10, %v347_v12  ;;  %v4168_v17 = vcombine.low %v343_v10, %v347_v12  ;;  %3287 = vmatprep.subr.bf16.mxu0 %v4041_v11  ;;  %3319 = vmatprep.mubr.bf16.mxu0 %v4740_v2 }
  0x1a   : > { %v227_v15 = vld [vmem:[%s6267_s2 + $0x60] sm:$0xff]  ;;  %3288 = vmatpush1.bf16.msra.mxu0 %v4040_v13  ;;  %3360 = vmatprep.mubr.bf16.mxu1 %v4742_v3 }
  0x1b   : > { %v4049_v18 = vcombine.high %v223_v14, %v227_v15  ;;  %v351_v19 = vld [vmem:[%s6267_s2 + $0x440] sm:$0xff]  ;;  %3328 = vmatprep.subr.bf16.mxu1 %v4169_v16  ;;  %v4048_v26 = vcombine.low %v223_v14, %v227_v15 }
  0x1c   : > { %v355_v20 = vld [vmem:[%s6267_s2 + $0x460] sm:$0xff]  ;;  %3329 = vmatpush1.bf16.msra.mxu1 %v4168_v17 }
  0x1d   : > { %v231_v21 = vld [vmem:[%s6267_s2 + $0x80] sm:$0xff]  ;;  %v4177_v22 = vcombine.high %v351_v19, %v355_v20  ;;  %3289 = vmatprep.subr.bf16.mxu0 %v4049_v18  ;;  %v4176_v27 = vcombine.low %v351_v19, %v355_v20 }
  0x1e   : > { %v235_v23 = vld [vmem:[%s6267_s2 + $0xa0] sm:$0xff]  ;;  %3290 = vmatpush1.bf16.msra.mxu0 %v4048_v26 }
  0x1f   : > { %v359_v24 = vld [vmem:[%s6267_s2 + $0x480] sm:$0xff]  ;;  %v4057_v28 = vcombine.high %v231_v21, %v235_v23  ;;  %3330 = vmatprep.subr.bf16.mxu1 %v4177_v22  ;;  %v4056_v34 = vcombine.low %v231_v21, %v235_v23 }
  0x20   : > { %v363_v25 = vld [vmem:[%s6267_s2 + $0x4a0] sm:$0xff]  ;;  %3331 = vmatpush1.bf16.msra.mxu1 %v4176_v27 }
  0x21   : > { %v4185_v29 = vcombine.high %v359_v24, %v363_v25  ;;  %v239_v30 = vld [vmem:[%s6267_s2 + $0xc0] sm:$0xff]  ;;  %3291 = vmatprep.subr.bf16.mxu0 %v4057_v28  ;;  %v4184_v35 = vcombine.low %v359_v24, %v363_v25 }
  0x22   : > { %v243_v31 = vld [vmem:[%s6267_s2 + $0xe0] sm:$0xff]  ;;  %3292 = vmatpush1.bf16.msra.mxu0 %v4056_v34 }
  0x23   : > { %v367_v32 = vld [vmem:[%s6267_s2 + $0x4c0] sm:$0xff]  ;;  %v4065_v36 = vcombine.high %v239_v30, %v243_v31  ;;  %3332 = vmatprep.subr.bf16.mxu1 %v4185_v29  ;;  %v4064_v42 = vcombine.low %v239_v30, %v243_v31 }
  0x24   : > { %v371_v33 = vld [vmem:[%s6267_s2 + $0x4e0] sm:$0xff]  ;;  %3333 = vmatpush1.bf16.msra.mxu1 %v4184_v35 }
  0x25   : > { %v4193_v37 = vcombine.high %v367_v32, %v371_v33  ;;  %v247_v38 = vld [vmem:[%s6267_s2 + $0x100] sm:$0xff]  ;;  %3293 = vmatprep.subr.bf16.mxu0 %v4065_v36  ;;  %v4192_v43 = vcombine.low %v367_v32, %v371_v33 }
  0x26   : > { %v251_v39 = vld [vmem:[%s6267_s2 + $0x120] sm:$0xff]  ;;  %3294 = vmatpush1.bf16.msra.mxu0 %v4064_v42 }
  0x27   : > { %v375_v40 = vld [vmem:[%s6267_s2 + $0x500] sm:$0xff]  ;;  %v4073_v44 = vcombine.high %v247_v38, %v251_v39  ;;  %3334 = vmatprep.subr.bf16.mxu1 %v4193_v37  ;;  %v4072_v50 = vcombine.low %v247_v38, %v251_v39 }
  0x28   : > { %v379_v41 = vld [vmem:[%s6267_s2 + $0x520] sm:$0xff]  ;;  %3335 = vmatpush1.bf16.msra.mxu1 %v4192_v43 }
  0x29   : > { %v4201_v45 = vcombine.high %v375_v40, %v379_v41  ;;  %v255_v46 = vld [vmem:[%s6267_s2 + $0x140] sm:$0xff]  ;;  %3295 = vmatprep.subr.bf16.mxu0 %v4073_v44  ;;  %v4200_v51 = vcombine.low %v375_v40, %v379_v41 }
  0x2a   : > { %v259_v47 = vld [vmem:[%s6267_s2 + $0x160] sm:$0xff]  ;;  %3296 = vmatpush1.bf16.msra.mxu0 %v4072_v50 }
  0x2b   : > { %v383_v48 = vld [vmem:[%s6267_s2 + $0x540] sm:$0xff]  ;;  %v4081_v52 = vcombine.high %v255_v46, %v259_v47  ;;  %3336 = vmatprep.subr.bf16.mxu1 %v4201_v45  ;;  %v4080_v58 = vcombine.low %v255_v46, %v259_v47 }
  0x2c   : > { %v387_v49 = vld [vmem:[%s6267_s2 + $0x560] sm:$0xff]  ;;  %3337 = vmatpush1.bf16.msra.mxu1 %v4200_v51 }
  0x2d   : > { %v4209_v53 = vcombine.high %v383_v48, %v387_v49  ;;  %v263_v54 = vld [vmem:[%s6267_s2 + $0x180] sm:$0xff]  ;;  %3297 = vmatprep.subr.bf16.mxu0 %v4081_v52  ;;  %v4208_v59 = vcombine.low %v383_v48, %v387_v49 }
  0x2e   : > { %v267_v55 = vld [vmem:[%s6267_s2 + $0x1a0] sm:$0xff]  ;;  %3298 = vmatpush1.bf16.msra.mxu0 %v4080_v58 }
  0x2f   : > { %v391_v56 = vld [vmem:[%s6267_s2 + $0x580] sm:$0xff]  ;;  %v4089_v60 = vcombine.high %v263_v54, %v267_v55  ;;  %3338 = vmatprep.subr.bf16.mxu1 %v4209_v53  ;;  %v4088_v6 = vcombine.low %v263_v54, %v267_v55 }
  0x30   : > { %v395_v57 = vld [vmem:[%s6267_s2 + $0x5a0] sm:$0xff]  ;;  %3339 = vmatpush1.bf16.msra.mxu1 %v4208_v59 }
  0x31   : > { %v4217_v63 = vcombine.high %v391_v56, %v395_v57  ;;  %v271_v0 = vld [vmem:[%s6267_s2 + $0x1c0] sm:$0xff]  ;;  %3299 = vmatprep.subr.bf16.mxu0 %v4089_v60  ;;  %v4216_v7 = vcombine.low %v391_v56, %v395_v57 }
  0x32   : > { %v275_v1 = vld [vmem:[%s6267_s2 + $0x1e0] sm:$0xff]  ;;  %3300 = vmatpush1.bf16.msra.mxu0 %v4088_v6 }
  0x33   : > { %v399_v4 = vld [vmem:[%s6267_s2 + $0x5c0] sm:$0xff]  ;;  %v4097_v8 = vcombine.high %v271_v0, %v275_v1  ;;  %3340 = vmatprep.subr.bf16.mxu1 %v4217_v63  ;;  %v4096_v14 = vcombine.low %v271_v0, %v275_v1 }
  0x34   : > { %v403_v5 = vld [vmem:[%s6267_s2 + $0x5e0] sm:$0xff]  ;;  %3341 = vmatpush1.bf16.msra.mxu1 %v4216_v7 }
  0x35   : > { %v4225_v9 = vcombine.high %v399_v4, %v403_v5  ;;  %v279_v10 = vld [vmem:[%s6267_s2 + $0x200] sm:$0xff]  ;;  %3301 = vmatprep.subr.bf16.mxu0 %v4097_v8  ;;  %v4224_v15 = vcombine.low %v399_v4, %v403_v5 }
  0x36   : > { %v283_v11 = vld [vmem:[%s6267_s2 + $0x220] sm:$0xff]  ;;  %3302 = vmatpush1.bf16.msra.mxu0 %v4096_v14 }
  0x37   : > { %v407_v12 = vld [vmem:[%s6267_s2 + $0x600] sm:$0xff]  ;;  %v4105_v16 = vcombine.high %v279_v10, %v283_v11  ;;  %3342 = vmatprep.subr.bf16.mxu1 %v4225_v9  ;;  %v4104_v22 = vcombine.low %v279_v10, %v283_v11 }
  0x38   : > { %v411_v13 = vld [vmem:[%s6267_s2 + $0x620] sm:$0xff]  ;;  %3343 = vmatpush1.bf16.msra.mxu1 %v4224_v15 }
  0x39   : > { %v4233_v17 = vcombine.high %v407_v12, %v411_v13  ;;  %v287_v18 = vld [vmem:[%s6267_s2 + $0x240] sm:$0xff]  ;;  %3303 = vmatprep.subr.bf16.mxu0 %v4105_v16  ;;  %v4232_v23 = vcombine.low %v407_v12, %v411_v13 }
  0x3a   : > { %v291_v19 = vld [vmem:[%s6267_s2 + $0x260] sm:$0xff]  ;;  %3304 = vmatpush1.bf16.msra.mxu0 %v4104_v22 }
  0x3b   : > { %v415_v20 = vld [vmem:[%s6267_s2 + $0x640] sm:$0xff]  ;;  %v4113_v24 = vcombine.high %v287_v18, %v291_v19  ;;  %3344 = vmatprep.subr.bf16.mxu1 %v4233_v17  ;;  %v4112_v30 = vcombine.low %v287_v18, %v291_v19  ;;  %v193_v19 = vld [vmem:[#allocation2 + $0x10] sm:$0xff] }
  0x3c   : > { %v419_v21 = vld [vmem:[%s6267_s2 + $0x660] sm:$0xff]  ;;  %3345 = vmatpush1.bf16.msra.mxu1 %v4232_v23 }
  0x3d   : > { %v4241_v25 = vcombine.high %v415_v20, %v419_v21  ;;  %v295_v26 = vld [vmem:[%s6267_s2 + $0x280] sm:$0xff]  ;;  %3305 = vmatprep.subr.bf16.mxu0 %v4113_v24  ;;  %v4240_v31 = vcombine.low %v415_v20, %v419_v21 }
  0x3e   : > { %v299_v27 = vld [vmem:[%s6267_s2 + $0x2a0] sm:$0xff]  ;;  %3306 = vmatpush1.bf16.msra.mxu0 %v4112_v30  ;;  %v198_v30 = vld [vmem:[#allocation2 + $0x38] sm:$0xff] }
  0x3f   : > { %v423_v28 = vld [vmem:[%s6267_s2 + $0x680] sm:$0xff]  ;;  %v4121_v32 = vcombine.high %v295_v26, %v299_v27  ;;  %3346 = vmatprep.subr.bf16.mxu1 %v4241_v25  ;;  %v4120_v38 = vcombine.low %v295_v26, %v299_v27  ;;  %v196_v27 = vld [vmem:[#allocation2 + $0x28] sm:$0xff] }
  0x40   : > { %v427_v29 = vld [vmem:[%s6267_s2 + $0x6a0] sm:$0xff]  ;;  %3347 = vmatpush1.bf16.msra.mxu1 %v4240_v31 }
  0x41   : > { %v4249_v33 = vcombine.high %v423_v28, %v427_v29  ;;  %v303_v34 = vld [vmem:[%s6267_s2 + $0x2c0] sm:$0xff]  ;;  %3307 = vmatprep.subr.bf16.mxu0 %v4121_v32  ;;  %v4248_v39 = vcombine.low %v423_v28, %v427_v29  ;;  %v4874_v28 = vpack.c.bf16 %v193_v19, %v193_v19 }
  0x42   : > { %v307_v35 = vld [vmem:[%s6267_s2 + $0x2e0] sm:$0xff]  ;;  %3308 = vmatpush1.bf16.msra.mxu0 %v4120_v38 }
  0x43   : > { %v431_v36 = vld [vmem:[%s6267_s2 + $0x6c0] sm:$0xff]  ;;  %v4129_v40 = vcombine.high %v303_v34, %v307_v35  ;;  %3348 = vmatprep.subr.bf16.mxu1 %v4249_v33  ;;  %v4128_v46 = vcombine.low %v303_v34, %v307_v35 }
  0x44   : > { %v435_v37 = vld [vmem:[%s6267_s2 + $0x6e0] sm:$0xff]  ;;  %3349 = vmatpush1.bf16.msra.mxu1 %v4248_v39  ;;  %v4891_v39 = vpack.c.bf16 %v198_v30, %v198_v30 }
  0x45   : > { %v4257_v41 = vcombine.high %v431_v36, %v435_v37  ;;  %v311_v42 = vld [vmem:[%s6267_s2 + $0x300] sm:$0xff]  ;;  %3309 = vmatprep.subr.bf16.mxu0 %v4129_v40  ;;  %v4256_v47 = vcombine.low %v431_v36, %v435_v37  ;;  %v4882_v36 = vpack.c.bf16 %v196_v27, %v196_v27 }
  0x46   : > { %v315_v43 = vld [vmem:[%s6267_s2 + $0x320] sm:$0xff]  ;;  %3310 = vmatpush1.bf16.msra.mxu0 %v4128_v46 }
  0x47   : > { %v439_v44 = vld [vmem:[%s6267_s2 + $0x700] sm:$0xff]  ;;  %v4137_v48 = vcombine.high %v311_v42, %v315_v43  ;;  %3350 = vmatprep.subr.bf16.mxu1 %v4257_v41  ;;  %v4136_v54 = vcombine.low %v311_v42, %v315_v43 }
  0x48   : > { %v443_v45 = vld [vmem:[%s6267_s2 + $0x720] sm:$0xff]  ;;  %3351 = vmatpush1.bf16.msra.mxu1 %v4256_v47 }
  0x49   : > { %v4265_v49 = vcombine.high %v439_v44, %v443_v45  ;;  %v319_v50 = vld [vmem:[%s6267_s2 + $0x340] sm:$0xff]  ;;  %3311 = vmatprep.subr.bf16.mxu0 %v4137_v48  ;;  %v4264_v55 = vcombine.low %v439_v44, %v443_v45 }
  0x4a   : > { %v323_v51 = vld [vmem:[%s6267_s2 + $0x360] sm:$0xff]  ;;  %3312 = vmatpush1.bf16.msra.mxu0 %v4136_v54 }
  0x4b   : > { %v447_v52 = vld [vmem:[%s6267_s2 + $0x740] sm:$0xff]  ;;  %v4145_v56 = vcombine.high %v319_v50, %v323_v51  ;;  %3352 = vmatprep.subr.bf16.mxu1 %v4265_v49  ;;  %v4144_v62 = vcombine.low %v319_v50, %v323_v51 }
  0x4c   : > { %v451_v53 = vld [vmem:[%s6267_s2 + $0x760] sm:$0xff]  ;;  %3353 = vmatpush1.bf16.msra.mxu1 %v4264_v55 }
  0x4d   : > { %v4273_v57 = vcombine.high %v447_v52, %v451_v53  ;;  %v327_v58 = vld [vmem:[%s6267_s2 + $0x380] sm:$0xff]  ;;  %3313 = vmatprep.subr.bf16.mxu0 %v4145_v56  ;;  %v4272_v63 = vcombine.low %v447_v52, %v451_v53 }
  0x4e   : > { %v331_v59 = vld [vmem:[%s6267_s2 + $0x3a0] sm:$0xff]  ;;  %3314 = vmatpush1.bf16.msra.mxu0 %v4144_v62 }
  0x4f   : > { %v455_v60 = vld [vmem:[%s6267_s2 + $0x780] sm:$0xff]  ;;  %v4153_v0 = vcombine.high %v327_v58, %v331_v59  ;;  %3354 = vmatprep.subr.bf16.mxu1 %v4273_v57  ;;  %v4152_v8 = vcombine.low %v327_v58, %v331_v59 }
  0x50   : > { %v459_v61 = vld [vmem:[%s6267_s2 + $0x7a0] sm:$0xff]  ;;  %3355 = vmatpush1.bf16.msra.mxu1 %v4272_v63 }
  0x51   : > { %v4281_v1 = vcombine.high %v455_v60, %v459_v61  ;;  %v335_v4 = vld [vmem:[%s6267_s2 + $0x3c0] sm:$0xff]  ;;  %3315 = vmatprep.subr.bf16.mxu0 %v4153_v0  ;;  %v4280_v9 = vcombine.low %v455_v60, %v459_v61 }
  0x52   : > { %v339_v5 = vld [vmem:[%s6267_s2 + $0x3e0] sm:$0xff]  ;;  %3316 = vmatpush1.bf16.msra.mxu0 %v4152_v8 }
  0x53   : > { %v463_v6 = vld [vmem:[%s6267_s2 + $0x7c0] sm:$0xff]  ;;  %v4161_v10 = vcombine.high %v335_v4, %v339_v5  ;;  %3356 = vmatprep.subr.bf16.mxu1 %v4281_v1  ;;  %v4160_v16 = vcombine.low %v335_v4, %v339_v5 }
  0x54   : > { %v467_v7 = vld [vmem:[%s6267_s2 + $0x7e0] sm:$0xff]  ;;  %3357 = vmatpush1.bf16.msra.mxu1 %v4280_v9 }
  0x55   : > { %v4289_v11 = vcombine.high %v463_v6, %v467_v7  ;;  %v471_v12 = vld [vmem:[%s6267_s2 + $0x800] sm:$0xff]  ;;  %3317 = vmatprep.subr.bf16.mxu0 %v4161_v10  ;;  %v4288_v18 = vcombine.low %v463_v6, %v467_v7 }
  0x56   : > { %v475_v13 = vld [vmem:[%s6267_s2 + $0x820] sm:$0xff]  ;;  %3318 = vmatpush1.bf16.msra.mxu0 %v4160_v16 }
  0x57   : > { %v599_v14 = vld [vmem:[%s6267_s2 + $0xc00] sm:$0xff]  ;;  %v4297_v20 = vcombine.high %v471_v12, %v475_v13  ;;  %3358 = vmatprep.subr.bf16.mxu1 %v4289_v11  ;;  %v4296_v29 = vcombine.low %v471_v12, %v475_v13 }
  0x58   : > { %v603_v15 = vld [vmem:[%s6267_s2 + $0xc20] sm:$0xff]  ;;  %3359 = vmatpush1.bf16.msra.mxu1 %v4288_v18 }
  0x59   : > { %v191_v17 = vld [vmem:[#allocation2] sm:$0xff]  ;;  %v4425_v21 = vcombine.high %v599_v14, %v603_v15  ;;  %3369 = vmatprep.subr.bf16.mxu0 %v4297_v20  ;;  %v4424_v31 = vcombine.low %v599_v14, %v603_v15 }
  0x5a   : > { %v479_v22 = vld [vmem:[%s6267_s2 + $0x840] sm:$0xff]  ;;  %v4866_v24 = vpack.c.bf16 %v191_v17, %v191_v17 }
  0x5b   : > { %v483_v23 = vld [vmem:[%s6267_s2 + $0x860] sm:$0xff]  ;;  %3410 = vmatprep.subr.bf16.mxu1 %v4425_v21  ;;  %3361 = vmatmul.mubr.bf16.vlgmr.msra.gmra.mrb[0].mxu1 %v4874_v28 }
  0x5c   : > { %v607_v25 = vld [vmem:[%s6267_s2 + $0xc40] sm:$0xff]  ;;  %v4305_v32 = vcombine.high %v479_v22, %v483_v23  ;;  %3320 = vmatmul.mubr.bf16.vlgmr.msra.gmra.mrb[0].mxu0 %v4866_v24  ;;  %v4304_v40 = vcombine.low %v479_v22, %v483_v23  ;;  %3411 = vmatpush1.bf16.msra.mxu1 %v4424_v31 }
  0x5d   : > { %v611_v26 = vld [vmem:[%s6267_s2 + $0xc60] sm:$0xff]  ;;  %3370 = vmatpush1.bf16.msra.mxu0 %v4296_v29  ;;  %3401 = vmatprep.mubr.bf16.mxu0 %v4882_v36 }
  0x5e   : > { %v4433_v33 = vcombine.high %v607_v25, %v611_v26  ;;  %v487_v34 = vld [vmem:[%s6267_s2 + $0x880] sm:$0xff]  ;;  %3371 = vmatprep.subr.bf16.mxu0 %v4305_v32  ;;  %v4432_v41 = vcombine.low %v607_v25, %v611_v26  ;;  %3442 = vmatprep.mubr.bf16.mxu1 %v4891_v39 }
  0x5f   : > { %v491_v35 = vld [vmem:[%s6267_s2 + $0x8a0] sm:$0xff] }
  0x60   : > { %v615_v37 = vld [vmem:[%s6267_s2 + $0xc80] sm:$0xff]  ;;  %v4313_v42 = vcombine.high %v487_v34, %v491_v35  ;;  %3412 = vmatprep.subr.bf16.mxu1 %v4433_v33  ;;  %v4312_v48 = vcombine.low %v487_v34, %v491_v35 }
  0x61   : > { %v619_v38 = vld [vmem:[%s6267_s2 + $0xca0] sm:$0xff]  ;;  %3372 = vmatpush1.bf16.msra.mxu0 %v4304_v40  ;;  %3413 = vmatpush1.bf16.msra.mxu1 %v4432_v41 }
  0x62   : > { %v4441_v43 = vcombine.high %v615_v37, %v619_v38  ;;  %v495_v44 = vld [vmem:[%s6267_s2 + $0x8c0] sm:$0xff]  ;;  %3373 = vmatprep.subr.bf16.mxu0 %v4313_v42  ;;  %v4440_v49 = vcombine.low %v615_v37, %v619_v38 }
  0x63   : > { %v499_v45 = vld [vmem:[%s6267_s2 + $0x8e0] sm:$0xff] }
  0x64   : > { %v623_v46 = vld [vmem:[%s6267_s2 + $0xcc0] sm:$0xff]  ;;  %v4321_v50 = vcombine.high %v495_v44, %v499_v45  ;;  %3414 = vmatprep.subr.bf16.mxu1 %v4441_v43  ;;  %v4320_v56 = vcombine.low %v495_v44, %v499_v45 }
  0x65   : > { %v627_v47 = vld [vmem:[%s6267_s2 + $0xce0] sm:$0xff]  ;;  %3374 = vmatpush1.bf16.msra.mxu0 %v4312_v48  ;;  %3415 = vmatpush1.bf16.msra.mxu1 %v4440_v49 }
  0x66   : > { %v4449_v51 = vcombine.high %v623_v46, %v627_v47  ;;  %v503_v52 = vld [vmem:[%s6267_s2 + $0x900] sm:$0xff]  ;;  %3375 = vmatprep.subr.bf16.mxu0 %v4321_v50  ;;  %v4448_v57 = vcombine.low %v623_v46, %v627_v47 }
  0x67   : > { %v507_v53 = vld [vmem:[%s6267_s2 + $0x920] sm:$0xff] }
  0x68   : > { %v631_v54 = vld [vmem:[%s6267_s2 + $0xd00] sm:$0xff]  ;;  %v4329_v58 = vcombine.high %v503_v52, %v507_v53  ;;  %3416 = vmatprep.subr.bf16.mxu1 %v4449_v51  ;;  %v4328_v0 = vcombine.low %v503_v52, %v507_v53 }
  0x69   : > { %v635_v55 = vld [vmem:[%s6267_s2 + $0xd20] sm:$0xff]  ;;  %3376 = vmatpush1.bf16.msra.mxu0 %v4320_v56  ;;  %3417 = vmatpush1.bf16.msra.mxu1 %v4448_v57 }
  0x6a   : > { %v4457_v59 = vcombine.high %v631_v54, %v635_v55  ;;  %v511_v60 = vld [vmem:[%s6267_s2 + $0x940] sm:$0xff]  ;;  %3377 = vmatprep.subr.bf16.mxu0 %v4329_v58  ;;  %v4456_v1 = vcombine.low %v631_v54, %v635_v55 }
  0x6b   : > { %v515_v61 = vld [vmem:[%s6267_s2 + $0x960] sm:$0xff] }
  0x6c   : > { %v639_v62 = vld [vmem:[%s6267_s2 + $0xd40] sm:$0xff]  ;;  %v4337_v4 = vcombine.high %v511_v60, %v515_v61  ;;  %3418 = vmatprep.subr.bf16.mxu1 %v4457_v59  ;;  %v4336_v10 = vcombine.low %v511_v60, %v515_v61 }
  0x6d   : > { %v643_v63 = vld [vmem:[%s6267_s2 + $0xd60] sm:$0xff]  ;;  %3378 = vmatpush1.bf16.msra.mxu0 %v4328_v0  ;;  %3419 = vmatpush1.bf16.msra.mxu1 %v4456_v1 }
  0x6e   : > { %v4465_v5 = vcombine.high %v639_v62, %v643_v63  ;;  %v519_v6 = vld [vmem:[%s6267_s2 + $0x980] sm:$0xff]  ;;  %3379 = vmatprep.subr.bf16.mxu0 %v4337_v4  ;;  %v4464_v11 = vcombine.low %v639_v62, %v643_v63 }
  0x6f   : > { %v523_v7 = vld [vmem:[%s6267_s2 + $0x9a0] sm:$0xff] }
  0x70   : > { %v647_v8 = vld [vmem:[%s6267_s2 + $0xd80] sm:$0xff]  ;;  %v4345_v12 = vcombine.high %v519_v6, %v523_v7  ;;  %3420 = vmatprep.subr.bf16.mxu1 %v4465_v5  ;;  %v4344_v18 = vcombine.low %v519_v6, %v523_v7 }
  0x71   : > { %v651_v9 = vld [vmem:[%s6267_s2 + $0xda0] sm:$0xff]  ;;  %3380 = vmatpush1.bf16.msra.mxu0 %v4336_v10  ;;  %3421 = vmatpush1.bf16.msra.mxu1 %v4464_v11 }
  0x72   : > { %v4473_v13 = vcombine.high %v647_v8, %v651_v9  ;;  %v527_v14 = vld [vmem:[%s6267_s2 + $0x9c0] sm:$0xff]  ;;  %3381 = vmatprep.subr.bf16.mxu0 %v4345_v12  ;;  %v4472_v19 = vcombine.low %v647_v8, %v651_v9 }
  0x73   : > { %v531_v15 = vld [vmem:[%s6267_s2 + $0x9e0] sm:$0xff] }
  0x74   : > { %v655_v16 = vld [vmem:[%s6267_s2 + $0xdc0] sm:$0xff]  ;;  %v4353_v20 = vcombine.high %v527_v14, %v531_v15  ;;  %3422 = vmatprep.subr.bf16.mxu1 %v4473_v13  ;;  %v4352_v27 = vcombine.low %v527_v14, %v531_v15 }
  0x75   : > { %v659_v17 = vld [vmem:[%s6267_s2 + $0xde0] sm:$0xff]  ;;  %3382 = vmatpush1.bf16.msra.mxu0 %v4344_v18  ;;  %3423 = vmatpush1.bf16.msra.mxu1 %v4472_v19 }
  0x76   : > { %v4481_v21 = vcombine.high %v655_v16, %v659_v17  ;;  %v535_v22 = vld [vmem:[%s6267_s2 + $0xa00] sm:$0xff]  ;;  %3383 = vmatprep.subr.bf16.mxu0 %v4353_v20  ;;  %v4480_v29 = vcombine.low %v655_v16, %v659_v17 }
  0x77   : > { %v539_v23 = vld [vmem:[%s6267_s2 + $0xa20] sm:$0xff] }
  0x78   : > { %v663_v25 = vld [vmem:[%s6267_s2 + $0xe00] sm:$0xff]  ;;  %v4361_v30 = vcombine.high %v535_v22, %v539_v23  ;;  %3424 = vmatprep.subr.bf16.mxu1 %v4481_v21  ;;  %v4360_v37 = vcombine.low %v535_v22, %v539_v23 }
  0x79   : > { %v667_v26 = vld [vmem:[%s6267_s2 + $0xe20] sm:$0xff]  ;;  %3384 = vmatpush1.bf16.msra.mxu0 %v4352_v27  ;;  %3425 = vmatpush1.bf16.msra.mxu1 %v4480_v29 }
  0x7a   : > { %v4489_v31 = vcombine.high %v663_v25, %v667_v26  ;;  %v543_v32 = vld [vmem:[%s6267_s2 + $0xa40] sm:$0xff]  ;;  %3385 = vmatprep.subr.bf16.mxu0 %v4361_v30  ;;  %v4488_v38 = vcombine.low %v663_v25, %v667_v26  ;;  %v216_v30 = vld [vmem:[%s6267_s2 + $0x8] sm:$0xff] }
  0x7b   : > { %v547_v33 = vld [vmem:[%s6267_s2 + $0xa60] sm:$0xff] }
  0x7c   : > { %v671_v34 = vld [vmem:[%s6267_s2 + $0xe40] sm:$0xff]  ;;  %v4369_v40 = vcombine.high %v543_v32, %v547_v33  ;;  %3426 = vmatprep.subr.bf16.mxu1 %v4489_v31  ;;  %v4368_v46 = vcombine.low %v543_v32, %v547_v33  ;;  %v220_v31 = vld [vmem:[%s6267_s2 + $0x28] sm:$0xff] }
  0x7d   : > { %v675_v35 = vld [vmem:[%s6267_s2 + $0xe60] sm:$0xff]  ;;  %3386 = vmatpush1.bf16.msra.mxu0 %v4360_v37  ;;  %3427 = vmatpush1.bf16.msra.mxu1 %v4488_v38  ;;  %v344_v32 = vld [vmem:[%s6267_s2 + $0x408] sm:$0xff]  ;;  %v197_v38 = vld [vmem:[#allocation2 + $0x30] sm:$0xff] }
  0x7e   : > { %v4497_v41 = vcombine.high %v671_v34, %v675_v35  ;;  %v551_v42 = vld [vmem:[%s6267_s2 + $0xa80] sm:$0xff]  ;;  %3387 = vmatprep.subr.bf16.mxu0 %v4369_v40  ;;  %v4496_v47 = vcombine.low %v671_v34, %v675_v35  ;;  %v348_v33 = vld [vmem:[%s6267_s2 + $0x428] sm:$0xff]  ;;  %v4043_v40 = vcombine.high %v216_v30, %v220_v31 }
  0x7f   : > { %v555_v43 = vld [vmem:[%s6267_s2 + $0xaa0] sm:$0xff] }
  0x80   : > { %v679_v44 = vld [vmem:[%s6267_s2 + $0xe80] sm:$0xff]  ;;  %v4377_v48 = vcombine.high %v551_v42, %v555_v43  ;;  %3428 = vmatprep.subr.bf16.mxu1 %v4497_v41  ;;  %v4376_v54 = vcombine.low %v551_v42, %v555_v43  ;;  %v4171_v41 = vcombine.high %v344_v32, %v348_v33  ;;  %v224_v42 = vld [vmem:[%s6267_s2 + $0x48] sm:$0xff] }
  0x81   : > { %v683_v45 = vld [vmem:[%s6267_s2 + $0xea0] sm:$0xff]  ;;  %3388 = vmatpush1.bf16.msra.mxu0 %v4368_v46  ;;  %3429 = vmatpush1.bf16.msra.mxu1 %v4496_v47  ;;  %v228_v43 = vld [vmem:[%s6267_s2 + $0x68] sm:$0xff]  ;;  %v5078_v47 = vpack.c.bf16 %v197_v38, %v197_v38 }
  0x82   : > { %v4505_v49 = vcombine.high %v679_v44, %v683_v45  ;;  %v559_v50 = vld [vmem:[%s6267_s2 + $0xac0] sm:$0xff]  ;;  %3389 = vmatprep.subr.bf16.mxu0 %v4377_v48  ;;  %v4504_v55 = vcombine.low %v679_v44, %v683_v45  ;;  %v352_v45 = vld [vmem:[%s6267_s2 + $0x448] sm:$0xff]  ;;  %v4042_v48 = vcombine.low %v216_v30, %v220_v31 }
  0x83   : > { %v563_v51 = vld [vmem:[%s6267_s2 + $0xae0] sm:$0xff]  ;;  %v356_v46 = vld [vmem:[%s6267_s2 + $0x468] sm:$0xff] }
  0x84   : > { %v687_v52 = vld [vmem:[%s6267_s2 + $0xec0] sm:$0xff]  ;;  %v4385_v56 = vcombine.high %v559_v50, %v563_v51  ;;  %3430 = vmatprep.subr.bf16.mxu1 %v4505_v49  ;;  %v4384_v62 = vcombine.low %v559_v50, %v563_v51  ;;  %v4170_v49 = vcombine.low %v344_v32, %v348_v33  ;;  %v4051_v50 = vcombine.high %v224_v42, %v228_v43  ;;  %v272_v32 = vld [vmem:[%s6267_s2 + $0x1c8] sm:$0xff] }
  0x85   : > { %v691_v53 = vld [vmem:[%s6267_s2 + $0xee0] sm:$0xff]  ;;  %3390 = vmatpush1.bf16.msra.mxu0 %v4376_v54  ;;  %3431 = vmatpush1.bf16.msra.mxu1 %v4504_v55  ;;  %v4179_v51 = vcombine.high %v352_v45, %v356_v46  ;;  %v360_v54 = vld [vmem:[%s6267_s2 + $0x488] sm:$0xff] }
  0x86   : > { %v4513_v57 = vcombine.high %v687_v52, %v691_v53  ;;  %v567_v58 = vld [vmem:[%s6267_s2 + $0xb00] sm:$0xff]  ;;  %3391 = vmatprep.subr.bf16.mxu0 %v4385_v56  ;;  %v4512_v63 = vcombine.low %v687_v52, %v691_v53  ;;  %v232_v52 = vld [vmem:[%s6267_s2 + $0x88] sm:$0xff]  ;;  %v4050_v56 = vcombine.low %v224_v42, %v228_v43 }
  0x87   : > { %v571_v59 = vld [vmem:[%s6267_s2 + $0xb20] sm:$0xff]  ;;  %v236_v53 = vld [vmem:[%s6267_s2 + $0xa8] sm:$0xff] }
  0x88   : > { %v695_v60 = vld [vmem:[%s6267_s2 + $0xf00] sm:$0xff]  ;;  %v4393_v0 = vcombine.high %v567_v58, %v571_v59  ;;  %3432 = vmatprep.subr.bf16.mxu1 %v4513_v57  ;;  %v4392_v8 = vcombine.low %v567_v58, %v571_v59  ;;  %v364_v55 = vld [vmem:[%s6267_s2 + $0x4a8] sm:$0xff]  ;;  %v4178_v57 = vcombine.low %v352_v45, %v356_v46  ;;  %v4059_v58 = vcombine.high %v232_v52, %v236_v53 }
  0x89   : > { %v699_v61 = vld [vmem:[%s6267_s2 + $0xf20] sm:$0xff]  ;;  %3392 = vmatpush1.bf16.msra.mxu0 %v4384_v62  ;;  %3433 = vmatpush1.bf16.msra.mxu1 %v4512_v63  ;;  %v4187_v59 = vcombine.high %v360_v54, %v364_v55  ;;  %v368_v62 = vld [vmem:[%s6267_s2 + $0x4c8] sm:$0xff] }
  0x8a   : > { %v4521_v1 = vcombine.high %v695_v60, %v699_v61  ;;  %v575_v4 = vld [vmem:[%s6267_s2 + $0xb40] sm:$0xff]  ;;  %3393 = vmatprep.subr.bf16.mxu0 %v4393_v0  ;;  %v4520_v9 = vcombine.low %v695_v60, %v699_v61  ;;  %v240_v60 = vld [vmem:[%s6267_s2 + $0xc8] sm:$0xff]  ;;  %v4058_v0 = vcombine.low %v232_v52, %v236_v53 }
  0x8b   : > { %v579_v5 = vld [vmem:[%s6267_s2 + $0xb60] sm:$0xff]  ;;  %v244_v61 = vld [vmem:[%s6267_s2 + $0xe8] sm:$0xff] }
  0x8c   : > { %v703_v6 = vld [vmem:[%s6267_s2 + $0xf40] sm:$0xff]  ;;  %v4401_v10 = vcombine.high %v575_v4, %v579_v5  ;;  %3434 = vmatprep.subr.bf16.mxu1 %v4521_v1  ;;  %v4400_v16 = vcombine.low %v575_v4, %v579_v5  ;;  %v372_v63 = vld [vmem:[%s6267_s2 + $0x4e8] sm:$0xff]  ;;  %v4186_v1 = vcombine.low %v360_v54, %v364_v55  ;;  %v4067_v4 = vcombine.high %v240_v60, %v244_v61 }
  0x8d   : > { %v707_v7 = vld [vmem:[%s6267_s2 + $0xf60] sm:$0xff]  ;;  %3394 = vmatpush1.bf16.msra.mxu0 %v4392_v8  ;;  %3435 = vmatpush1.bf16.msra.mxu1 %v4520_v9  ;;  %v4195_v5 = vcombine.high %v368_v62, %v372_v63  ;;  %v376_v8 = vld [vmem:[%s6267_s2 + $0x508] sm:$0xff] }
  0x8e   : > { %v4529_v11 = vcombine.high %v703_v6, %v707_v7  ;;  %v583_v12 = vld [vmem:[%s6267_s2 + $0xb80] sm:$0xff]  ;;  %3395 = vmatprep.subr.bf16.mxu0 %v4401_v10  ;;  %v4528_v17 = vcombine.low %v703_v6, %v707_v7  ;;  %v248_v6 = vld [vmem:[%s6267_s2 + $0x108] sm:$0xff]  ;;  %v4066_v10 = vcombine.low %v240_v60, %v244_v61 }
  0x8f   : > { %v587_v13 = vld [vmem:[%s6267_s2 + $0xba0] sm:$0xff]  ;;  %v252_v7 = vld [vmem:[%s6267_s2 + $0x128] sm:$0xff] }
  0x90   : > { %v711_v14 = vld [vmem:[%s6267_s2 + $0xf80] sm:$0xff]  ;;  %v4409_v18 = vcombine.high %v583_v12, %v587_v13  ;;  %3436 = vmatprep.subr.bf16.mxu1 %v4529_v11  ;;  %v4408_v25 = vcombine.low %v583_v12, %v587_v13  ;;  %v380_v9 = vld [vmem:[%s6267_s2 + $0x528] sm:$0xff]  ;;  %v4194_v11 = vcombine.low %v368_v62, %v372_v63  ;;  %v4075_v12 = vcombine.high %v248_v6, %v252_v7 }
  0x91   : > { %v715_v15 = vld [vmem:[%s6267_s2 + $0xfa0] sm:$0xff]  ;;  %3396 = vmatpush1.bf16.msra.mxu0 %v4400_v16  ;;  %3437 = vmatpush1.bf16.msra.mxu1 %v4528_v17  ;;  %v4203_v13 = vcombine.high %v376_v8, %v380_v9  ;;  %v384_v16 = vld [vmem:[%s6267_s2 + $0x548] sm:$0xff] }
  0x92   : > { %v4537_v19 = vcombine.high %v711_v14, %v715_v15  ;;  %v591_v20 = vld [vmem:[%s6267_s2 + $0xbc0] sm:$0xff]  ;;  %3397 = vmatprep.subr.bf16.mxu0 %v4409_v18  ;;  %v4536_v26 = vcombine.low %v711_v14, %v715_v15  ;;  %v256_v14 = vld [vmem:[%s6267_s2 + $0x148] sm:$0xff]  ;;  %v4074_v18 = vcombine.low %v248_v6, %v252_v7 }
  0x93   : > { %v595_v21 = vld [vmem:[%s6267_s2 + $0xbe0] sm:$0xff]  ;;  %v260_v15 = vld [vmem:[%s6267_s2 + $0x168] sm:$0xff] }
  0x94   : > { %v719_v22 = vld [vmem:[%s6267_s2 + $0xfc0] sm:$0xff]  ;;  %v4417_v27 = vcombine.high %v591_v20, %v595_v21  ;;  %3438 = vmatprep.subr.bf16.mxu1 %v4537_v19  ;;  %v4416_v34 = vcombine.low %v591_v20, %v595_v21  ;;  %v388_v17 = vld [vmem:[%s6267_s2 + $0x568] sm:$0xff]  ;;  %v4202_v19 = vcombine.low %v376_v8, %v380_v9  ;;  %v4083_v20 = vcombine.high %v256_v14, %v260_v15 }
  0x95   : > { %v723_v23 = vld [vmem:[%s6267_s2 + $0xfe0] sm:$0xff]  ;;  %3398 = vmatpush1.bf16.msra.mxu0 %v4408_v25  ;;  %3439 = vmatpush1.bf16.msra.mxu1 %v4536_v26  ;;  %v4211_v21 = vcombine.high %v384_v16, %v388_v17  ;;  %v392_v25 = vld [vmem:[%s6267_s2 + $0x588] sm:$0xff] }
  0x96   : > { %v4545_v29 = vcombine.high %v719_v22, %v723_v23  ;;  %v195_v35 = vld [vmem:[#allocation2 + $0x20] sm:$0xff]  ;;  %3399 = vmatprep.subr.bf16.mxu0 %v4417_v27  ;;  %v4544_v37 = vcombine.low %v719_v22, %v723_v23  ;;  %v264_v22 = vld [vmem:[%s6267_s2 + $0x188] sm:$0xff]  ;;  %v4082_v27 = vcombine.low %v256_v14, %v260_v15 }
  0x97   : > { %v5070_v44 = vpack.c.bf16 %v195_v35, %v195_v35  ;;  %v268_v23 = vld [vmem:[%s6267_s2 + $0x1a8] sm:$0xff] }
  0x98   : > { %3440 = vmatprep.subr.bf16.mxu1 %v4545_v29  ;;  %v396_v26 = vld [vmem:[%s6267_s2 + $0x5a8] sm:$0xff]  ;;  %v4210_v29 = vcombine.low %v384_v16, %v388_v17  ;;  %v4091_v30 = vcombine.high %v264_v22, %v268_v23 }
  0x99   : > { %3400 = vmatpush1.bf16.msra.mxu0 %v4416_v34  ;;  %3441 = vmatpush1.bf16.msra.mxu1 %v4544_v37  ;;  %v4219_v31 = vcombine.high %v392_v25, %v396_v26  ;;  %v276_v33 = vld [vmem:[%s6267_s2 + $0x1e8] sm:$0xff]  ;;  %v4090_v37 = vcombine.low %v264_v22, %v268_v23  ;;  %v4218_v38 = vcombine.low %v392_v25, %v396_v26 }
  0x9a   : > { %3451 = vmatprep.subr.bf16.mxu0 %v4043_v40  ;;  %3492 = vmatprep.subr.bf16.mxu1 %v4171_v41  ;;  %v400_v34 = vld [vmem:[%s6267_s2 + $0x5c8] sm:$0xff]  ;;  %v4099_v40 = vcombine.high %v272_v32, %v276_v33 }
  0x9b   : > { %v404_v35 = vld [vmem:[%s6267_s2 + $0x5e8] sm:$0xff] }
  0x9c   : > { %3402 = vmatmul.mubr.bf16.vlgmr.msra.gmra.mrb[4].mxu0 %v5070_v44  ;;  %3443 = vmatmul.mubr.bf16.vlgmr.msra.gmra.mrb[4].mxu1 %v5078_v47  ;;  %v4227_v41 = vcombine.high %v400_v34, %v404_v35  ;;  %v280_v42 = vld [vmem:[%s6267_s2 + $0x208] sm:$0xff] }
  0x9d   : > { %3452 = vmatpush1.bf16.msra.mxu0 %v4042_v48  ;;  %3493 = vmatpush1.bf16.msra.mxu1 %v4170_v49  ;;  %v284_v43 = vld [vmem:[%s6267_s2 + $0x228] sm:$0xff]  ;;  %v4098_v48 = vcombine.low %v272_v32, %v276_v33  ;;  %v4226_v49 = vcombine.low %v400_v34, %v404_v35 }
  0x9e   : > { %3453 = vmatprep.subr.bf16.mxu0 %v4051_v50  ;;  %3494 = vmatprep.subr.bf16.mxu1 %v4179_v51  ;;  %v408_v45 = vld [vmem:[%s6267_s2 + $0x608] sm:$0xff]  ;;  %v4107_v50 = vcombine.high %v280_v42, %v284_v43 }
  0x9f   : > { %3483 = vmatprep.mubr.bf16.mxu0 %v4740_v2  ;;  %3524 = vmatprep.mubr.bf16.mxu1 %v4742_v3  ;;  %v412_v46 = vld [vmem:[%s6267_s2 + $0x628] sm:$0xff] }
  0xa0   : > { %v4235_v51 = vcombine.high %v408_v45, %v412_v46  ;;  %v288_v52 = vld [vmem:[%s6267_s2 + $0x248] sm:$0xff] }
  0xa1   : > { %3454 = vmatpush1.bf16.msra.mxu0 %v4050_v56  ;;  %3495 = vmatpush1.bf16.msra.mxu1 %v4178_v57  ;;  %v292_v53 = vld [vmem:[%s6267_s2 + $0x268] sm:$0xff]  ;;  %v4106_v56 = vcombine.low %v280_v42, %v284_v43  ;;  %v4234_v57 = vcombine.low %v408_v45, %v412_v46 }
  0xa2   : > { %3455 = vmatprep.subr.bf16.mxu0 %v4059_v58  ;;  %3496 = vmatprep.subr.bf16.mxu1 %v4187_v59  ;;  %v416_v54 = vld [vmem:[%s6267_s2 + $0x648] sm:$0xff]  ;;  %v4115_v58 = vcombine.high %v288_v52, %v292_v53 }
  0xa3   : > { %v420_v55 = vld [vmem:[%s6267_s2 + $0x668] sm:$0xff] }
  0xa4   : > { %v4243_v59 = vcombine.high %v416_v54, %v420_v55  ;;  %v296_v60 = vld [vmem:[%s6267_s2 + $0x288] sm:$0xff] }
  0xa5   : > { %3456 = vmatpush1.bf16.msra.mxu0 %v4058_v0  ;;  %3497 = vmatpush1.bf16.msra.mxu1 %v4186_v1  ;;  %v300_v61 = vld [vmem:[%s6267_s2 + $0x2a8] sm:$0xff]  ;;  %v4114_v0 = vcombine.low %v288_v52, %v292_v53  ;;  %v4242_v1 = vcombine.low %v416_v54, %v420_v55 }
  0xa6   : > { %3457 = vmatprep.subr.bf16.mxu0 %v4067_v4  ;;  %3498 = vmatprep.subr.bf16.mxu1 %v4195_v5  ;;  %v424_v62 = vld [vmem:[%s6267_s2 + $0x688] sm:$0xff]  ;;  %v4123_v4 = vcombine.high %v296_v60, %v300_v61 }
  0xa7   : > { %v428_v63 = vld [vmem:[%s6267_s2 + $0x6a8] sm:$0xff] }
  0xa8   : > { %v4251_v5 = vcombine.high %v424_v62, %v428_v63  ;;  %v304_v6 = vld [vmem:[%s6267_s2 + $0x2c8] sm:$0xff] }
  0xa9   : > { %3458 = vmatpush1.bf16.msra.mxu0 %v4066_v10  ;;  %3499 = vmatpush1.bf16.msra.mxu1 %v4194_v11  ;;  %v308_v7 = vld [vmem:[%s6267_s2 + $0x2e8] sm:$0xff]  ;;  %v4122_v10 = vcombine.low %v296_v60, %v300_v61  ;;  %v4250_v11 = vcombine.low %v424_v62, %v428_v63 }
  0xaa   : > { %3459 = vmatprep.subr.bf16.mxu0 %v4075_v12  ;;  %3500 = vmatprep.subr.bf16.mxu1 %v4203_v13  ;;  %v432_v8 = vld [vmem:[%s6267_s2 + $0x6c8] sm:$0xff]  ;;  %v4131_v12 = vcombine.high %v304_v6, %v308_v7 }
  0xab   : > { %v436_v9 = vld [vmem:[%s6267_s2 + $0x6e8] sm:$0xff] }
  0xac   : > { %v4259_v13 = vcombine.high %v432_v8, %v436_v9  ;;  %v312_v14 = vld [vmem:[%s6267_s2 + $0x308] sm:$0xff] }
  0xad   : > { %3460 = vmatpush1.bf16.msra.mxu0 %v4074_v18  ;;  %3501 = vmatpush1.bf16.msra.mxu1 %v4202_v19  ;;  %v316_v15 = vld [vmem:[%s6267_s2 + $0x328] sm:$0xff]  ;;  %v4130_v18 = vcombine.low %v304_v6, %v308_v7  ;;  %v4258_v19 = vcombine.low %v432_v8, %v436_v9 }
  0xae   : > { %3461 = vmatprep.subr.bf16.mxu0 %v4083_v20  ;;  %3502 = vmatprep.subr.bf16.mxu1 %v4211_v21  ;;  %v440_v16 = vld [vmem:[%s6267_s2 + $0x708] sm:$0xff]  ;;  %v4139_v20 = vcombine.high %v312_v14, %v316_v15 }
  0xaf   : > { %v444_v17 = vld [vmem:[%s6267_s2 + $0x728] sm:$0xff] }
  0xb0   : > { %v4267_v21 = vcombine.high %v440_v16, %v444_v17  ;;  %v320_v22 = vld [vmem:[%s6267_s2 + $0x348] sm:$0xff] }
  0xb1   : > { %3462 = vmatpush1.bf16.msra.mxu0 %v4082_v27  ;;  %3503 = vmatpush1.bf16.msra.mxu1 %v4210_v29  ;;  %v324_v23 = vld [vmem:[%s6267_s2 + $0x368] sm:$0xff]  ;;  %v4138_v27 = vcombine.low %v312_v14, %v316_v15  ;;  %v4266_v29 = vcombine.low %v440_v16, %v444_v17 }
  0xb2   : > { %3463 = vmatprep.subr.bf16.mxu0 %v4091_v30  ;;  %3504 = vmatprep.subr.bf16.mxu1 %v4219_v31  ;;  %v448_v25 = vld [vmem:[%s6267_s2 + $0x748] sm:$0xff]  ;;  %v4147_v30 = vcombine.high %v320_v22, %v324_v23 }
  0xb3   : > { %v452_v26 = vld [vmem:[%s6267_s2 + $0x768] sm:$0xff] }
  0xb4   : > { %v4275_v31 = vcombine.high %v448_v25, %v452_v26  ;;  %v328_v32 = vld [vmem:[%s6267_s2 + $0x388] sm:$0xff] }
  0xb5   : > { %3464 = vmatpush1.bf16.msra.mxu0 %v4090_v37  ;;  %3505 = vmatpush1.bf16.msra.mxu1 %v4218_v38  ;;  %v332_v33 = vld [vmem:[%s6267_s2 + $0x3a8] sm:$0xff]  ;;  %v4146_v37 = vcombine.low %v320_v22, %v324_v23  ;;  %v4274_v38 = vcombine.low %v448_v25, %v452_v26 }
  0xb6   : > { %3465 = vmatprep.subr.bf16.mxu0 %v4099_v40  ;;  %3506 = vmatprep.subr.bf16.mxu1 %v4227_v41  ;;  %v456_v34 = vld [vmem:[%s6267_s2 + $0x788] sm:$0xff]  ;;  %v4155_v40 = vcombine.high %v328_v32, %v332_v33 }
  0xb7   : > { %v460_v35 = vld [vmem:[%s6267_s2 + $0x7a8] sm:$0xff] }
  0xb8   : > { %v4283_v41 = vcombine.high %v456_v34, %v460_v35  ;;  %v336_v42 = vld [vmem:[%s6267_s2 + $0x3c8] sm:$0xff] }
  0xb9   : > { %3466 = vmatpush1.bf16.msra.mxu0 %v4098_v48  ;;  %3507 = vmatpush1.bf16.msra.mxu1 %v4226_v49  ;;  %v340_v43 = vld [vmem:[%s6267_s2 + $0x3e8] sm:$0xff]  ;;  %v4154_v48 = vcombine.low %v328_v32, %v332_v33  ;;  %v4282_v49 = vcombine.low %v456_v34, %v460_v35 }
  0xba   : > { %3467 = vmatprep.subr.bf16.mxu0 %v4107_v50  ;;  %3508 = vmatprep.subr.bf16.mxu1 %v4235_v51  ;;  %v464_v45 = vld [vmem:[%s6267_s2 + $0x7c8] sm:$0xff]  ;;  %v4163_v50 = vcombine.high %v336_v42, %v340_v43 }
  0xbb   : > { %v468_v46 = vld [vmem:[%s6267_s2 + $0x7e8] sm:$0xff] }
  0xbc   : > { %v4291_v51 = vcombine.high %v464_v45, %v468_v46  ;;  %v472_v52 = vld [vmem:[%s6267_s2 + $0x808] sm:$0xff] }
  0xbd   : > { %3468 = vmatpush1.bf16.msra.mxu0 %v4106_v56  ;;  %3509 = vmatpush1.bf16.msra.mxu1 %v4234_v57  ;;  %v476_v53 = vld [vmem:[%s6267_s2 + $0x828] sm:$0xff]  ;;  %v4162_v56 = vcombine.low %v336_v42, %v340_v43  ;;  %v4290_v57 = vcombine.low %v464_v45, %v468_v46 }
  0xbe   : > { %3469 = vmatprep.subr.bf16.mxu0 %v4115_v58  ;;  %3510 = vmatprep.subr.bf16.mxu1 %v4243_v59  ;;  %v600_v54 = vld [vmem:[%s6267_s2 + $0xc08] sm:$0xff]  ;;  %v4299_v58 = vcombine.high %v472_v52, %v476_v53 }
  0xbf   : > { %v604_v55 = vld [vmem:[%s6267_s2 + $0xc28] sm:$0xff] }
  0xc0   : > { %v4427_v59 = vcombine.high %v600_v54, %v604_v55  ;;  %v480_v60 = vld [vmem:[%s6267_s2 + $0x848] sm:$0xff] }
  0xc1   : > { %3470 = vmatpush1.bf16.msra.mxu0 %v4114_v0  ;;  %3511 = vmatpush1.bf16.msra.mxu1 %v4242_v1  ;;  %v484_v61 = vld [vmem:[%s6267_s2 + $0x868] sm:$0xff]  ;;  %v4298_v0 = vcombine.low %v472_v52, %v476_v53  ;;  %v4426_v1 = vcombine.low %v600_v54, %v604_v55 }
  0xc2   : > { %3471 = vmatprep.subr.bf16.mxu0 %v4123_v4  ;;  %3512 = vmatprep.subr.bf16.mxu1 %v4251_v5  ;;  %v608_v62 = vld [vmem:[%s6267_s2 + $0xc48] sm:$0xff]  ;;  %v4307_v4 = vcombine.high %v480_v60, %v484_v61 }
  0xc3   : > { %v612_v63 = vld [vmem:[%s6267_s2 + $0xc68] sm:$0xff] }
  0xc4   : > { %v4435_v5 = vcombine.high %v608_v62, %v612_v63  ;;  %v488_v6 = vld [vmem:[%s6267_s2 + $0x888] sm:$0xff] }
  0xc5   : > { %3472 = vmatpush1.bf16.msra.mxu0 %v4122_v10  ;;  %3513 = vmatpush1.bf16.msra.mxu1 %v4250_v11  ;;  %v492_v7 = vld [vmem:[%s6267_s2 + $0x8a8] sm:$0xff]  ;;  %v4306_v10 = vcombine.low %v480_v60, %v484_v61  ;;  %v4434_v11 = vcombine.low %v608_v62, %v612_v63 }
  0xc6   : > { %3473 = vmatprep.subr.bf16.mxu0 %v4131_v12  ;;  %3514 = vmatprep.subr.bf16.mxu1 %v4259_v13  ;;  %v616_v8 = vld [vmem:[%s6267_s2 + $0xc88] sm:$0xff]  ;;  %v4315_v12 = vcombine.high %v488_v6, %v492_v7 }
  0xc7   : > { %v620_v9 = vld [vmem:[%s6267_s2 + $0xca8] sm:$0xff] }
  0xc8   : > { %v4443_v13 = vcombine.high %v616_v8, %v620_v9  ;;  %v496_v14 = vld [vmem:[%s6267_s2 + $0x8c8] sm:$0xff] }
  0xc9   : > { %3474 = vmatpush1.bf16.msra.mxu0 %v4130_v18  ;;  %3515 = vmatpush1.bf16.msra.mxu1 %v4258_v19  ;;  %v500_v15 = vld [vmem:[%s6267_s2 + $0x8e8] sm:$0xff]  ;;  %v4314_v18 = vcombine.low %v488_v6, %v492_v7  ;;  %v4442_v19 = vcombine.low %v616_v8, %v620_v9 }
  0xca   : > { %3475 = vmatprep.subr.bf16.mxu0 %v4139_v20  ;;  %3516 = vmatprep.subr.bf16.mxu1 %v4267_v21  ;;  %v624_v16 = vld [vmem:[%s6267_s2 + $0xcc8] sm:$0xff]  ;;  %v4323_v20 = vcombine.high %v496_v14, %v500_v15 }
  0xcb   : > { %v628_v17 = vld [vmem:[%s6267_s2 + $0xce8] sm:$0xff] }
  0xcc   : > { %v4451_v21 = vcombine.high %v624_v16, %v628_v17  ;;  %v504_v22 = vld [vmem:[%s6267_s2 + $0x908] sm:$0xff] }
  0xcd   : > { %3476 = vmatpush1.bf16.msra.mxu0 %v4138_v27  ;;  %3517 = vmatpush1.bf16.msra.mxu1 %v4266_v29  ;;  %v508_v23 = vld [vmem:[%s6267_s2 + $0x928] sm:$0xff]  ;;  %v4322_v27 = vcombine.low %v496_v14, %v500_v15  ;;  %v4450_v29 = vcombine.low %v624_v16, %v628_v17 }
  0xce   : > { %3477 = vmatprep.subr.bf16.mxu0 %v4147_v30  ;;  %3518 = vmatprep.subr.bf16.mxu1 %v4275_v31  ;;  %v632_v25 = vld [vmem:[%s6267_s2 + $0xd08] sm:$0xff]  ;;  %v4331_v30 = vcombine.high %v504_v22, %v508_v23 }
  0xcf   : > { %v636_v26 = vld [vmem:[%s6267_s2 + $0xd28] sm:$0xff] }
  0xd0   : > { %v4459_v31 = vcombine.high %v632_v25, %v636_v26  ;;  %v512_v32 = vld [vmem:[%s6267_s2 + $0x948] sm:$0xff] }
  0xd1   : > { %3478 = vmatpush1.bf16.msra.mxu0 %v4146_v37  ;;  %3519 = vmatpush1.bf16.msra.mxu1 %v4274_v38  ;;  %v516_v33 = vld [vmem:[%s6267_s2 + $0x968] sm:$0xff]  ;;  %v4330_v37 = vcombine.low %v504_v22, %v508_v23  ;;  %v4458_v38 = vcombine.low %v632_v25, %v636_v26 }
  0xd2   : > { %3479 = vmatprep.subr.bf16.mxu0 %v4155_v40  ;;  %3520 = vmatprep.subr.bf16.mxu1 %v4283_v41  ;;  %v640_v34 = vld [vmem:[%s6267_s2 + $0xd48] sm:$0xff]  ;;  %v4339_v40 = vcombine.high %v512_v32, %v516_v33 }
  0xd3   : > { %v644_v35 = vld [vmem:[%s6267_s2 + $0xd68] sm:$0xff] }
  0xd4   : > { %v4467_v41 = vcombine.high %v640_v34, %v644_v35  ;;  %v520_v42 = vld [vmem:[%s6267_s2 + $0x988] sm:$0xff] }
  0xd5   : > { %3480 = vmatpush1.bf16.msra.mxu0 %v4154_v48  ;;  %3521 = vmatpush1.bf16.msra.mxu1 %v4282_v49  ;;  %v524_v43 = vld [vmem:[%s6267_s2 + $0x9a8] sm:$0xff]  ;;  %v4338_v48 = vcombine.low %v512_v32, %v516_v33  ;;  %v4466_v49 = vcombine.low %v640_v34, %v644_v35 }
  0xd6   : > { %3481 = vmatprep.subr.bf16.mxu0 %v4163_v50  ;;  %3522 = vmatprep.subr.bf16.mxu1 %v4291_v51  ;;  %v648_v45 = vld [vmem:[%s6267_s2 + $0xd88] sm:$0xff]  ;;  %v4347_v50 = vcombine.high %v520_v42, %v524_v43 }
  0xd7   : > { %v652_v46 = vld [vmem:[%s6267_s2 + $0xda8] sm:$0xff] }
  0xd8   : > { %v4475_v51 = vcombine.high %v648_v45, %v652_v46  ;;  %v528_v52 = vld [vmem:[%s6267_s2 + $0x9c8] sm:$0xff] }
  0xd9   : > { %3482 = vmatpush1.bf16.msra.mxu0 %v4162_v56  ;;  %3523 = vmatpush1.bf16.msra.mxu1 %v4290_v57  ;;  %v532_v53 = vld [vmem:[%s6267_s2 + $0x9e8] sm:$0xff]  ;;  %v4346_v56 = vcombine.low %v520_v42, %v524_v43  ;;  %v4474_v57 = vcombine.low %v648_v45, %v652_v46 }
  0xda   : > { %3533 = vmatprep.subr.bf16.mxu0 %v4299_v58  ;;  %3574 = vmatprep.subr.bf16.mxu1 %v4427_v59  ;;  %v656_v54 = vld [vmem:[%s6267_s2 + $0xdc8] sm:$0xff]  ;;  %v4355_v58 = vcombine.high %v528_v52, %v532_v53 }
  0xdb   : > { %v660_v55 = vld [vmem:[%s6267_s2 + $0xde8] sm:$0xff] }
  0xdc   : > { %3484 = vmatmul.mubr.bf16.vlgmr.msra.gmra.mrb[8].mxu0 %v4866_v24  ;;  %3525 = vmatmul.mubr.bf16.vlgmr.msra.gmra.mrb[8].mxu1 %v4874_v28  ;;  %v4483_v59 = vcombine.high %v656_v54, %v660_v55  ;;  %v536_v60 = vld [vmem:[%s6267_s2 + $0xa08] sm:$0xff] }
  0xdd   : > { %3534 = vmatpush1.bf16.msra.mxu0 %v4298_v0  ;;  %3575 = vmatpush1.bf16.msra.mxu1 %v4426_v1  ;;  %v540_v61 = vld [vmem:[%s6267_s2 + $0xa28] sm:$0xff]  ;;  %v4354_v0 = vcombine.low %v528_v52, %v532_v53  ;;  %v4482_v1 = vcombine.low %v656_v54, %v660_v55 }
  0xde   : > { %3535 = vmatprep.subr.bf16.mxu0 %v4307_v4  ;;  %3576 = vmatprep.subr.bf16.mxu1 %v4435_v5  ;;  %v664_v62 = vld [vmem:[%s6267_s2 + $0xe08] sm:$0xff]  ;;  %v4363_v4 = vcombine.high %v536_v60, %v540_v61 }
  0xdf   : > { %3565 = vmatprep.mubr.bf16.mxu0 %v4882_v36  ;;  %3606 = vmatprep.mubr.bf16.mxu1 %v4891_v39  ;;  %v668_v63 = vld [vmem:[%s6267_s2 + $0xe28] sm:$0xff] }
  0xe0   : > { %v4491_v5 = vcombine.high %v664_v62, %v668_v63  ;;  %v544_v6 = vld [vmem:[%s6267_s2 + $0xa48] sm:$0xff] }
  0xe1   : > { %3536 = vmatpush1.bf16.msra.mxu0 %v4306_v10  ;;  %3577 = vmatpush1.bf16.msra.mxu1 %v4434_v11  ;;  %v548_v7 = vld [vmem:[%s6267_s2 + $0xa68] sm:$0xff]  ;;  %v4362_v10 = vcombine.low %v536_v60, %v540_v61  ;;  %v4490_v11 = vcombine.low %v664_v62, %v668_v63 }
  0xe2   : > { %3537 = vmatprep.subr.bf16.mxu0 %v4315_v12  ;;  %3578 = vmatprep.subr.bf16.mxu1 %v4443_v13  ;;  %v672_v8 = vld [vmem:[%s6267_s2 + $0xe48] sm:$0xff]  ;;  %v4371_v12 = vcombine.high %v544_v6, %v548_v7 }
  0xe3   : > { %v676_v9 = vld [vmem:[%s6267_s2 + $0xe68] sm:$0xff] }
  0xe4   : > { %v4499_v13 = vcombine.high %v672_v8, %v676_v9  ;;  %v552_v14 = vld [vmem:[%s6267_s2 + $0xa88] sm:$0xff] }
  0xe5   : > { %3538 = vmatpush1.bf16.msra.mxu0 %v4314_v18  ;;  %3579 = vmatpush1.bf16.msra.mxu1 %v4442_v19  ;;  %v556_v15 = vld [vmem:[%s6267_s2 + $0xaa8] sm:$0xff]  ;;  %v4370_v18 = vcombine.low %v544_v6, %v548_v7  ;;  %v4498_v19 = vcombine.low %v672_v8, %v676_v9  ;;  %v217_v6 = vld [vmem:[%s6267_s2 + $0x10] sm:$0xff] }
  0xe6   : > { %3539 = vmatprep.subr.bf16.mxu0 %v4323_v20  ;;  %3580 = vmatprep.subr.bf16.mxu1 %v4451_v21  ;;  %v680_v16 = vld [vmem:[%s6267_s2 + $0xe88] sm:$0xff]  ;;  %v4379_v20 = vcombine.high %v552_v14, %v556_v15  ;;  %v221_v7 = vld [vmem:[%s6267_s2 + $0x30] sm:$0xff] }
  0xe7   : > { %v684_v17 = vld [vmem:[%s6267_s2 + $0xea8] sm:$0xff]  ;;  %v345_v8 = vld [vmem:[%s6267_s2 + $0x410] sm:$0xff] }
  0xe8   : > { %v4507_v21 = vcombine.high %v680_v16, %v684_v17  ;;  %v560_v22 = vld [vmem:[%s6267_s2 + $0xac8] sm:$0xff]  ;;  %v349_v9 = vld [vmem:[%s6267_s2 + $0x430] sm:$0xff] }
  0xe9   : > { %3540 = vmatpush1.bf16.msra.mxu0 %v4322_v27  ;;  %3581 = vmatpush1.bf16.msra.mxu1 %v4450_v29  ;;  %v564_v23 = vld [vmem:[%s6267_s2 + $0xae8] sm:$0xff]  ;;  %v4378_v27 = vcombine.low %v552_v14, %v556_v15  ;;  %v4506_v29 = vcombine.low %v680_v16, %v684_v17  ;;  %v225_v14 = vld [vmem:[%s6267_s2 + $0x50] sm:$0xff] }
  0xea   : > { %3541 = vmatprep.subr.bf16.mxu0 %v4331_v30  ;;  %3582 = vmatprep.subr.bf16.mxu1 %v4459_v31  ;;  %v688_v25 = vld [vmem:[%s6267_s2 + $0xec8] sm:$0xff]  ;;  %v4387_v30 = vcombine.high %v560_v22, %v564_v23  ;;  %v229_v15 = vld [vmem:[%s6267_s2 + $0x70] sm:$0xff] }
  0xeb   : > { %v692_v26 = vld [vmem:[%s6267_s2 + $0xee8] sm:$0xff]  ;;  %v353_v16 = vld [vmem:[%s6267_s2 + $0x450] sm:$0xff] }
  0xec   : > { %v4515_v31 = vcombine.high %v688_v25, %v692_v26  ;;  %v568_v32 = vld [vmem:[%s6267_s2 + $0xb08] sm:$0xff]  ;;  %v357_v17 = vld [vmem:[%s6267_s2 + $0x470] sm:$0xff] }
  0xed   : > { %3542 = vmatpush1.bf16.msra.mxu0 %v4330_v37  ;;  %3583 = vmatpush1.bf16.msra.mxu1 %v4458_v38  ;;  %v572_v33 = vld [vmem:[%s6267_s2 + $0xb28] sm:$0xff]  ;;  %v4386_v37 = vcombine.low %v560_v22, %v564_v23  ;;  %v4514_v38 = vcombine.low %v688_v25, %v692_v26  ;;  %v233_v22 = vld [vmem:[%s6267_s2 + $0x90] sm:$0xff] }
  0xee   : > { %3543 = vmatprep.subr.bf16.mxu0 %v4339_v40  ;;  %3584 = vmatprep.subr.bf16.mxu1 %v4467_v41  ;;  %v696_v34 = vld [vmem:[%s6267_s2 + $0xf08] sm:$0xff]  ;;  %v4395_v40 = vcombine.high %v568_v32, %v572_v33  ;;  %v237_v23 = vld [vmem:[%s6267_s2 + $0xb0] sm:$0xff] }
  0xef   : > { %v700_v35 = vld [vmem:[%s6267_s2 + $0xf28] sm:$0xff]  ;;  %v361_v25 = vld [vmem:[%s6267_s2 + $0x490] sm:$0xff] }
  0xf0   : > { %v4523_v41 = vcombine.high %v696_v34, %v700_v35  ;;  %v576_v42 = vld [vmem:[%s6267_s2 + $0xb48] sm:$0xff]  ;;  %v365_v26 = vld [vmem:[%s6267_s2 + $0x4b0] sm:$0xff] }
  0xf1   : > { %3544 = vmatpush1.bf16.msra.mxu0 %v4338_v48  ;;  %3585 = vmatpush1.bf16.msra.mxu1 %v4466_v49  ;;  %v580_v43 = vld [vmem:[%s6267_s2 + $0xb68] sm:$0xff]  ;;  %v4394_v48 = vcombine.low %v568_v32, %v572_v33  ;;  %v4522_v49 = vcombine.low %v696_v34, %v700_v35  ;;  %v241_v32 = vld [vmem:[%s6267_s2 + $0xd0] sm:$0xff] }
  0xf2   : > { %3545 = vmatprep.subr.bf16.mxu0 %v4347_v50  ;;  %3586 = vmatprep.subr.bf16.mxu1 %v4475_v51  ;;  %v704_v45 = vld [vmem:[%s6267_s2 + $0xf48] sm:$0xff]  ;;  %v4403_v50 = vcombine.high %v576_v42, %v580_v43  ;;  %v245_v33 = vld [vmem:[%s6267_s2 + $0xf0] sm:$0xff] }
  0xf3   : > { %v708_v46 = vld [vmem:[%s6267_s2 + $0xf68] sm:$0xff]  ;;  %v369_v34 = vld [vmem:[%s6267_s2 + $0x4d0] sm:$0xff] }
  0xf4   : > { %v4531_v51 = vcombine.high %v704_v45, %v708_v46  ;;  %v584_v52 = vld [vmem:[%s6267_s2 + $0xb88] sm:$0xff]  ;;  %v373_v35 = vld [vmem:[%s6267_s2 + $0x4f0] sm:$0xff] }
  0xf5   : > { %3546 = vmatpush1.bf16.msra.mxu0 %v4346_v56  ;;  %3587 = vmatpush1.bf16.msra.mxu1 %v4474_v57  ;;  %v588_v53 = vld [vmem:[%s6267_s2 + $0xba8] sm:$0xff]  ;;  %v4402_v56 = vcombine.low %v576_v42, %v580_v43  ;;  %v4530_v57 = vcombine.low %v704_v45, %v708_v46  ;;  %v249_v42 = vld [vmem:[%s6267_s2 + $0x110] sm:$0xff] }
  0xf6   : > { %3547 = vmatprep.subr.bf16.mxu0 %v4355_v58  ;;  %3588 = vmatprep.subr.bf16.mxu1 %v4483_v59  ;;  %v712_v54 = vld [vmem:[%s6267_s2 + $0xf88] sm:$0xff]  ;;  %v4411_v58 = vcombine.high %v584_v52, %v588_v53  ;;  %v253_v43 = vld [vmem:[%s6267_s2 + $0x130] sm:$0xff] }
  0xf7   : > { %v716_v55 = vld [vmem:[%s6267_s2 + $0xfa8] sm:$0xff]  ;;  %v377_v45 = vld [vmem:[%s6267_s2 + $0x510] sm:$0xff] }
  0xf8   : > { %v4539_v59 = vcombine.high %v712_v54, %v716_v55  ;;  %v592_v60 = vld [vmem:[%s6267_s2 + $0xbc8] sm:$0xff]  ;;  %v381_v46 = vld [vmem:[%s6267_s2 + $0x530] sm:$0xff] }
  0xf9   : > { %3548 = vmatpush1.bf16.msra.mxu0 %v4354_v0  ;;  %3589 = vmatpush1.bf16.msra.mxu1 %v4482_v1  ;;  %v596_v61 = vld [vmem:[%s6267_s2 + $0xbe8] sm:$0xff]  ;;  %v4410_v0 = vcombine.low %v584_v52, %v588_v53  ;;  %v4538_v1 = vcombine.low %v712_v54, %v716_v55  ;;  %v257_v52 = vld [vmem:[%s6267_s2 + $0x150] sm:$0xff] }
  0xfa   : > { %3549 = vmatprep.subr.bf16.mxu0 %v4363_v4  ;;  %3590 = vmatprep.subr.bf16.mxu1 %v4491_v5  ;;  %v720_v62 = vld [vmem:[%s6267_s2 + $0xfc8] sm:$0xff]  ;;  %v4419_v4 = vcombine.high %v592_v60, %v596_v61  ;;  %v261_v53 = vld [vmem:[%s6267_s2 + $0x170] sm:$0xff] }
  0xfb   : > { %v724_v63 = vld [vmem:[%s6267_s2 + $0xfe8] sm:$0xff]  ;;  %v385_v54 = vld [vmem:[%s6267_s2 + $0x550] sm:$0xff] }
  0xfc   : > { %v4547_v5 = vcombine.high %v720_v62, %v724_v63  ;;  %v389_v55 = vld [vmem:[%s6267_s2 + $0x570] sm:$0xff] }
  0xfd   : > { %3550 = vmatpush1.bf16.msra.mxu0 %v4362_v10  ;;  %3591 = vmatpush1.bf16.msra.mxu1 %v4490_v11  ;;  %v4418_v10 = vcombine.low %v592_v60, %v596_v61  ;;  %v4546_v11 = vcombine.low %v720_v62, %v724_v63  ;;  %v265_v60 = vld [vmem:[%s6267_s2 + $0x190] sm:$0xff] }
  0xfe   : > { %3551 = vmatprep.subr.bf16.mxu0 %v4371_v12  ;;  %3592 = vmatprep.subr.bf16.mxu1 %v4499_v13  ;;  %v4045_v12 = vcombine.high %v217_v6, %v221_v7  ;;  %v4173_v13 = vcombine.high %v345_v8, %v349_v9  ;;  %v269_v61 = vld [vmem:[%s6267_s2 + $0x1b0] sm:$0xff] }
  0xff   : > { %v393_v62 = vld [vmem:[%s6267_s2 + $0x590] sm:$0xff] }
 0x100   : > { %v397_v63 = vld [vmem:[%s6267_s2 + $0x5b0] sm:$0xff] }
 0x101   : > { %3552 = vmatpush1.bf16.msra.mxu0 %v4370_v18  ;;  %3593 = vmatpush1.bf16.msra.mxu1 %v4498_v19  ;;  %v4044_v18 = vcombine.low %v217_v6, %v221_v7  ;;  %v4172_v19 = vcombine.low %v345_v8, %v349_v9  ;;  %v4221_v6 = vcombine.high %v393_v62, %v397_v63  ;;  %v273_v7 = vld [vmem:[%s6267_s2 + $0x1d0] sm:$0xff] }
 0x102   : > { %3553 = vmatprep.subr.bf16.mxu0 %v4379_v20  ;;  %3594 = vmatprep.subr.bf16.mxu1 %v4507_v21  ;;  %v4053_v20 = vcombine.high %v225_v14, %v229_v15  ;;  %v4181_v21 = vcombine.high %v353_v16, %v357_v17  ;;  %v277_v8 = vld [vmem:[%s6267_s2 + $0x1f0] sm:$0xff] }
 0x105   : > { %3554 = vmatpush1.bf16.msra.mxu0 %v4378_v27  ;;  %3595 = vmatpush1.bf16.msra.mxu1 %v4506_v29  ;;  %v4052_v27 = vcombine.low %v225_v14, %v229_v15  ;;  %v4180_v29 = vcombine.low %v353_v16, %v357_v17  ;;  %v4092_v16 = vcombine.low %v265_v60, %v269_v61 }
 0x106   : > { %3555 = vmatprep.subr.bf16.mxu0 %v4387_v30  ;;  %3596 = vmatprep.subr.bf16.mxu1 %v4515_v31  ;;  %v4061_v30 = vcombine.high %v233_v22, %v237_v23  ;;  %v4189_v31 = vcombine.high %v361_v25, %v365_v26 }
 0x109   : > { %3556 = vmatpush1.bf16.msra.mxu0 %v4386_v37  ;;  %3597 = vmatpush1.bf16.msra.mxu1 %v4514_v38  ;;  %v4060_v37 = vcombine.low %v233_v22, %v237_v23  ;;  %v4188_v38 = vcombine.low %v361_v25, %v365_v26  ;;  %v281_v25 = vld [vmem:[%s6267_s2 + $0x210] sm:$0xff] }
 0x10a   : > { %3557 = vmatprep.subr.bf16.mxu0 %v4395_v40  ;;  %3598 = vmatprep.subr.bf16.mxu1 %v4523_v41  ;;  %v4069_v40 = vcombine.high %v241_v32, %v245_v33  ;;  %v4197_v41 = vcombine.high %v369_v34, %v373_v35  ;;  %v285_v26 = vld [vmem:[%s6267_s2 + $0x230] sm:$0xff] }
 0x10d   : > { %3558 = vmatpush1.bf16.msra.mxu0 %v4394_v48  ;;  %3599 = vmatpush1.bf16.msra.mxu1 %v4522_v49  ;;  %v4068_v48 = vcombine.low %v241_v32, %v245_v33  ;;  %v4196_v49 = vcombine.low %v369_v34, %v373_v35  ;;  %v4109_v32 = vcombine.high %v281_v25, %v285_v26  ;;  %v289_v34 = vld [vmem:[%s6267_s2 + $0x250] sm:$0xff] }
 0x10e   : > { %3559 = vmatprep.subr.bf16.mxu0 %v4403_v50  ;;  %3600 = vmatprep.subr.bf16.mxu1 %v4531_v51  ;;  %v4077_v50 = vcombine.high %v249_v42, %v253_v43  ;;  %v4205_v51 = vcombine.high %v377_v45, %v381_v46  ;;  %v293_v35 = vld [vmem:[%s6267_s2 + $0x270] sm:$0xff] }
 0x111   : > { %3560 = vmatpush1.bf16.msra.mxu0 %v4402_v56  ;;  %3601 = vmatpush1.bf16.msra.mxu1 %v4530_v57  ;;  %v4076_v56 = vcombine.low %v249_v42, %v253_v43  ;;  %v4204_v57 = vcombine.low %v377_v45, %v381_v46  ;;  %v4117_v42 = vcombine.high %v289_v34, %v293_v35  ;;  %v297_v45 = vld [vmem:[%s6267_s2 + $0x290] sm:$0xff] }
 0x112   : > { %3561 = vmatprep.subr.bf16.mxu0 %v4411_v58  ;;  %3602 = vmatprep.subr.bf16.mxu1 %v4539_v59  ;;  %v4085_v58 = vcombine.high %v257_v52, %v261_v53  ;;  %v4213_v59 = vcombine.high %v385_v54, %v389_v55  ;;  %v301_v46 = vld [vmem:[%s6267_s2 + $0x2b0] sm:$0xff] }
 0x115   : > { %3562 = vmatpush1.bf16.msra.mxu0 %v4410_v0  ;;  %3603 = vmatpush1.bf16.msra.mxu1 %v4538_v1  ;;  %v4084_v0 = vcombine.low %v257_v52, %v261_v53  ;;  %v4212_v1 = vcombine.low %v385_v54, %v389_v55  ;;  %v4125_v52 = vcombine.high %v297_v45, %v301_v46  ;;  %v305_v54 = vld [vmem:[%s6267_s2 + $0x2d0] sm:$0xff] }
 0x116   : > { %3563 = vmatprep.subr.bf16.mxu0 %v4419_v4  ;;  %3604 = vmatprep.subr.bf16.mxu1 %v4547_v5  ;;  %v4093_v4 = vcombine.high %v265_v60, %v269_v61  ;;  %v309_v55 = vld [vmem:[%s6267_s2 + $0x2f0] sm:$0xff] }
 0x117   : > { %v4133_v60 = vcombine.high %v305_v54, %v309_v55 }
 0x119   : > { %3564 = vmatpush1.bf16.msra.mxu0 %v4418_v10  ;;  %3605 = vmatpush1.bf16.msra.mxu1 %v4546_v11  ;;  %v401_v11 = vld [vmem:[%s6267_s2 + $0x5d0] sm:$0xff] }
 0x11a   : > { %3615 = vmatprep.subr.bf16.mxu0 %v4045_v12  ;;  %3656 = vmatprep.subr.bf16.mxu1 %v4173_v13  ;;  %v405_v12 = vld [vmem:[%s6267_s2 + $0x5f0] sm:$0xff] }
 0x11b   : > { %v4229_v23 = vcombine.high %v401_v11, %v405_v12 }
 0x11c   : > { %3566 = vmatmul.mubr.bf16.vlgmr.msra.gmra.mrb[12].mxu0 %v5070_v44  ;;  %3607 = vmatmul.mubr.bf16.vlgmr.msra.gmra.mrb[12].mxu1 %v5078_v47 }
 0x11d   : > { %3616 = vmatpush1.bf16.msra.mxu0 %v4044_v18  ;;  %3657 = vmatpush1.bf16.msra.mxu1 %v4172_v19 }
 0x11e   : > { %3617 = vmatprep.subr.bf16.mxu0 %v4053_v20  ;;  %3658 = vmatprep.subr.bf16.mxu1 %v4181_v21  ;;  %v4220_v20 = vcombine.low %v393_v62, %v397_v63  ;;  %v4101_v21 = vcombine.high %v273_v7, %v277_v8  ;;  %v313_v62 = vld [vmem:[%s6267_s2 + $0x310] sm:$0xff] }
 0x11f   : > { %3647 = vmatprep.mubr.bf16.mxu0 %v4740_v2  ;;  %3688 = vmatprep.mubr.bf16.mxu1 %v4742_v3  ;;  %v317_v63 = vld [vmem:[%s6267_s2 + $0x330] sm:$0xff] }
 0x121   : > { %3618 = vmatpush1.bf16.msra.mxu0 %v4052_v27  ;;  %3659 = vmatpush1.bf16.msra.mxu1 %v4180_v29  ;;  %v409_v27 = vld [vmem:[%s6267_s2 + $0x610] sm:$0xff] }
 0x122   : > { %3619 = vmatprep.subr.bf16.mxu0 %v4061_v30  ;;  %3660 = vmatprep.subr.bf16.mxu1 %v4189_v31  ;;  %v413_v29 = vld [vmem:[%s6267_s2 + $0x630] sm:$0xff]  ;;  %v4100_v30 = vcombine.low %v273_v7, %v277_v8  ;;  %v4228_v31 = vcombine.low %v401_v11, %v405_v12  ;;  %v4140_v12 = vcombine.low %v313_v62, %v317_v63 }
 0x123   : > { %v4237_v33 = vcombine.high %v409_v27, %v413_v29  ;;  %v321_v8 = vld [vmem:[%s6267_s2 + $0x350] sm:$0xff] }
 0x124   : > { %v453_v11 = vld [vmem:[%s6267_s2 + $0x770] sm:$0xff] }
 0x125   : > { %3620 = vmatpush1.bf16.msra.mxu0 %v4060_v37  ;;  %3661 = vmatpush1.bf16.msra.mxu1 %v4188_v38  ;;  %v417_v37 = vld [vmem:[%s6267_s2 + $0x650] sm:$0xff] }
 0x126   : > { %3621 = vmatprep.subr.bf16.mxu0 %v4069_v40  ;;  %3662 = vmatprep.subr.bf16.mxu1 %v4197_v41  ;;  %v421_v38 = vld [vmem:[%s6267_s2 + $0x670] sm:$0xff]  ;;  %v4108_v40 = vcombine.low %v281_v25, %v285_v26  ;;  %v4236_v41 = vcombine.low %v409_v27, %v413_v29 }
 0x127   : > { %v4245_v43 = vcombine.high %v417_v37, %v421_v38  ;;  %v337_v27 = vld [vmem:[%s6267_s2 + $0x3d0] sm:$0xff] }
 0x128   : > { %v341_v29 = vld [vmem:[%s6267_s2 + $0x3f0] sm:$0xff] }
 0x129   : > { %3622 = vmatpush1.bf16.msra.mxu0 %v4068_v48  ;;  %3663 = vmatpush1.bf16.msra.mxu1 %v4196_v49  ;;  %v425_v48 = vld [vmem:[%s6267_s2 + $0x690] sm:$0xff] }
 0x12a   : > { %3623 = vmatprep.subr.bf16.mxu0 %v4077_v50  ;;  %3664 = vmatprep.subr.bf16.mxu1 %v4205_v51  ;;  %v429_v49 = vld [vmem:[%s6267_s2 + $0x6b0] sm:$0xff]  ;;  %v4116_v50 = vcombine.low %v289_v34, %v293_v35  ;;  %v4244_v51 = vcombine.low %v417_v37, %v421_v38  ;;  %v4165_v34 = vcombine.high %v337_v27, %v341_v29 }
 0x12b   : > { %v4253_v53 = vcombine.high %v425_v48, %v429_v49  ;;  %v473_v37 = vld [vmem:[%s6267_s2 + $0x810] sm:$0xff] }
 0x12c   : > { %v477_v38 = vld [vmem:[%s6267_s2 + $0x830] sm:$0xff] }
 0x12d   : > { %3624 = vmatpush1.bf16.msra.mxu0 %v4076_v56  ;;  %3665 = vmatpush1.bf16.msra.mxu1 %v4204_v57  ;;  %v433_v56 = vld [vmem:[%s6267_s2 + $0x6d0] sm:$0xff] }
 0x12e   : > { %3625 = vmatprep.subr.bf16.mxu0 %v4085_v58  ;;  %3666 = vmatprep.subr.bf16.mxu1 %v4213_v59  ;;  %v3362_v9 = vpop.f32.mrb[0].mxu1  ;;  %v437_v57 = vld [vmem:[%s6267_s2 + $0x6f0] sm:$0xff]  ;;  %v4124_v58 = vcombine.low %v297_v45, %v301_v46  ;;  %v4252_v59 = vcombine.low %v425_v48, %v429_v49  ;;  %v4301_v45 = vcombine.high %v473_v37, %v477_v38 }
 0x12f   : > { %v3321_v5 = vpop.f32.mrb[0].mxu0  ;;  %v3364_v14 = vpop.f32.mrb[1].mxu1  ;;  %v4261_v61 = vcombine.high %v433_v56, %v437_v57  ;;  %v481_v48 = vld [vmem:[%s6267_s2 + $0x850] sm:$0xff] }
 0x130   : > { %v3323_v10 = vpop.f32.mrb[1].mxu0  ;;  %v5548_v13 = vadd.f32 %v3362_v9, %v3321_v5  ;;  %v3366_v18 = vpop.f32.mrb[2].mxu1  ;;  %v4260_v5 = vcombine.low %v433_v56, %v437_v57  ;;  %v325_v9 = vld [vmem:[%s6267_s2 + $0x370] sm:$0xff] }
 0x131   : > { %v3325_v15 = vpop.f32.mrb[2].mxu0  ;;  %3626 = vmatpush1.bf16.msra.mxu0 %v4084_v0  ;;  %v5550_v17 = vadd.f32 %v3364_v14, %v3323_v10  ;;  %3667 = vmatpush1.bf16.msra.mxu1 %v4212_v1  ;;  %v3367_v22 = vpop.f32.mrb[3].mxu1  ;;  %v441_v0 = vld [vmem:[%s6267_s2 + $0x710] sm:$0xff] }
 0x132   : > { %v3326_v19 = vpop.f32.mrb[3].mxu0  ;;  %3627 = vmatprep.subr.bf16.mxu0 %v4093_v4  ;;  %3668 = vmatprep.subr.bf16.mxu1 %v4221_v6  ;;  %v445_v1 = vld [vmem:[%s6267_s2 + $0x730] sm:$0xff]  ;;  %v4132_v4 = vcombine.low %v305_v54, %v309_v55  ;;  %v4141_v6 = vcombine.high %v313_v62, %v317_v63  ;;  %v4149_v15 = vcombine.high %v321_v8, %v325_v9 }
 0x133   : > { %v4269_v7 = vcombine.high %v441_v0, %v445_v1  ;;  %v449_v10 = vld [vmem:[%s6267_s2 + $0x750] sm:$0xff]  ;;  %v4268_v14 = vcombine.low %v441_v0, %v445_v1  ;;  %v4148_v22 = vcombine.low %v321_v8, %v325_v9 }
 0x134   : > { %v329_v18 = vld [vmem:[%s6267_s2 + $0x390] sm:$0xff] }
 0x135   : > { %3628 = vmatpush1.bf16.msra.mxu0 %v4092_v16  ;;  %3669 = vmatpush1.bf16.msra.mxu1 %v4220_v20  ;;  %v4277_v16 = vcombine.high %v449_v10, %v453_v11  ;;  %v333_v19 = vld [vmem:[%s6267_s2 + $0x3b0] sm:$0xff] }
 0x136   : > { %3629 = vmatprep.subr.bf16.mxu0 %v4101_v21  ;;  %3670 = vmatprep.subr.bf16.mxu1 %v4229_v23  ;;  %v457_v20 = vld [vmem:[%s6267_s2 + $0x790] sm:$0xff]  ;;  %v4276_v23 = vcombine.low %v449_v10, %v453_v11  ;;  %v4157_v25 = vcombine.high %v329_v18, %v333_v19 }
 0x137   : > { %v461_v21 = vld [vmem:[%s6267_s2 + $0x7b0] sm:$0xff] }
 0x138   : > { %v4285_v26 = vcombine.high %v457_v20, %v461_v21  ;;  %v485_v49 = vld [vmem:[%s6267_s2 + $0x870] sm:$0xff] }
 0x139   : > { %3630 = vmatpush1.bf16.msra.mxu0 %v4100_v30  ;;  %3671 = vmatpush1.bf16.msra.mxu1 %v4228_v31  ;;  %v465_v30 = vld [vmem:[%s6267_s2 + $0x7d0] sm:$0xff]  ;;  %v4309_v54 = vcombine.high %v481_v48, %v485_v49 }
 0x13a   : > { %3631 = vmatprep.subr.bf16.mxu0 %v4109_v32  ;;  %3672 = vmatprep.subr.bf16.mxu1 %v4237_v33  ;;  %v469_v31 = vld [vmem:[%s6267_s2 + $0x7f0] sm:$0xff]  ;;  %v4156_v32 = vcombine.low %v329_v18, %v333_v19  ;;  %v4284_v33 = vcombine.low %v457_v20, %v461_v21 }
 0x13b   : > { %v4293_v35 = vcombine.high %v465_v30, %v469_v31  ;;  %v489_v56 = vld [vmem:[%s6267_s2 + $0x890] sm:$0xff] }
 0x13c   : > { %v493_v57 = vld [vmem:[%s6267_s2 + $0x8b0] sm:$0xff] }
 0x13d   : > { %3632 = vmatpush1.bf16.msra.mxu0 %v4108_v40  ;;  %3673 = vmatpush1.bf16.msra.mxu1 %v4236_v41  ;;  %v601_v40 = vld [vmem:[%s6267_s2 + $0xc10] sm:$0xff]  ;;  %v4317_v62 = vcombine.high %v489_v56, %v493_v57 }
 0x13e   : > { %3633 = vmatprep.subr.bf16.mxu0 %v4117_v42  ;;  %3674 = vmatprep.subr.bf16.mxu1 %v4245_v43  ;;  %v605_v41 = vld [vmem:[%s6267_s2 + $0xc30] sm:$0xff]  ;;  %v4164_v42 = vcombine.low %v337_v27, %v341_v29  ;;  %v4292_v43 = vcombine.low %v465_v30, %v469_v31 }
 0x13f   : > { %v4429_v46 = vcombine.high %v601_v40, %v605_v41  ;;  %v497_v0 = vld [vmem:[%s6267_s2 + $0x8d0] sm:$0xff] }
 0x140   : > { %v501_v1 = vld [vmem:[%s6267_s2 + $0x8f0] sm:$0xff] }
 0x141   : > { %3634 = vmatpush1.bf16.msra.mxu0 %v4116_v50  ;;  %3675 = vmatpush1.bf16.msra.mxu1 %v4244_v51  ;;  %v609_v50 = vld [vmem:[%s6267_s2 + $0xc50] sm:$0xff]  ;;  %v4325_v8 = vcombine.high %v497_v0, %v501_v1 }
 0x142   : > { %3635 = vmatprep.subr.bf16.mxu0 %v4125_v52  ;;  %3676 = vmatprep.subr.bf16.mxu1 %v4253_v53  ;;  %v613_v51 = vld [vmem:[%s6267_s2 + $0xc70] sm:$0xff]  ;;  %v4300_v52 = vcombine.low %v473_v37, %v477_v38  ;;  %v4428_v53 = vcombine.low %v601_v40, %v605_v41 }
 0x143   : > { %v4437_v55 = vcombine.high %v609_v50, %v613_v51  ;;  %v505_v10 = vld [vmem:[%s6267_s2 + $0x910] sm:$0xff] }
 0x144   : > { %v509_v11 = vld [vmem:[%s6267_s2 + $0x930] sm:$0xff] }
 0x145   : > { %3636 = vmatpush1.bf16.msra.mxu0 %v4124_v58  ;;  %3677 = vmatpush1.bf16.msra.mxu1 %v4252_v59  ;;  %v617_v58 = vld [vmem:[%s6267_s2 + $0xc90] sm:$0xff]  ;;  %v4333_v18 = vcombine.high %v505_v10, %v509_v11 }
 0x146   : > { %3637 = vmatprep.subr.bf16.mxu0 %v4133_v60  ;;  %3678 = vmatprep.subr.bf16.mxu1 %v4261_v61  ;;  %v621_v59 = vld [vmem:[%s6267_s2 + $0xcb0] sm:$0xff]  ;;  %v4308_v60 = vcombine.low %v481_v48, %v485_v49  ;;  %v4436_v61 = vcombine.low %v609_v50, %v613_v51  ;;  %v199_v50 = vld [vmem:[%s4619_s18] sm:$0xff] }
 0x147   : > { %v4445_v63 = vcombine.high %v617_v58, %v621_v59  ;;  %v513_v20 = vld [vmem:[%s6267_s2 + $0x950] sm:$0xff] }
 0x148   : > { %v517_v21 = vld [vmem:[%s6267_s2 + $0x970] sm:$0xff] }
 0x149   : > { %3638 = vmatpush1.bf16.msra.mxu0 %v4132_v4  ;;  %3679 = vmatpush1.bf16.msra.mxu1 %v4260_v5  ;;  %v625_v4 = vld [vmem:[%s6267_s2 + $0xcd0] sm:$0xff]  ;;  %v4341_v27 = vcombine.high %v513_v20, %v517_v21 }
 0x14a   : > { %3639 = vmatprep.subr.bf16.mxu0 %v4141_v6  ;;  %3680 = vmatprep.subr.bf16.mxu1 %v4269_v7  ;;  %v629_v5 = vld [vmem:[%s6267_s2 + $0xcf0] sm:$0xff]  ;;  %v4316_v6 = vcombine.low %v489_v56, %v493_v57  ;;  %v4444_v7 = vcombine.low %v617_v58, %v621_v59  ;;  %v200_v56 = vld [vmem:[%s4619_s18 + $0x8] sm:$0xff] }
 0x14b   : > { %v4453_v9 = vcombine.high %v625_v4, %v629_v5  ;;  %v521_v30 = vld [vmem:[%s6267_s2 + $0x990] sm:$0xff] }
 0x14c   : > { %v525_v31 = vld [vmem:[%s6267_s2 + $0x9b0] sm:$0xff] }
 0x14d   : > { %3640 = vmatpush1.bf16.msra.mxu0 %v4140_v12  ;;  %3681 = vmatpush1.bf16.msra.mxu1 %v4268_v14  ;;  %v633_v12 = vld [vmem:[%s6267_s2 + $0xd10] sm:$0xff]  ;;  %v4349_v37 = vcombine.high %v521_v30, %v525_v31 }
 0x14e   : > { %3641 = vmatprep.subr.bf16.mxu0 %v4149_v15  ;;  %3682 = vmatprep.subr.bf16.mxu1 %v4277_v16  ;;  %v637_v14 = vld [vmem:[%s6267_s2 + $0xd30] sm:$0xff]  ;;  %v4324_v15 = vcombine.low %v497_v0, %v501_v1  ;;  %v4452_v16 = vcombine.low %v625_v4, %v629_v5 }
 0x14f   : > { %v4461_v19 = vcombine.high %v633_v12, %v637_v14  ;;  %v529_v41 = vld [vmem:[%s6267_s2 + $0x9d0] sm:$0xff] }
 0x150   : > { %v657_v48 = vld [vmem:[%s6267_s2 + $0xdd0] sm:$0xff] }
 0x151   : > { %3642 = vmatpush1.bf16.msra.mxu0 %v4148_v22  ;;  %3683 = vmatpush1.bf16.msra.mxu1 %v4276_v23  ;;  %v641_v22 = vld [vmem:[%s6267_s2 + $0xd50] sm:$0xff] }
 0x152   : > { %3643 = vmatprep.subr.bf16.mxu0 %v4157_v25  ;;  %3684 = vmatprep.subr.bf16.mxu1 %v4285_v26  ;;  %v645_v23 = vld [vmem:[%s6267_s2 + $0xd70] sm:$0xff]  ;;  %v4332_v25 = vcombine.low %v505_v10, %v509_v11  ;;  %v4460_v26 = vcombine.low %v633_v12, %v637_v14 }
 0x153   : > { %v4469_v29 = vcombine.high %v641_v22, %v645_v23  ;;  %v661_v49 = vld [vmem:[%s6267_s2 + $0xdf0] sm:$0xff] }
 0x154   : > { %v665_v1 = vld [vmem:[%s6267_s2 + $0xe10] sm:$0xff] }
 0x155   : > { %3644 = vmatpush1.bf16.msra.mxu0 %v4156_v32  ;;  %3685 = vmatpush1.bf16.msra.mxu1 %v4284_v33  ;;  %v649_v32 = vld [vmem:[%s6267_s2 + $0xd90] sm:$0xff] }
 0x156   : > { %3645 = vmatprep.subr.bf16.mxu0 %v4165_v34  ;;  %3686 = vmatprep.subr.bf16.mxu1 %v4293_v35  ;;  %v653_v33 = vld [vmem:[%s6267_s2 + $0xdb0] sm:$0xff]  ;;  %v4340_v34 = vcombine.low %v513_v20, %v517_v21  ;;  %v4468_v35 = vcombine.low %v641_v22, %v645_v23 }
 0x157   : > { %v4477_v40 = vcombine.high %v649_v32, %v653_v33  ;;  %v4476_v58 = vcombine.low %v649_v32, %v653_v33  ;;  %v669_v4 = vld [vmem:[%s6267_s2 + $0xe30] sm:$0xff] }
 0x158   : > { %v545_v10 = vld [vmem:[%s6267_s2 + $0xa50] sm:$0xff] }
 0x159   : > { %3646 = vmatpush1.bf16.msra.mxu0 %v4164_v42  ;;  %3687 = vmatpush1.bf16.msra.mxu1 %v4292_v43  ;;  %v533_v42 = vld [vmem:[%s6267_s2 + $0x9f0] sm:$0xff] }
 0x15a   : > { %3697 = vmatprep.subr.bf16.mxu0 %v4301_v45  ;;  %3738 = vmatprep.subr.bf16.mxu1 %v4429_v46  ;;  %v4357_v59 = vcombine.high %v529_v41, %v533_v42  ;;  %v549_v11 = vld [vmem:[%s6267_s2 + $0xa70] sm:$0xff] }
 0x15b   : > { %v673_v12 = vld [vmem:[%s6267_s2 + $0xe50] sm:$0xff] }
 0x15c   : > { %3648 = vmatmul.mubr.bf16.vlgmr.msra.gmra.mrb[16].mxu0 %v4866_v24  ;;  %3689 = vmatmul.mubr.bf16.vlgmr.msra.gmra.mrb[16].mxu1 %v4874_v28  ;;  %v677_v14 = vld [vmem:[%s6267_s2 + $0xe70] sm:$0xff] }
 0x15d   : > { %3698 = vmatpush1.bf16.msra.mxu0 %v4300_v52  ;;  %3739 = vmatpush1.bf16.msra.mxu1 %v4428_v53  ;;  %v553_v20 = vld [vmem:[%s6267_s2 + $0xa90] sm:$0xff] }
 0x15e   : > { %3699 = vmatprep.subr.bf16.mxu0 %v4309_v54  ;;  %3740 = vmatprep.subr.bf16.mxu1 %v4437_v55  ;;  %v4348_v54 = vcombine.low %v521_v30, %v525_v31  ;;  %v557_v21 = vld [vmem:[%s6267_s2 + $0xab0] sm:$0xff] }
 0x15f   : > { %3729 = vmatprep.mubr.bf16.mxu0 %v4882_v36  ;;  %3770 = vmatprep.mubr.bf16.mxu1 %v4891_v39  ;;  %v681_v22 = vld [vmem:[%s6267_s2 + $0xe90] sm:$0xff] }
 0x160   : > { %v685_v23 = vld [vmem:[%s6267_s2 + $0xeb0] sm:$0xff] }
 0x161   : > { %3700 = vmatpush1.bf16.msra.mxu0 %v4308_v60  ;;  %3741 = vmatpush1.bf16.msra.mxu1 %v4436_v61  ;;  %v561_v30 = vld [vmem:[%s6267_s2 + $0xad0] sm:$0xff] }
 0x162   : > { %3701 = vmatprep.subr.bf16.mxu0 %v4317_v62  ;;  %3742 = vmatprep.subr.bf16.mxu1 %v4445_v63  ;;  %v4485_v62 = vcombine.high %v657_v48, %v661_v49  ;;  %v541_v63 = vld [vmem:[%s6267_s2 + $0xa30] sm:$0xff] }
 0x163   : > { %v565_v31 = vld [vmem:[%s6267_s2 + $0xaf0] sm:$0xff] }
 0x164   : > { %v689_v33 = vld [vmem:[%s6267_s2 + $0xed0] sm:$0xff] }
 0x165   : > { %3702 = vmatpush1.bf16.msra.mxu0 %v4316_v6  ;;  %3743 = vmatpush1.bf16.msra.mxu1 %v4444_v7  ;;  %v4356_v6 = vcombine.low %v529_v41, %v533_v42  ;;  %v4484_v7 = vcombine.low %v657_v48, %v661_v49  ;;  %v569_v42 = vld [vmem:[%s6267_s2 + $0xb10] sm:$0xff]  ;;  %v4388_v48 = vcombine.low %v561_v30, %v565_v31 }
 0x166   : > { %3703 = vmatprep.subr.bf16.mxu0 %v4325_v8  ;;  %3744 = vmatprep.subr.bf16.mxu1 %v4453_v9  ;;  %v4493_v9 = vcombine.high %v665_v1, %v669_v4 }
 0x169   : > { %3704 = vmatpush1.bf16.msra.mxu0 %v4324_v15  ;;  %3745 = vmatpush1.bf16.msra.mxu1 %v4452_v16  ;;  %v4492_v16 = vcombine.low %v665_v1, %v669_v4  ;;  %v593_v4 = vld [vmem:[%s6267_s2 + $0xbd0] sm:$0xff] }
 0x16a   : > { %3705 = vmatprep.subr.bf16.mxu0 %v4333_v18  ;;  %3746 = vmatprep.subr.bf16.mxu1 %v4461_v19  ;;  %v4373_v18 = vcombine.high %v545_v10, %v549_v11  ;;  %v4501_v19 = vcombine.high %v673_v12, %v677_v14 }
 0x16d   : > { %3706 = vmatpush1.bf16.msra.mxu0 %v4332_v25  ;;  %3747 = vmatpush1.bf16.msra.mxu1 %v4460_v26  ;;  %v4372_v25 = vcombine.low %v545_v10, %v549_v11  ;;  %v4500_v26 = vcombine.low %v673_v12, %v677_v14  ;;  %v218_v12 = vld [vmem:[%s6267_s2 + $0x18] sm:$0xff] }
 0x16e   : > { %3707 = vmatprep.subr.bf16.mxu0 %v4341_v27  ;;  %3748 = vmatprep.subr.bf16.mxu1 %v4469_v29  ;;  %v4381_v27 = vcombine.high %v553_v20, %v557_v21  ;;  %v4509_v29 = vcombine.high %v681_v22, %v685_v23  ;;  %v222_v14 = vld [vmem:[%s6267_s2 + $0x38] sm:$0xff] }
 0x16f   : > { %v3403_v38 = vpop.f32.mrb[4].mxu0  ;;  %v3444_v45 = vpop.f32.mrb[4].mxu1 }
 0x170   : > { %v3404_v43 = vadd.f32 %v3403_v38, %v5548_v13  ;;  %v3405_v46 = vpop.f32.mrb[5].mxu0  ;;  %v3446_v52 = vpop.f32.mrb[5].mxu1  ;;  %v4508_v38 = vcombine.low %v681_v22, %v685_v23  ;;  %v226_v22 = vld [vmem:[%s6267_s2 + $0x58] sm:$0xff] }
 0x171   : > { %v3406_v51 = vadd.f32 %v3405_v46, %v5550_v17  ;;  %v3407_v53 = vpop.f32.mrb[6].mxu0  ;;  %3708 = vmatpush1.bf16.msra.mxu0 %v4340_v34  ;;  %v3448_v13 = vpop.f32.mrb[6].mxu1  ;;  %3749 = vmatpush1.bf16.msra.mxu1 %v4468_v35  ;;  %v537_v17 = vld [vmem:[%s6267_s2 + $0xa10] sm:$0xff]  ;;  %v230_v23 = vld [vmem:[%s6267_s2 + $0x78] sm:$0xff] }
 0x172   : > { %v3445_v55 = vadd.f32 %v3444_v45, %v3404_v43  ;;  %v3408_v57 = vpop.f32.mrb[7].mxu0  ;;  %3709 = vmatprep.subr.bf16.mxu0 %v4349_v37  ;;  %v3449_v61 = vpop.f32.mrb[7].mxu1  ;;  %3750 = vmatprep.subr.bf16.mxu1 %v4477_v40  ;;  %v4365_v8 = vcombine.high %v537_v17, %v541_v63  ;;  %v4364_v15 = vcombine.low %v537_v17, %v541_v63  ;;  %v693_v34 = vld [vmem:[%s6267_s2 + $0xef0] sm:$0xff] }
 0x173   : > { %v3447_v60 = vadd.f32 %v3446_v52, %v3406_v51  ;;  %v4380_v37 = vcombine.low %v553_v20, %v557_v21  ;;  %v4389_v40 = vcombine.high %v561_v30, %v565_v31  ;;  %v4517_v41 = vcombine.high %v689_v33, %v693_v34  ;;  %v573_v43 = vld [vmem:[%s6267_s2 + $0xb30] sm:$0xff] }
 0x174   : > { %v3943_v0 = vadd.f32 %v3445_v55, %v199_v50  ;;  %v697_v45 = vld [vmem:[%s6267_s2 + $0xf10] sm:$0xff]  ;;  %v4516_v49 = vcombine.low %v689_v33, %v693_v34  ;;  %v4397_v50 = vcombine.high %v569_v42, %v573_v43  ;;  %v4047_v20 = vcombine.high %v218_v12, %v222_v14  ;;  %v238_v33 = vld [vmem:[%s6267_s2 + $0xb8] sm:$0xff] }
 0x175   : > { %v3944_v5 = vadd.f32 %v3447_v60, %v200_v56  ;;  %3710 = vmatpush1.bf16.msra.mxu0 %v4348_v54  ;;  %3751 = vmatpush1.bf16.msra.mxu1 %v4476_v58  ;;  %v701_v46 = vld [vmem:[%s6267_s2 + $0xf30] sm:$0xff]  ;;  %v4396_v56 = vcombine.low %v569_v42, %v573_v43  ;;  %v4055_v30 = vcombine.high %v226_v22, %v230_v23  ;;  %v362_v34 = vld [vmem:[%s6267_s2 + $0x498] sm:$0xff] }
 0x176   : > { %4564 = vtanh.f32 %v3943_v0  ;;  %3711 = vmatprep.subr.bf16.mxu0 %v4357_v59  ;;  %3752 = vmatprep.subr.bf16.mxu1 %v4485_v62  ;;  %v4525_v51 = vcombine.high %v697_v45, %v701_v46  ;;  %v577_v52 = vld [vmem:[%s6267_s2 + $0xb50] sm:$0xff]  ;;  %v4524_v13 = vcombine.low %v697_v45, %v701_v46  ;;  %v242_v42 = vld [vmem:[%s6267_s2 + $0xd8] sm:$0xff] }
 0x177   : > { %4566 = vtanh.f32 %v3944_v5  ;;  %v581_v53 = vld [vmem:[%s6267_s2 + $0xb70] sm:$0xff]  ;;  %v246_v43 = vld [vmem:[%s6267_s2 + $0xf8] sm:$0xff] }
 0x178   : > { %v705_v54 = vld [vmem:[%s6267_s2 + $0xf50] sm:$0xff]  ;;  %v4405_v57 = vcombine.high %v577_v52, %v581_v53  ;;  %v4404_v17 = vcombine.low %v577_v52, %v581_v53  ;;  %v370_v45 = vld [vmem:[%s6267_s2 + $0x4d8] sm:$0xff] }
 0x179   : > { %3712 = vmatpush1.bf16.msra.mxu0 %v4356_v6  ;;  %3753 = vmatpush1.bf16.msra.mxu1 %v4484_v7  ;;  %v709_v55 = vld [vmem:[%s6267_s2 + $0xf70] sm:$0xff]  ;;  %v374_v46 = vld [vmem:[%s6267_s2 + $0x4f8] sm:$0xff] }
 0x17a   : > { %3713 = vmatprep.subr.bf16.mxu0 %v4365_v8  ;;  %3754 = vmatprep.subr.bf16.mxu1 %v4493_v9  ;;  %v4533_v58 = vcombine.high %v705_v54, %v709_v55  ;;  %v585_v59 = vld [vmem:[%s6267_s2 + $0xb90] sm:$0xff]  ;;  %v4532_v63 = vcombine.low %v705_v54, %v709_v55  ;;  %v254_v52 = vld [vmem:[%s6267_s2 + $0x138] sm:$0xff]  ;;  %v4070_v54 = vcombine.low %v242_v42, %v246_v43 }
 0x17b   : > { %v589_v60 = vld [vmem:[%s6267_s2 + $0xbb0] sm:$0xff]  ;;  %v382_v53 = vld [vmem:[%s6267_s2 + $0x538] sm:$0xff]  ;;  %v4198_v55 = vcombine.low %v370_v45, %v374_v46 }
 0x17c   : > { %v713_v61 = vld [vmem:[%s6267_s2 + $0xf90] sm:$0xff]  ;;  %v4413_v0 = vcombine.high %v585_v59, %v589_v60  ;;  %v4412_v8 = vcombine.low %v585_v59, %v589_v60  ;;  %v386_v59 = vld [vmem:[%s6267_s2 + $0x558] sm:$0xff] }
 0x17d   : > { %3714 = vmatpush1.bf16.msra.mxu0 %v4364_v15  ;;  %3755 = vmatpush1.bf16.msra.mxu1 %v4492_v16  ;;  %v717_v62 = vld [vmem:[%s6267_s2 + $0xfb0] sm:$0xff]  ;;  %v346_v15 = vld [vmem:[%s6267_s2 + $0x418] sm:$0xff] }
 0x17e   : > { %3715 = vmatprep.subr.bf16.mxu0 %v4373_v18  ;;  %3756 = vmatprep.subr.bf16.mxu1 %v4501_v19  ;;  %v4541_v1 = vcombine.high %v713_v61, %v717_v62  ;;  %v597_v5 = vld [vmem:[%s6267_s2 + $0xbf0] sm:$0xff]  ;;  %v4540_v9 = vcombine.low %v713_v61, %v717_v62  ;;  %v350_v16 = vld [vmem:[%s6267_s2 + $0x438] sm:$0xff] }
 0x17f   : > { %v721_v6 = vld [vmem:[%s6267_s2 + $0xfd0] sm:$0xff]  ;;  %v4421_v10 = vcombine.high %v593_v4, %v597_v5  ;;  %v4420_v18 = vcombine.low %v593_v4, %v597_v5  ;;  %v4175_v21 = vcombine.high %v346_v15, %v350_v16  ;;  %v390_v60 = vld [vmem:[%s6267_s2 + $0x578] sm:$0xff] }
 0x180   : > { %v4565_v32 = vpop.eup %4564  ;;  %v725_v7 = vld [vmem:[%s6267_s2 + $0xff0] sm:$0xff]  ;;  %v394_v4 = vld [vmem:[%s6267_s2 + $0x598] sm:$0xff] }
 0x181   : > { %v4567_v35 = vpop.eup %4566  ;;  %3959 = vst [vmem:[#allocation2] sm:$0xff] %v4565_v32  ;;  %3967 = vst [vmem:[%s4624_s21] sm:$0xff] %v4565_v32  ;;  %3716 = vmatpush1.bf16.msra.mxu0 %v4372_v25  ;;  %3757 = vmatpush1.bf16.msra.mxu1 %v4500_v26  ;;  %v4549_v11 = vcombine.high %v721_v6, %v725_v7  ;;  %v4548_v19 = vcombine.low %v721_v6, %v725_v7  ;;  %v354_v25 = vld [vmem:[%s6267_s2 + $0x458] sm:$0xff] }
 0x182   : > { %3960 = vst [vmem:[#allocation2 + $0x8] sm:$0xff] %v4567_v35  ;;  %3968 = vst [vmem:[%s4624_s21 + $0x8] sm:$0xff] %v4567_v35  ;;  %3717 = vmatprep.subr.bf16.mxu0 %v4381_v27  ;;  %3758 = vmatprep.subr.bf16.mxu1 %v4509_v29  ;;  %v358_v26 = vld [vmem:[%s6267_s2 + $0x478] sm:$0xff]  ;;  %v4046_v27 = vcombine.low %v218_v12, %v222_v14  ;;  %v4174_v29 = vcombine.low %v346_v15, %v350_v16 }
 0x183   : > { %v4183_v31 = vcombine.high %v354_v25, %v358_v26  ;;  %v234_v32 = vld [vmem:[%s6267_s2 + $0x98] sm:$0xff]  ;;  %v4214_v7 = vcombine.low %v386_v59, %v390_v60 }
 0x184   : > { %v366_v35 = vld [vmem:[%s6267_s2 + $0x4b8] sm:$0xff] }
 0x185   : > { %3718 = vmatpush1.bf16.msra.mxu0 %v4380_v37  ;;  %3759 = vmatpush1.bf16.msra.mxu1 %v4508_v38  ;;  %v4054_v37 = vcombine.low %v226_v22, %v230_v23  ;;  %v4182_v38 = vcombine.low %v354_v25, %v358_v26  ;;  %v398_v5 = vld [vmem:[%s6267_s2 + $0x5b8] sm:$0xff] }
 0x186   : > { %3719 = vmatprep.subr.bf16.mxu0 %v4389_v40  ;;  %3760 = vmatprep.subr.bf16.mxu1 %v4517_v41  ;;  %v4063_v40 = vcombine.high %v234_v32, %v238_v33  ;;  %v4191_v41 = vcombine.high %v362_v34, %v366_v35  ;;  %v278_v12 = vld [vmem:[%s6267_s2 + $0x1f8] sm:$0xff] }
 0x187   : > { %v402_v16 = vld [vmem:[%s6267_s2 + $0x5d8] sm:$0xff] }
 0x189   : > { %3720 = vmatpush1.bf16.msra.mxu0 %v4388_v48  ;;  %3761 = vmatpush1.bf16.msra.mxu1 %v4516_v49  ;;  %v4062_v48 = vcombine.low %v234_v32, %v238_v33  ;;  %v4190_v49 = vcombine.low %v362_v34, %v366_v35  ;;  %v282_v32 = vld [vmem:[%s6267_s2 + $0x218] sm:$0xff] }
 0x18a   : > { %3721 = vmatprep.subr.bf16.mxu0 %v4397_v50  ;;  %3762 = vmatprep.subr.bf16.mxu1 %v4525_v51  ;;  %v4071_v50 = vcombine.high %v242_v42, %v246_v43  ;;  %v4199_v51 = vcombine.high %v370_v45, %v374_v46  ;;  %v286_v33 = vld [vmem:[%s6267_s2 + $0x238] sm:$0xff] }
 0x18b   : > { %v410_v34 = vld [vmem:[%s6267_s2 + $0x618] sm:$0xff] }
 0x18c   : > { %v414_v35 = vld [vmem:[%s6267_s2 + $0x638] sm:$0xff] }
 0x18d   : > { %3722 = vmatpush1.bf16.msra.mxu0 %v4396_v56  ;;  %3763 = vmatpush1.bf16.msra.mxu1 %v4524_v13  ;;  %v290_v42 = vld [vmem:[%s6267_s2 + $0x258] sm:$0xff] }
 0x18e   : > { %3723 = vmatprep.subr.bf16.mxu0 %v4405_v57  ;;  %3764 = vmatprep.subr.bf16.mxu1 %v4533_v58  ;;  %v258_v57 = vld [vmem:[%s6267_s2 + $0x158] sm:$0xff] }
 0x18f   : > { %v262_v58 = vld [vmem:[%s6267_s2 + $0x178] sm:$0xff] }
 0x190   : > { %v4086_v6 = vcombine.low %v258_v57, %v262_v58  ;;  %v294_v43 = vld [vmem:[%s6267_s2 + $0x278] sm:$0xff] }
 0x191   : > { %3724 = vmatpush1.bf16.msra.mxu0 %v4404_v17  ;;  %3765 = vmatpush1.bf16.msra.mxu1 %v4532_v63  ;;  %v4087_v17 = vcombine.high %v258_v57, %v262_v58  ;;  %v4215_v63 = vcombine.high %v386_v59, %v390_v60  ;;  %v418_v45 = vld [vmem:[%s6267_s2 + $0x658] sm:$0xff] }
 0x192   : > { %3725 = vmatprep.subr.bf16.mxu0 %v4413_v0  ;;  %3766 = vmatprep.subr.bf16.mxu1 %v4541_v1  ;;  %v266_v0 = vld [vmem:[%s6267_s2 + $0x198] sm:$0xff] }
 0x193   : > { %v270_v1 = vld [vmem:[%s6267_s2 + $0x1b8] sm:$0xff] }
 0x194   : > { %v4094_v22 = vcombine.low %v266_v0, %v270_v1  ;;  %v422_v46 = vld [vmem:[%s6267_s2 + $0x678] sm:$0xff] }
 0x195   : > { %3726 = vmatpush1.bf16.msra.mxu0 %v4412_v8  ;;  %3767 = vmatpush1.bf16.msra.mxu1 %v4540_v9  ;;  %v4095_v8 = vcombine.high %v266_v0, %v270_v1  ;;  %v306_v57 = vld [vmem:[%s6267_s2 + $0x2d8] sm:$0xff] }
 0x196   : > { %3727 = vmatprep.subr.bf16.mxu0 %v4421_v10  ;;  %3768 = vmatprep.subr.bf16.mxu1 %v4549_v11  ;;  %v4223_v10 = vcombine.high %v394_v4, %v398_v5  ;;  %v274_v11 = vld [vmem:[%s6267_s2 + $0x1d8] sm:$0xff] }
 0x197   : > { %v310_v58 = vld [vmem:[%s6267_s2 + $0x2f8] sm:$0xff] }
 0x198   : > { %v434_v59 = vld [vmem:[%s6267_s2 + $0x6d8] sm:$0xff] }
 0x199   : > { %3728 = vmatpush1.bf16.msra.mxu0 %v4420_v18  ;;  %3769 = vmatpush1.bf16.msra.mxu1 %v4548_v19  ;;  %v406_v18 = vld [vmem:[%s6267_s2 + $0x5f8] sm:$0xff] }
 0x19a   : > { %3779 = vmatprep.subr.bf16.mxu0 %v4047_v20  ;;  %3820 = vmatprep.subr.bf16.mxu1 %v4175_v21  ;;  %v438_v60 = vld [vmem:[%s6267_s2 + $0x6f8] sm:$0xff] }
 0x19b   : > { %v314_v0 = vld [vmem:[%s6267_s2 + $0x318] sm:$0xff] }
 0x19c   : > { %3730 = vmatmul.mubr.bf16.vlgmr.msra.gmra.mrb[20].mxu0 %v5070_v44  ;;  %3771 = vmatmul.mubr.bf16.vlgmr.msra.gmra.mrb[20].mxu1 %v5078_v47  ;;  %v318_v1 = vld [vmem:[%s6267_s2 + $0x338] sm:$0xff] }
 0x19d   : > { %3780 = vmatpush1.bf16.msra.mxu0 %v4046_v27  ;;  %3821 = vmatpush1.bf16.msra.mxu1 %v4174_v29  ;;  %v4222_v27 = vcombine.low %v394_v4, %v398_v5  ;;  %v4103_v29 = vcombine.high %v274_v11, %v278_v12  ;;  %v442_v4 = vld [vmem:[%s6267_s2 + $0x718] sm:$0xff] }
 0x19e   : > { %3781 = vmatprep.subr.bf16.mxu0 %v4055_v30  ;;  %3822 = vmatprep.subr.bf16.mxu1 %v4183_v31  ;;  %v4231_v31 = vcombine.high %v402_v16, %v406_v18  ;;  %v446_v5 = vld [vmem:[%s6267_s2 + $0x738] sm:$0xff] }
 0x19f   : > { %3811 = vmatprep.mubr.bf16.mxu0 %v4740_v2  ;;  %3852 = vmatprep.mubr.bf16.mxu1 %v4742_v3  ;;  %v250_v2 = vld [vmem:[%s6267_s2 + $0x118] sm:$0xff] }
 0x1a0   : > { %v378_v3 = vld [vmem:[%s6267_s2 + $0x518] sm:$0xff]  ;;  %v4079_v56 = vcombine.high %v250_v2, %v254_v52  ;;  %v4078_v61 = vcombine.low %v250_v2, %v254_v52 }
 0x1a1   : > { %3782 = vmatpush1.bf16.msra.mxu0 %v4054_v37  ;;  %3823 = vmatpush1.bf16.msra.mxu1 %v4182_v38  ;;  %v4207_v13 = vcombine.high %v378_v3, %v382_v53  ;;  %v4206_v62 = vcombine.low %v378_v3, %v382_v53  ;;  %v4102_v37 = vcombine.low %v274_v11, %v278_v12  ;;  %v298_v2 = vld [vmem:[%s6267_s2 + $0x298] sm:$0xff] }
 0x1a2   : > { %3783 = vmatprep.subr.bf16.mxu0 %v4063_v40  ;;  %3824 = vmatprep.subr.bf16.mxu1 %v4191_v41  ;;  %v4230_v38 = vcombine.low %v402_v16, %v406_v18  ;;  %v4111_v40 = vcombine.high %v282_v32, %v286_v33  ;;  %v4239_v41 = vcombine.high %v410_v34, %v414_v35  ;;  %v302_v52 = vld [vmem:[%s6267_s2 + $0x2b8] sm:$0xff] }
 0x1a3   : > { %v426_v3 = vld [vmem:[%s6267_s2 + $0x698] sm:$0xff]  ;;  %v4270_v16 = vcombine.low %v442_v4, %v446_v5 }
 0x1a4   : > { %v430_v53 = vld [vmem:[%s6267_s2 + $0x6b8] sm:$0xff] }
 0x1a5   : > { %3784 = vmatpush1.bf16.msra.mxu0 %v4062_v48  ;;  %3825 = vmatpush1.bf16.msra.mxu1 %v4190_v49  ;;  %v4110_v48 = vcombine.low %v282_v32, %v286_v33  ;;  %v4238_v49 = vcombine.low %v410_v34, %v414_v35  ;;  %v326_v11 = vld [vmem:[%s6267_s2 + $0x378] sm:$0xff] }
 0x1a6   : > { %3785 = vmatprep.subr.bf16.mxu0 %v4071_v50  ;;  %3826 = vmatprep.subr.bf16.mxu1 %v4199_v51  ;;  %v4119_v50 = vcombine.high %v290_v42, %v294_v43  ;;  %v4247_v51 = vcombine.high %v418_v45, %v422_v46  ;;  %v450_v12 = vld [vmem:[%s6267_s2 + $0x758] sm:$0xff] }
 0x1a7   : > { %v338_v32 = vld [vmem:[%s6267_s2 + $0x3d8] sm:$0xff] }
 0x1a8   : > { %v342_v33 = vld [vmem:[%s6267_s2 + $0x3f8] sm:$0xff] }
 0x1a9   : > { %3786 = vmatpush1.bf16.msra.mxu0 %v4070_v54  ;;  %3827 = vmatpush1.bf16.msra.mxu1 %v4198_v55  ;;  %v4118_v54 = vcombine.low %v290_v42, %v294_v43  ;;  %v4246_v55 = vcombine.low %v418_v45, %v422_v46  ;;  %v466_v34 = vld [vmem:[%s6267_s2 + $0x7d8] sm:$0xff] }
 0x1aa   : > { %3787 = vmatprep.subr.bf16.mxu0 %v4079_v56  ;;  %3828 = vmatprep.subr.bf16.mxu1 %v4207_v13  ;;  %v4127_v56 = vcombine.high %v298_v2, %v302_v52  ;;  %v4255_v13 = vcombine.high %v426_v3, %v430_v53  ;;  %v470_v35 = vld [vmem:[%s6267_s2 + $0x7f8] sm:$0xff] }
 0x1ab   : > { %v474_v42 = vld [vmem:[%s6267_s2 + $0x818] sm:$0xff] }
 0x1ac   : > { %v478_v43 = vld [vmem:[%s6267_s2 + $0x838] sm:$0xff] }
 0x1ad   : > { %3788 = vmatpush1.bf16.msra.mxu0 %v4078_v61  ;;  %3829 = vmatpush1.bf16.msra.mxu1 %v4206_v62  ;;  %v4126_v61 = vcombine.low %v298_v2, %v302_v52  ;;  %v4254_v62 = vcombine.low %v426_v3, %v430_v53  ;;  %v602_v45 = vld [vmem:[%s6267_s2 + $0xc18] sm:$0xff] }
 0x1ae   : > { %3789 = vmatprep.subr.bf16.mxu0 %v4087_v17  ;;  %3830 = vmatprep.subr.bf16.mxu1 %v4215_v63  ;;  %v4135_v17 = vcombine.high %v306_v57, %v310_v58  ;;  %v4263_v63 = vcombine.high %v434_v59, %v438_v60  ;;  %v606_v46 = vld [vmem:[%s6267_s2 + $0xc38] sm:$0xff] }
 0x1af   : > { %v3485_v9 = vpop.f32.mrb[8].mxu0  ;;  %v3526_v14 = vpop.f32.mrb[8].mxu1  ;;  %v482_v2 = vld [vmem:[%s6267_s2 + $0x858] sm:$0xff] }
 0x1b0   : > { %v3487_v15 = vpop.f32.mrb[9].mxu0  ;;  %v5950_v19 = vadd.f32 %v3526_v14, %v3485_v9  ;;  %v3528_v20 = vpop.f32.mrb[9].mxu1  ;;  %v4271_v9 = vcombine.high %v442_v4, %v446_v5  ;;  %v454_v14 = vld [vmem:[%s6267_s2 + $0x778] sm:$0xff] }
 0x1b1   : > { %v3489_v21 = vpop.f32.mrb[10].mxu0  ;;  %3790 = vmatpush1.bf16.msra.mxu0 %v4086_v6  ;;  %v5952_v23 = vadd.f32 %v3528_v20, %v3487_v15  ;;  %v3530_v25 = vpop.f32.mrb[10].mxu1  ;;  %3831 = vmatpush1.bf16.msra.mxu1 %v4214_v7  ;;  %v4134_v6 = vcombine.low %v306_v57, %v310_v58  ;;  %v4262_v7 = vcombine.low %v434_v59, %v438_v60  ;;  %v486_v52 = vld [vmem:[%s6267_s2 + $0x878] sm:$0xff] }
 0x1b2   : > { %v3490_v26 = vpop.f32.mrb[11].mxu0  ;;  %3791 = vmatprep.subr.bf16.mxu0 %v4095_v8  ;;  %v3531_v30 = vpop.f32.mrb[11].mxu1  ;;  %3832 = vmatprep.subr.bf16.mxu1 %v4223_v10  ;;  %v4143_v8 = vcombine.high %v314_v0, %v318_v1  ;;  %v322_v10 = vld [vmem:[%s6267_s2 + $0x358] sm:$0xff]  ;;  %v4142_v15 = vcombine.low %v314_v0, %v318_v1  ;;  %v4279_v20 = vcombine.high %v450_v12, %v454_v14 }
 0x1b3   : > { %v4151_v18 = vcombine.high %v322_v10, %v326_v11  ;;  %v330_v21 = vld [vmem:[%s6267_s2 + $0x398] sm:$0xff] }
 0x1b4   : > { %v458_v25 = vld [vmem:[%s6267_s2 + $0x798] sm:$0xff] }
 0x1b5   : > { %3792 = vmatpush1.bf16.msra.mxu0 %v4094_v22  ;;  %3833 = vmatpush1.bf16.msra.mxu1 %v4222_v27  ;;  %v334_v22 = vld [vmem:[%s6267_s2 + $0x3b8] sm:$0xff]  ;;  %v4150_v27 = vcombine.low %v322_v10, %v326_v11 }
 0x1b6   : > { %3793 = vmatprep.subr.bf16.mxu0 %v4103_v29  ;;  %3834 = vmatprep.subr.bf16.mxu1 %v4231_v31  ;;  %v462_v26 = vld [vmem:[%s6267_s2 + $0x7b8] sm:$0xff]  ;;  %v4278_v29 = vcombine.low %v450_v12, %v454_v14  ;;  %v4159_v30 = vcombine.high %v330_v21, %v334_v22 }
 0x1b7   : > { %v4287_v31 = vcombine.high %v458_v25, %v462_v26  ;;  %v610_v3 = vld [vmem:[%s6267_s2 + $0xc58] sm:$0xff] }
 0x1b8   : > { %v614_v53 = vld [vmem:[%s6267_s2 + $0xc78] sm:$0xff] }
 0x1b9   : > { %3794 = vmatpush1.bf16.msra.mxu0 %v4102_v37  ;;  %3835 = vmatpush1.bf16.msra.mxu1 %v4230_v38  ;;  %v4158_v37 = vcombine.low %v330_v21, %v334_v22  ;;  %v4286_v38 = vcombine.low %v458_v25, %v462_v26  ;;  %v490_v57 = vld [vmem:[%s6267_s2 + $0x898] sm:$0xff] }
 0x1ba   : > { %3795 = vmatprep.subr.bf16.mxu0 %v4111_v40  ;;  %3836 = vmatprep.subr.bf16.mxu1 %v4239_v41  ;;  %v4167_v40 = vcombine.high %v338_v32, %v342_v33  ;;  %v4295_v41 = vcombine.high %v466_v34, %v470_v35  ;;  %v494_v58 = vld [vmem:[%s6267_s2 + $0x8b8] sm:$0xff] }
 0x1bb   : > { %v618_v59 = vld [vmem:[%s6267_s2 + $0xc98] sm:$0xff]  ;;  %v4318_v4 = vcombine.low %v490_v57, %v494_v58 }
 0x1bc   : > { %v622_v60 = vld [vmem:[%s6267_s2 + $0xcb8] sm:$0xff] }
 0x1bd   : > { %3796 = vmatpush1.bf16.msra.mxu0 %v4110_v48  ;;  %3837 = vmatpush1.bf16.msra.mxu1 %v4238_v49  ;;  %v4166_v48 = vcombine.low %v338_v32, %v342_v33  ;;  %v4294_v49 = vcombine.low %v466_v34, %v470_v35  ;;  %v502_v0 = vld [vmem:[%s6267_s2 + $0x8f8] sm:$0xff]  ;;  %v4446_v5 = vcombine.low %v618_v59, %v622_v60 }
 0x1be   : > { %3797 = vmatprep.subr.bf16.mxu0 %v4119_v50  ;;  %3838 = vmatprep.subr.bf16.mxu1 %v4247_v51  ;;  %v4303_v50 = vcombine.high %v474_v42, %v478_v43  ;;  %v4431_v51 = vcombine.high %v602_v45, %v606_v46  ;;  %v630_v1 = vld [vmem:[%s6267_s2 + $0xcf8] sm:$0xff] }
 0x1c1   : > { %3798 = vmatpush1.bf16.msra.mxu0 %v4118_v54  ;;  %3839 = vmatpush1.bf16.msra.mxu1 %v4246_v55  ;;  %v4302_v54 = vcombine.low %v474_v42, %v478_v43  ;;  %v4430_v55 = vcombine.low %v602_v45, %v606_v46  ;;  %v658_v45 = vld [vmem:[%s6267_s2 + $0xdd8] sm:$0xff] }
 0x1c2   : > { %3799 = vmatprep.subr.bf16.mxu0 %v4127_v56  ;;  %3840 = vmatprep.subr.bf16.mxu1 %v4255_v13  ;;  %v4311_v56 = vcombine.high %v482_v2, %v486_v52  ;;  %v4439_v13 = vcombine.high %v610_v3, %v614_v53  ;;  %v662_v46 = vld [vmem:[%s6267_s2 + $0xdf8] sm:$0xff] }
 0x1c5   : > { %3800 = vmatpush1.bf16.msra.mxu0 %v4126_v61  ;;  %3841 = vmatpush1.bf16.msra.mxu1 %v4254_v62  ;;  %v4310_v61 = vcombine.low %v482_v2, %v486_v52  ;;  %v4438_v62 = vcombine.low %v610_v3, %v614_v53  ;;  %v202_v3 = vld [vmem:[%s4619_s18 + $0x18] sm:$0xff] }
 0x1c6   : > { %3801 = vmatprep.subr.bf16.mxu0 %v4135_v17  ;;  %3842 = vmatprep.subr.bf16.mxu1 %v4263_v63  ;;  %v4319_v17 = vcombine.high %v490_v57, %v494_v58  ;;  %v4447_v63 = vcombine.high %v618_v59, %v622_v60  ;;  %v4487_v57 = vcombine.high %v658_v45, %v662_v46  ;;  %v542_v58 = vld [vmem:[%s6267_s2 + $0xa38] sm:$0xff] }
 0x1c7   : > { %v666_v60 = vld [vmem:[%s6267_s2 + $0xe18] sm:$0xff] }
 0x1c9   : > { %3802 = vmatpush1.bf16.msra.mxu0 %v4134_v6  ;;  %3843 = vmatpush1.bf16.msra.mxu1 %v4262_v7 }
 0x1ca   : > { %3803 = vmatprep.subr.bf16.mxu0 %v4143_v8  ;;  %3844 = vmatprep.subr.bf16.mxu1 %v4271_v9  ;;  %v510_v8 = vld [vmem:[%s6267_s2 + $0x938] sm:$0xff] }
 0x1cb   : > { %v638_v9 = vld [vmem:[%s6267_s2 + $0xd38] sm:$0xff] }
 0x1cd   : > { %3804 = vmatpush1.bf16.msra.mxu0 %v4142_v15  ;;  %3845 = vmatpush1.bf16.msra.mxu1 %v4270_v16  ;;  %v514_v15 = vld [vmem:[%s6267_s2 + $0x958] sm:$0xff] }
 0x1ce   : > { %3805 = vmatprep.subr.bf16.mxu0 %v4151_v18  ;;  %3846 = vmatprep.subr.bf16.mxu1 %v4279_v20  ;;  %v518_v16 = vld [vmem:[%s6267_s2 + $0x978] sm:$0xff] }
 0x1cf   : > { %v642_v18 = vld [vmem:[%s6267_s2 + $0xd58] sm:$0xff]  ;;  %v4343_v25 = vcombine.high %v514_v15, %v518_v16  ;;  %v4342_v32 = vcombine.low %v514_v15, %v518_v16 }
 0x1d0   : > { %v646_v20 = vld [vmem:[%s6267_s2 + $0xd78] sm:$0xff] }
 0x1d1   : > { %3806 = vmatpush1.bf16.msra.mxu0 %v4150_v27  ;;  %3847 = vmatpush1.bf16.msra.mxu1 %v4278_v29  ;;  %v4471_v26 = vcombine.high %v642_v18, %v646_v20  ;;  %v522_v27 = vld [vmem:[%s6267_s2 + $0x998] sm:$0xff]  ;;  %v4470_v33 = vcombine.low %v642_v18, %v646_v20 }
 0x1d2   : > { %3807 = vmatprep.subr.bf16.mxu0 %v4159_v30  ;;  %3848 = vmatprep.subr.bf16.mxu1 %v4287_v31  ;;  %v526_v29 = vld [vmem:[%s6267_s2 + $0x9b8] sm:$0xff] }
 0x1d3   : > { %v650_v30 = vld [vmem:[%s6267_s2 + $0xd98] sm:$0xff]  ;;  %v4351_v34 = vcombine.high %v522_v27, %v526_v29  ;;  %v4350_v2 = vcombine.low %v522_v27, %v526_v29 }
 0x1d4   : > { %v654_v31 = vld [vmem:[%s6267_s2 + $0xdb8] sm:$0xff] }
 0x1d5   : > { %3808 = vmatpush1.bf16.msra.mxu0 %v4158_v37  ;;  %3849 = vmatpush1.bf16.msra.mxu1 %v4286_v38  ;;  %v4479_v37 = vcombine.high %v650_v30, %v654_v31  ;;  %v530_v38 = vld [vmem:[%s6267_s2 + $0x9d8] sm:$0xff] }
 0x1d6   : > { %3809 = vmatprep.subr.bf16.mxu0 %v4167_v40  ;;  %3850 = vmatprep.subr.bf16.mxu1 %v4295_v41  ;;  %v534_v40 = vld [vmem:[%s6267_s2 + $0x9f8] sm:$0xff] }
 0x1d7   : > { %v562_v18 = vld [vmem:[%s6267_s2 + $0xad8] sm:$0xff] }
 0x1d8   : > { %v566_v20 = vld [vmem:[%s6267_s2 + $0xaf8] sm:$0xff] }
 0x1d9   : > { %3810 = vmatpush1.bf16.msra.mxu0 %v4166_v48  ;;  %3851 = vmatpush1.bf16.msra.mxu1 %v4294_v49  ;;  %v201_v48 = vld [vmem:[%s4619_s18 + $0x10] sm:$0xff] }
 0x1da   : > { %3861 = vmatprep.subr.bf16.mxu0 %v4303_v50  ;;  %3902 = vmatprep.subr.bf16.mxu1 %v4431_v51 }
 0x1dc   : > { %3812 = vmatmul.mubr.bf16.vlgmr.msra.gmra.mrb[24].mxu0 %v4866_v24  ;;  %3853 = vmatmul.mubr.bf16.vlgmr.msra.gmra.mrb[24].mxu1 %v4874_v28  ;;  %v498_v24 = vld [vmem:[%s6267_s2 + $0x8d8] sm:$0xff] }
 0x1dd   : > { %3862 = vmatpush1.bf16.msra.mxu0 %v4302_v54  ;;  %3903 = vmatpush1.bf16.msra.mxu1 %v4430_v55  ;;  %v626_v28 = vld [vmem:[%s6267_s2 + $0xcd8] sm:$0xff]  ;;  %v4327_v6 = vcombine.high %v498_v24, %v502_v0  ;;  %v4326_v10 = vcombine.low %v498_v24, %v502_v0  ;;  %v4478_v54 = vcombine.low %v650_v30, %v654_v31 }
 0x1de   : > { %3863 = vmatprep.subr.bf16.mxu0 %v4311_v56  ;;  %3904 = vmatprep.subr.bf16.mxu1 %v4439_v13  ;;  %v4455_v7 = vcombine.high %v626_v28, %v630_v1  ;;  %v4454_v11 = vcombine.low %v626_v28, %v630_v1  ;;  %v4359_v55 = vcombine.high %v530_v38, %v534_v40  ;;  %v546_v28 = vld [vmem:[%s6267_s2 + $0xa58] sm:$0xff] }
 0x1df   : > { %3893 = vmatprep.mubr.bf16.mxu0 %v4882_v36  ;;  %3934 = vmatprep.mubr.bf16.mxu1 %v4891_v39  ;;  %v506_v36 = vld [vmem:[%s6267_s2 + $0x918] sm:$0xff]  ;;  %v4391_v30 = vcombine.high %v562_v18, %v566_v20 }
 0x1e0   : > { %v634_v39 = vld [vmem:[%s6267_s2 + $0xd18] sm:$0xff]  ;;  %v4335_v12 = vcombine.high %v506_v36, %v510_v8  ;;  %v4334_v21 = vcombine.low %v506_v36, %v510_v8 }
 0x1e1   : > { %3864 = vmatpush1.bf16.msra.mxu0 %v4310_v61  ;;  %3905 = vmatpush1.bf16.msra.mxu1 %v4438_v62  ;;  %v4463_v14 = vcombine.high %v634_v39, %v638_v9  ;;  %v4462_v22 = vcombine.low %v634_v39, %v638_v9  ;;  %v670_v61 = vld [vmem:[%s6267_s2 + $0xe38] sm:$0xff] }
 0x1e2   : > { %3865 = vmatprep.subr.bf16.mxu0 %v4319_v17  ;;  %3906 = vmatprep.subr.bf16.mxu1 %v4447_v63  ;;  %v4358_v17 = vcombine.low %v530_v38, %v534_v40  ;;  %v4486_v63 = vcombine.low %v658_v45, %v662_v46  ;;  %v4495_v0 = vcombine.high %v666_v60, %v670_v61  ;;  %v550_v1 = vld [vmem:[%s6267_s2 + $0xa78] sm:$0xff] }
 0x1e3   : > { %v4375_v36 = vcombine.high %v546_v28, %v550_v1  ;;  %v554_v39 = vld [vmem:[%s6267_s2 + $0xa98] sm:$0xff] }
 0x1e4   : > { %v558_v9 = vld [vmem:[%s6267_s2 + $0xab8] sm:$0xff] }
 0x1e5   : > { %3866 = vmatpush1.bf16.msra.mxu0 %v4318_v4  ;;  %3907 = vmatpush1.bf16.msra.mxu1 %v4446_v5  ;;  %v674_v4 = vld [vmem:[%s6267_s2 + $0xe58] sm:$0xff]  ;;  %v4383_v15 = vcombine.high %v554_v39, %v558_v9  ;;  %v4382_v27 = vcombine.low %v554_v39, %v558_v9 }
 0x1e6   : > { %3867 = vmatprep.subr.bf16.mxu0 %v4327_v6  ;;  %3908 = vmatprep.subr.bf16.mxu1 %v4455_v7  ;;  %v678_v5 = vld [vmem:[%s6267_s2 + $0xe78] sm:$0xff]  ;;  %v4494_v7 = vcombine.low %v666_v60, %v670_v61 }
 0x1e7   : > { %v4503_v8 = vcombine.high %v674_v4, %v678_v5  ;;  %v706_v45 = vld [vmem:[%s6267_s2 + $0xf58] sm:$0xff] }
 0x1e8   : > { %v710_v46 = vld [vmem:[%s6267_s2 + $0xf78] sm:$0xff] }
 0x1e9   : > { %3868 = vmatpush1.bf16.msra.mxu0 %v4326_v10  ;;  %3909 = vmatpush1.bf16.msra.mxu1 %v4454_v11  ;;  %v682_v10 = vld [vmem:[%s6267_s2 + $0xe98] sm:$0xff] }
 0x1ea   : > { %3869 = vmatprep.subr.bf16.mxu0 %v4335_v12  ;;  %3910 = vmatprep.subr.bf16.mxu1 %v4463_v14  ;;  %v686_v11 = vld [vmem:[%s6267_s2 + $0xeb8] sm:$0xff]  ;;  %v4374_v12 = vcombine.low %v546_v28, %v550_v1  ;;  %v4502_v14 = vcombine.low %v674_v4, %v678_v5 }
 0x1eb   : > { %v4511_v16 = vcombine.high %v682_v10, %v686_v11  ;;  %v4510_v29 = vcombine.low %v682_v10, %v686_v11 }
 0x1ed   : > { %3870 = vmatpush1.bf16.msra.mxu0 %v4334_v21  ;;  %3911 = vmatpush1.bf16.msra.mxu1 %v4462_v22  ;;  %v690_v22 = vld [vmem:[%s6267_s2 + $0xed8] sm:$0xff] }
 0x1ee   : > { %3871 = vmatprep.subr.bf16.mxu0 %v4343_v25  ;;  %3912 = vmatprep.subr.bf16.mxu1 %v4471_v26  ;;  %v694_v25 = vld [vmem:[%s6267_s2 + $0xef8] sm:$0xff] }
 0x1ef   : > { %v3567_v35 = vpop.f32.mrb[12].mxu0  ;;  %v3608_v42 = vpop.f32.mrb[12].mxu1  ;;  %v4519_v31 = vcombine.high %v690_v22, %v694_v25  ;;  %v4518_v38 = vcombine.low %v690_v22, %v694_v25 }
 0x1f0   : > { %v3568_v41 = vadd.f32 %v3567_v35, %v5950_v19  ;;  %v3569_v43 = vpop.f32.mrb[13].mxu0  ;;  %v3610_v50 = vpop.f32.mrb[13].mxu1  ;;  %v702_v35 = vld [vmem:[%s6267_s2 + $0xf38] sm:$0xff] }
 0x1f1   : > { %v3570_v49 = vadd.f32 %v3569_v43, %v5952_v23  ;;  %v3571_v51 = vpop.f32.mrb[14].mxu0  ;;  %3872 = vmatpush1.bf16.msra.mxu0 %v4342_v32  ;;  %v3612_v19 = vpop.f32.mrb[14].mxu1  ;;  %3913 = vmatpush1.bf16.msra.mxu1 %v4470_v33  ;;  %v538_v23 = vld [vmem:[%s6267_s2 + $0xa18] sm:$0xff] }
 0x1f2   : > { %v3609_v52 = vadd.f32 %v3608_v42, %v3568_v41  ;;  %v3572_v53 = vpop.f32.mrb[15].mxu0  ;;  %3873 = vmatprep.subr.bf16.mxu0 %v4351_v34  ;;  %v3613_v13 = vpop.f32.mrb[15].mxu1  ;;  %3914 = vmatprep.subr.bf16.mxu1 %v4479_v37  ;;  %v4367_v24 = vcombine.high %v538_v23, %v542_v58  ;;  %v4366_v6 = vcombine.low %v538_v23, %v542_v58  ;;  %v570_v32 = vld [vmem:[%s6267_s2 + $0xb18] sm:$0xff] }
 0x1f3   : > { %v3611_v56 = vadd.f32 %v3610_v50, %v3570_v49  ;;  %v574_v33 = vld [vmem:[%s6267_s2 + $0xb38] sm:$0xff]  ;;  %v4390_v37 = vcombine.low %v562_v18, %v566_v20  ;;  %v4535_v51 = vcombine.high %v706_v45, %v710_v46 }
 0x1f4   : > { %v3945_v59 = vadd.f32 %v3609_v52, %v201_v48  ;;  %v698_v34 = vld [vmem:[%s6267_s2 + $0xf18] sm:$0xff]  ;;  %v4399_v40 = vcombine.high %v570_v32, %v574_v33  ;;  %v4398_v48 = vcombine.low %v570_v32, %v574_v33 }
 0x1f5   : > { %v3946_v62 = vadd.f32 %v3611_v56, %v202_v3  ;;  %3874 = vmatpush1.bf16.msra.mxu0 %v4350_v2  ;;  %3915 = vmatpush1.bf16.msra.mxu1 %v4478_v54  ;;  %v4527_v41 = vcombine.high %v698_v34, %v702_v35  ;;  %v578_v42 = vld [vmem:[%s6267_s2 + $0xb58] sm:$0xff]  ;;  %v4526_v49 = vcombine.low %v698_v34, %v702_v35 }
 0x1f6   : > { %4568 = vtanh.f32 %v3945_v59  ;;  %3875 = vmatprep.subr.bf16.mxu0 %v4359_v55  ;;  %3916 = vmatprep.subr.bf16.mxu1 %v4487_v57  ;;  %v582_v43 = vld [vmem:[%s6267_s2 + $0xb78] sm:$0xff]  ;;  %v4534_v54 = vcombine.low %v706_v45, %v710_v46 }
 0x1f7   : > { %4570 = vtanh.f32 %v3946_v62  ;;  %v4407_v50 = vcombine.high %v578_v42, %v582_v43  ;;  %v586_v2 = vld [vmem:[%s6267_s2 + $0xb98] sm:$0xff]  ;;  %v4406_v53 = vcombine.low %v578_v42, %v582_v43 }
 0x1f8   : > { %v590_v52 = vld [vmem:[%s6267_s2 + $0xbb8] sm:$0xff] }
 0x1f9   : > { %3876 = vmatpush1.bf16.msra.mxu0 %v4358_v17  ;;  %3917 = vmatpush1.bf16.msra.mxu1 %v4486_v63  ;;  %v714_v3 = vld [vmem:[%s6267_s2 + $0xf98] sm:$0xff]  ;;  %v4415_v55 = vcombine.high %v586_v2, %v590_v52  ;;  %v4414_v59 = vcombine.low %v586_v2, %v590_v52 }
 0x1fa   : > { %3877 = vmatprep.subr.bf16.mxu0 %v4367_v24  ;;  %3918 = vmatprep.subr.bf16.mxu1 %v4495_v0  ;;  %v718_v19 = vld [vmem:[%s6267_s2 + $0xfb8] sm:$0xff] }
 0x1fb   : > { %v4543_v56 = vcombine.high %v714_v3, %v718_v19  ;;  %v594_v13 = vld [vmem:[%s6267_s2 + $0xbd8] sm:$0xff]  ;;  %v4542_v60 = vcombine.low %v714_v3, %v718_v19 }
 0x1fc   : > { %v598_v57 = vld [vmem:[%s6267_s2 + $0xbf8] sm:$0xff] }
 0x1fd   : > { %3878 = vmatpush1.bf16.msra.mxu0 %v4366_v6  ;;  %3919 = vmatpush1.bf16.msra.mxu1 %v4494_v7  ;;  %v722_v23 = vld [vmem:[%s6267_s2 + $0xfd8] sm:$0xff]  ;;  %v4423_v61 = vcombine.high %v594_v13, %v598_v57  ;;  %v4422_v17 = vcombine.low %v594_v13, %v598_v57 }
 0x1fe   : > { %3879 = vmatprep.subr.bf16.mxu0 %v4375_v36  ;;  %3920 = vmatprep.subr.bf16.mxu1 %v4503_v8  ;;  %v726_v58 = vld [vmem:[%s6267_s2 + $0xff8] sm:$0xff] }
 0x1ff   : > { %v4551_v62 = vcombine.high %v722_v23, %v726_v58  ;;  %v4550_v63 = vcombine.low %v722_v23, %v726_v58  ;;  %v206_v52 = vld [vmem:[%s4619_s18 + $0x38] sm:$0xff] }
 0x200   : > { %v4569_v21 = vpop.eup %4568 }
 0x201   : > { %v4571_v26 = vpop.eup %4570  ;;  %3961 = vst [vmem:[#allocation2 + $0x10] sm:$0xff] %v4569_v21  ;;  %3969 = vst [vmem:[%s4624_s21 + $0x10] sm:$0xff] %v4569_v21  ;;  %3880 = vmatpush1.bf16.msra.mxu0 %v4374_v12  ;;  %3921 = vmatpush1.bf16.msra.mxu1 %v4502_v14  ;;  %v203_v12 = vld [vmem:[%s4619_s18 + $0x20] sm:$0xff] }
 0x202   : > { %3962 = vst [vmem:[#allocation2 + $0x18] sm:$0xff] %v4571_v26  ;;  %3970 = vst [vmem:[%s4624_s21 + $0x18] sm:$0xff] %v4571_v26  ;;  %3881 = vmatprep.subr.bf16.mxu0 %v4383_v15  ;;  %3922 = vmatprep.subr.bf16.mxu1 %v4511_v16  ;;  %v204_v16 = vld [vmem:[%s4619_s18 + $0x28] sm:$0xff] }
 0x205   : > { %3882 = vmatpush1.bf16.msra.mxu0 %v4382_v27  ;;  %3923 = vmatpush1.bf16.msra.mxu1 %v4510_v29 }
 0x206   : > { %3883 = vmatprep.subr.bf16.mxu0 %v4391_v30  ;;  %3924 = vmatprep.subr.bf16.mxu1 %v4519_v31 }
 0x209   : > { %3884 = vmatpush1.bf16.msra.mxu0 %v4390_v37  ;;  %3925 = vmatpush1.bf16.msra.mxu1 %v4518_v38 }
 0x20a   : > { %3885 = vmatprep.subr.bf16.mxu0 %v4399_v40  ;;  %3926 = vmatprep.subr.bf16.mxu1 %v4527_v41 }
 0x20d   : > { %3886 = vmatpush1.bf16.msra.mxu0 %v4398_v48  ;;  %3927 = vmatpush1.bf16.msra.mxu1 %v4526_v49  ;;  %v205_v48 = vld [vmem:[%s4619_s18 + $0x30] sm:$0xff] }
 0x20e   : > { %3887 = vmatprep.subr.bf16.mxu0 %v4407_v50  ;;  %3928 = vmatprep.subr.bf16.mxu1 %v4535_v51 }
 0x211   : > { %3888 = vmatpush1.bf16.msra.mxu0 %v4406_v53  ;;  %3929 = vmatpush1.bf16.msra.mxu1 %v4534_v54 }
 0x212   : > { %3889 = vmatprep.subr.bf16.mxu0 %v4415_v55  ;;  %3930 = vmatprep.subr.bf16.mxu1 %v4543_v56 }
 0x215   : > { %3890 = vmatpush1.bf16.msra.mxu0 %v4414_v59  ;;  %3931 = vmatpush1.bf16.msra.mxu1 %v4542_v60 }
 0x216   : > { %3891 = vmatprep.subr.bf16.mxu0 %v4423_v61  ;;  %3932 = vmatprep.subr.bf16.mxu1 %v4551_v62 }
 0x219   : > { %3892 = vmatpush1.bf16.msra.mxu0 %v4422_v17  ;;  %3933 = vmatpush1.bf16.msra.mxu1 %v4550_v63 }
 0x21c   : > { %3894 = vmatmul.mubr.bf16.vlgmr.msra.gmra.mrb[28].mxu0 %v5070_v44  ;;  %3935 = vmatmul.mubr.bf16.vlgmr.msra.gmra.mrb[28].mxu1 %v5078_v47 }
 0x22f   : > { %v3649_v24 = vpop.f32.mrb[16].mxu0  ;;  %v3690_v0 = vpop.f32.mrb[16].mxu1 }
 0x230   : > { %v3651_v28 = vpop.f32.mrb[17].mxu0  ;;  %v3691_v1 = vadd.f32 %v3690_v0, %v3649_v24  ;;  %v3692_v4 = vpop.f32.mrb[17].mxu1 }
 0x231   : > { %v3653_v5 = vpop.f32.mrb[18].mxu0  ;;  %v3693_v6 = vadd.f32 %v3692_v4, %v3651_v28  ;;  %v3694_v7 = vpop.f32.mrb[18].mxu1 }
 0x232   : > { %v3654_v36 = vpop.f32.mrb[19].mxu0  ;;  %v3695_v8 = vpop.f32.mrb[19].mxu1 }
 0x26f   : > { %v3731_v39 = vpop.f32.mrb[20].mxu0  ;;  %v3772_v10 = vpop.f32.mrb[20].mxu1 }
 0x270   : > { %v3732_v9 = vadd.f32 %v3731_v39, %v3691_v1  ;;  %v3733_v11 = vpop.f32.mrb[21].mxu0  ;;  %v3774_v14 = vpop.f32.mrb[21].mxu1 }
 0x271   : > { %v3734_v44 = vadd.f32 %v3733_v11, %v3693_v6  ;;  %v3735_v47 = vpop.f32.mrb[22].mxu0  ;;  %v3776_v18 = vpop.f32.mrb[22].mxu1 }
 0x272   : > { %v3773_v15 = vadd.f32 %v3772_v10, %v3732_v9  ;;  %v3736_v20 = vpop.f32.mrb[23].mxu0  ;;  %v3777_v22 = vpop.f32.mrb[23].mxu1 }
 0x273   : > { %v3775_v21 = vadd.f32 %v3774_v14, %v3734_v44 }
 0x274   : > { %v3947_v25 = vadd.f32 %v3773_v15, %v203_v12 }
 0x275   : > { %v3948_v26 = vadd.f32 %v3775_v21, %v204_v16 }
 0x276   : > { %4572 = vtanh.f32 %v3947_v25 }
 0x277   : > { %4574 = vtanh.f32 %v3948_v26 }
 0x280   : > { %v4573_v27 = vpop.eup %4572 }
 0x281   : > { %v4575_v29 = vpop.eup %4574  ;;  %3963 = vst [vmem:[#allocation2 + $0x20] sm:$0xff] %v4573_v27  ;;  %3971 = vst [vmem:[%s4624_s21 + $0x20] sm:$0xff] %v4573_v27 }
 0x282   : > { %3964 = vst [vmem:[#allocation2 + $0x28] sm:$0xff] %v4575_v29  ;;  %3972 = vst [vmem:[%s4624_s21 + $0x28] sm:$0xff] %v4575_v29 }
 0x2af   : > { %v3813_v30 = vpop.f32.mrb[24].mxu0  ;;  %v3854_v31 = vpop.f32.mrb[24].mxu1 }
 0x2b0   : > { %v3815_v32 = vpop.f32.mrb[25].mxu0  ;;  %v3855_v33 = vadd.f32 %v3854_v31, %v3813_v30  ;;  %v3856_v34 = vpop.f32.mrb[25].mxu1 }
 0x2b1   : > { %v3817_v35 = vpop.f32.mrb[26].mxu0  ;;  %v3857_v37 = vadd.f32 %v3856_v34, %v3815_v32  ;;  %v3858_v38 = vpop.f32.mrb[26].mxu1 }
 0x2b2   : > { %v3818_v40 = vpop.f32.mrb[27].mxu0  ;;  %v3859_v41 = vpop.f32.mrb[27].mxu1 }
 0x2ef   : > { %v3895_v42 = vpop.f32.mrb[28].mxu0  ;;  %v3936_v45 = vpop.f32.mrb[28].mxu1 }
 0x2f0   : > { %v3896_v43 = vadd.f32 %v3895_v42, %v3855_v33  ;;  %v3897_v46 = vpop.f32.mrb[29].mxu0  ;;  %v3938_v50 = vpop.f32.mrb[29].mxu1 }
 0x2f1   : > { %v3898_v49 = vadd.f32 %v3897_v46, %v3857_v37  ;;  %v3899_v51 = vpop.f32.mrb[30].mxu0  ;;  %v3940_v3 = vpop.f32.mrb[30].mxu1 }
 0x2f2   : > { %v3937_v2 = vadd.f32 %v3936_v45, %v3896_v43  ;;  %v3900_v19 = vpop.f32.mrb[31].mxu0  ;;  %v3941_v54 = vpop.f32.mrb[31].mxu1 }
 0x2f3   : > { %v3939_v53 = vadd.f32 %v3938_v50, %v3898_v49 }
 0x2f4   : > { %v3949_v55 = vadd.f32 %v3937_v2, %v205_v48 }
 0x2f5   : > { %v3950_v56 = vadd.f32 %v3939_v53, %v206_v52 }
 0x2f6   : > { %4576 = vtanh.f32 %v3949_v55 }
 0x2f7   : > { %4578 = vtanh.f32 %v3950_v56 }
 0x300   : > { %v4577_v13 = vpop.eup %4576 }
 0x301   : > { %v4579_v57 = vpop.eup %4578  ;;  %3965 = vst [vmem:[#allocation2 + $0x30] sm:$0xff] %v4577_v13  ;;  %3973 = vst [vmem:[%s4624_s21 + $0x30] sm:$0xff] %v4577_v13 }
 0x302   : > { %3966 = vst [vmem:[#allocation2 + $0x38] sm:$0xff] %v4579_v57  ;;  %3974 = vst [vmem:[%s4624_s21 + $0x38] sm:$0xff] %v4579_v57 }
 0x303 PF: > { %s13_s12 = sadd.s32 1, %s4586_s12  }
 0x304   : > { %p10_p5 = scmp.ge.s32.totalorder %s13_s12, 10  }
 0x306   :  { %12 = sbr.rel (!%p10_p5) target bundleno = 1 (0x1), region = 66 }

</bundles_post_ra>
